<compile_context>
chip_gen: v5e
topology: v5e:2x2
jax: 0.10.0
libtpu: 0.0.40
codegen_flags: <defaults>
</compile_context>

<pallas_src>
import functools

import jax
import jax.numpy as jnp
from jax import lax
from jax.experimental import pallas as pl
from jax.experimental.pallas import tpu as pltpu

# Keep XLA-reference and in-kernel matmuls at full f32 precision so they agree numerically.
jax.config.update("jax_default_matmul_precision", "highest")


# ---------------------------------------------------------------------------
# small helpers
# ---------------------------------------------------------------------------

def _layer_norm(y, gamma, beta, eps):
    mu = jnp.mean(y, axis=-1, keepdims=True)
    var = jnp.mean(jnp.square(y - mu), axis=-1, keepdims=True)
    return (y - mu) * lax.rsqrt(var + eps) * gamma + beta


def _vmem_call(kernel, out_shape, *args):
    """Single-invocation pallas_call: whole arrays resident in VMEM (no grid, no per-step overhead)."""
    return pl.pallas_call(
        kernel,
        out_shape=out_shape,
        in_specs=[pl.BlockSpec(memory_space=pltpu.MemorySpace.VMEM)] * len(args),
        out_specs=pl.BlockSpec(memory_space=pltpu.MemorySpace.VMEM),
    )(*args)


# ---------------------------------------------------------------------------
# kernels
# ---------------------------------------------------------------------------

def _posadd_inproj_kernel(x_ref, pe_ref, w_ref, b_ref, o_ref, *, batch):
    """Fused: (x + fixed positional encoding) @ W_in + b_in.

    x_ref: (B*S, D_in), pe_ref: (S, D_in), w_ref: (D_in, D_model), b_ref: (1, D_model).
    """
    xp = x_ref[...] + jnp.tile(pe_ref[...], (batch, 1))
    o_ref[...] = (
        jnp.dot(xp, w_ref[...], preferred_element_type=jnp.float32) + b_ref[...]
    ).astype(o_ref.dtype)


def _linear_kernel(x_ref, w_ref, b_ref, o_ref):
    """out = x @ W + b (final output projection)."""
    o_ref[...] = (
        jnp.dot(x_ref[...], w_ref[...], preferred_element_type=jnp.float32) + b_ref[...]
    ).astype(o_ref.dtype)


def _encoder_layer_kernel(x_ref, wqkv_ref, bqkv_ref, wo_ref, bo_ref,
                          g1_ref, be1_ref, w1_ref, b1_ref, w2_ref, b2_ref,
                          g2_ref, be2_ref, o_ref,
                          *, batch, seq, heads, eps, norm_first):
    """One nn.TransformerEncoderLayer (batch_first, relu, dropout=0) on a (B*S, D) slab."""
    d_model = x_ref.shape[-1]
    dh = d_model // heads
    scale = 1.0 / (float(dh) ** 0.5)

    x = x_ref[...]

    def self_attention(xa):
        qkv = jnp.dot(xa, wqkv_ref[...], preferred_element_type=jnp.float32) + bqkv_ref[...]
        q = qkv[:, :d_model]
        k = qkv[:, d_model:2 * d_model]
        v = qkv[:, 2 * d_model:]
        ctx_rows = []
        for b in range(batch):                 # static loops -> only 2-D ops in the lowered kernel
            rs = slice(b * seq, (b + 1) * seq)
            head_parts = []
            for h in range(heads):
                cs = slice(h * dh, (h + 1) * dh)
                qh = q[rs, cs]
                kh = k[rs, cs]
                vh = v[rs, cs]
                # scores = q @ k^T  (contract last dims; same pattern as 'bqd,bkd->bqk')
                s = lax.dot_general(qh, kh, (((1,), (1,)), ((), ())),
                                    preferred_element_type=jnp.float32) * scale
                s = s - jnp.max(s, axis=-1, keepdims=True)
                p = jnp.exp(s)
                p = p / jnp.sum(p, axis=-1, keepdims=True)
                head_parts.append(jnp.dot(p, vh, preferred_element_type=jnp.float32))
            ctx_rows.append(jnp.concatenate(head_parts, axis=-1))   # (S, D)
        ctx = jnp.concatenate(ctx_rows, axis=0)                     # (B*S, D)
        return jnp.dot(ctx, wo_ref[...], preferred_element_type=jnp.float32) + bo_ref[...]

    def ffn(xf):
        h = jnp.dot(xf, w1_ref[...], preferred_element_type=jnp.float32) + b1_ref[...]
        h = jnp.maximum(h, 0.0)  # relu
        return jnp.dot(h, w2_ref[...], preferred_element_type=jnp.float32) + b2_ref[...]

    if norm_first:
        x = x + self_attention(_layer_norm(x, g1_ref[...], be1_ref[...], eps))
        x = x + ffn(_layer_norm(x, g2_ref[...], be2_ref[...], eps))
    else:
        x = _layer_norm(x + self_attention(x), g1_ref[...], be1_ref[...], eps)
        x = _layer_norm(x + ffn(x), g2_ref[...], be2_ref[...], eps)

    o_ref[...] = x.astype(o_ref.dtype)


# ---------------------------------------------------------------------------
# model wrapper
# ---------------------------------------------------------------------------

def make_fixed_positional_encoding(d_model, max_len):
    """Same table as FixedPositionalEncoding.__init__ (host-side constant)."""
    pos = jnp.arange(max_len, dtype=jnp.float32)[:, None]
    inv = jnp.power(10000.0, jnp.arange(0, d_model, 2, dtype=jnp.float32) / d_model)
    arg = pos / inv[None, :]
    pe = jnp.zeros((max_len, d_model), dtype=jnp.float32)
    pe = pe.at[:, 0::2].set(jnp.sin(arg))
    pe = pe.at[:, 1::2].set(jnp.cos(arg))
    return pe


def _xavier_uniform(key, shape):
    fan_in, fan_out = shape
    a = (6.0 / (fan_in + fan_out)) ** 0.5
    return jax.random.uniform(key, shape, jnp.float32, -a, a)


def init_params(key, input_size, output_size, d_model, dim_ff, num_layers):
    keys = jax.random.split(key, 2 + num_layers)
    params = {
        "w_in": _xavier_uniform(keys[0], (input_size, d_model)),
        "b_in": jnp.zeros((1, d_model), jnp.float32),
        "w_out": _xavier_uniform(keys[1], (d_model, output_size)),
        "b_out": jnp.zeros((1, output_size), jnp.float32),
        "layers": [],
    }
    for l in range(num_layers):
        k0, k1, k2, k3 = jax.random.split(keys[2 + l], 4)
        params["layers"].append({
            "wqkv": _xavier_uniform(k0, (d_model, 3 * d_model)),
            "bqkv": jnp.zeros((1, 3 * d_model), jnp.float32),
            "wo":   _xavier_uniform(k1, (d_model, d_model)),
            "bo":   jnp.zeros((1, d_model), jnp.float32),
            "w1":   _xavier_uniform(k2, (d_model, dim_ff)),
            "b1":   jnp.zeros((1, dim_ff), jnp.float32),
            "w2":   _xavier_uniform(k3, (dim_ff, d_model)),
            "b2":   jnp.zeros((1, d_model), jnp.float32),
            "g1":   jnp.ones((1, d_model), jnp.float32),
            "be1":  jnp.zeros((1, d_model), jnp.float32),
            "g2":   jnp.ones((1, d_model), jnp.float32),
            "be2":  jnp.zeros((1, d_model), jnp.float32),
        })
    return params


def vanilla_transformer_forward(x, pe, params, *, num_heads, norm_first=False, eps=1e-5):
    """x: (B, S, input_size) -> (B, S, output_size), all Pallas kernels."""
    B, S, d_in = x.shape
    d_model = params["w_in"].shape[1]
    out_size = params["w_out"].shape[1]
    M = B * S
    x2d = x.reshape(M, d_in)          # free layout plumbing in the wrapper

    # Fused positional add + input projection.
    h = _vmem_call(
        functools.partial(_posadd_inproj_kernel, batch=B),
        jax.ShapeDtypeStruct((M, d_model), jnp.float32),
        x2d, pe[:S], params["w_in"], params["b_in"],
    )

    # Encoder layers (one fused kernel per layer).
    for lp in params["layers"]:
        h = _vmem_call(
            functools.partial(_encoder_layer_kernel, batch=B, seq=S,
                              heads=num_heads, eps=eps, norm_first=norm_first),
            jax.ShapeDtypeStruct((M, d_model), jnp.float32),
            h, lp["wqkv"], lp["bqkv"], lp["wo"], lp["bo"],
            lp["g1"], lp["be1"], lp["w1"], lp["b1"], lp["w2"], lp["b2"],
            lp["g2"], lp["be2"],
        )

    # Output projection.
    y = _vmem_call(
        _linear_kernel,
        jax.ShapeDtypeStruct((M, out_size), jnp.float32),
        h, params["w_out"], params["b_out"],
    )
    return y.reshape(B, S, out_size)


# ---------------------------------------------------------------------------
# pure-JAX reference (same math, same parameter layout)
# ---------------------------------------------------------------------------

def reference_forward(x, pe, params, *, num_heads, norm_first=False, eps=1e-5):
    B, S, _ = x.shape
    h = x + pe[None, :S, :]
    h = h @ params["w_in"] + params["b_in"]
    d_model = h.shape[-1]
    dh = d_model // num_heads
    scale = 1.0 / (float(dh) ** 0.5)

    def ln(y, g, b):
        mu = y.mean(-1, keepdims=True)
        var = ((y - mu) ** 2).mean(-1, keepdims=True)
        return (y - mu) / jnp.sqrt(var + eps) * g + b

    for lp in params["layers"]:
        def sa(z, lp=lp):
            qkv = z @ lp["wqkv"] + lp["bqkv"]
            q, k, v = jnp.split(qkv, 3, axis=-1)

            def split_heads(t):
                return t.reshape(B, S, num_heads, dh).transpose(0, 2, 1, 3)

            q, k, v = split_heads(q), split_heads(k), split_heads(v)
            s = jnp.einsum("bhqd,bhkd->bhqk", q, k) * scale
            p = jax.nn.softmax(s, axis=-1)
            ctx = jnp.einsum("bhqk,bhkd->bhqd", p, v)
            ctx = ctx.transpose(0, 2, 1, 3).reshape(B, S, d_model)
            return ctx @ lp["wo"] + lp["bo"]

        def ff(z, lp=lp):
            return jnp.maximum(z @ lp["w1"] + lp["b1"], 0.0) @ lp["w2"] + lp["b2"]

        if norm_first:
            h = h + sa(ln(h, lp["g1"], lp["be1"]))
            h = h + ff(ln(h, lp["g2"], lp["be2"]))
        else:
            h = ln(h + sa(h), lp["g1"], lp["be1"])
            h = ln(h + ff(h), lp["g2"], lp["be2"])

    return h @ params["w_out"] + params["b_out"]


# ---------------------------------------------------------------------------
# main
# ---------------------------------------------------------------------------

if __name__ == "__main__":
    # Small config consistent with the module (cfg.network.*).
    batch, max_seq_len = 2, 8
    input_size, d_model, output_size = 32, 32, 8
    num_heads, dim_ff, num_layers = 4, 64, 2
    norm_first = False  # nn.TransformerEncoderLayer default

    # The PyTorch module broadcast-adds a d_model-wide PE table to the raw input,
    # which only works when input_size == d_model.
    assert input_size == d_model

    key = jax.random.PRNGKey(0)
    kx, kp = jax.random.split(key)
    x = jax.random.normal(kx, (batch, max_seq_len, input_size), dtype=jnp.float32)
    params = init_params(kp, input_size, output_size, d_model, dim_ff, num_layers)
    pe = make_fixed_positional_encoding(d_model, max_seq_len)

    fwd = jax.jit(functools.partial(vanilla_transformer_forward,
                                    num_heads=num_heads, norm_first=norm_first))
    out = fwd(x, pe, params)
    out = jax.block_until_ready(out)

    ref = reference_forward(x, pe, params, num_heads=num_heads, norm_first=norm_first)
    assert out.shape == (batch, max_seq_len, output_size)
    assert jnp.allclose(out, ref, atol=1e-3, rtol=1e-3), (
        f"mismatch vs reference: max abs err {jnp.max(jnp.abs(out - ref))}")

    print("KERNEL_OK")
</pallas_src>

<mosaic_0001>
module attributes {stable_mosaic.version = 11 : i64} {
  func.func @_posadd_inproj_kernel(%arg0: memref<16x32xf32, #tpu.memory_space<vmem>>, %arg1: memref<8x32xf32, #tpu.memory_space<vmem>>, %arg2: memref<32x32xf32, #tpu.memory_space<vmem>>, %arg3: memref<1x32xf32, #tpu.memory_space<vmem>>, %arg4: memref<16x32xf32, #tpu.memory_space<vmem>>) attributes {dimension_semantics = [], scalar_prefetch = 0 : i64, scratch_operands = 0 : i64, tpu.core_type = #tpu.core_type<tc>} {
    %c0 = arith.constant 0 : index
    %c0_0 = arith.constant 0 : index
    %0 = vector.load %arg0[%c0, %c0_0] : memref<16x32xf32, #tpu.memory_space<vmem>>, vector<16x32xf32>
    %c0_1 = arith.constant 0 : index
    %c0_2 = arith.constant 0 : index
    %1 = vector.load %arg1[%c0_1, %c0_2] : memref<8x32xf32, #tpu.memory_space<vmem>>, vector<8x32xf32>
    %2 = tpu.concatenate %1, %1 in 0 : vector<8x32xf32>, vector<8x32xf32> -> vector<16x32xf32>
    %3 = arith.addf %0, %2 : vector<16x32xf32>
    %c0_3 = arith.constant 0 : index
    %c0_4 = arith.constant 0 : index
    %4 = vector.load %arg2[%c0_3, %c0_4] : memref<32x32xf32, #tpu.memory_space<vmem>>, vector<32x32xf32>
    %cst = arith.constant dense<0.000000e+00> : vector<16x32xf32>
    %5 = tpu.matmul %3, %4, %cst {dimension_numbers = #tpu.dot_dimension_numbers<[1], [0], [0], [1], [0, 0, 1, 1], [], []>, precision = #tpu.contract_precision<fp32>} : vector<16x32xf32>, vector<32x32xf32>, vector<16x32xf32> -> vector<16x32xf32>
    %c0_5 = arith.constant 0 : index
    %c0_6 = arith.constant 0 : index
    %6 = vector.load %arg3[%c0_5, %c0_6] : memref<1x32xf32, #tpu.memory_space<vmem>>, vector<1x32xf32>
    %7 = vector.broadcast %6 : vector<1x32xf32> to vector<16x32xf32>
    %8 = arith.addf %5, %7 : vector<16x32xf32>
    %c0_7 = arith.constant 0 : index
    %c0_8 = arith.constant 0 : index
    %9 = vector.load %arg4[%c0_7, %c0_8] : memref<16x32xf32, #tpu.memory_space<vmem>>, vector<16x32xf32>
    tpu.vector_store %arg4[%c0_7, %c0_8], %8 {strides = array<i32>} : memref<16x32xf32, #tpu.memory_space<vmem>>, vector<16x32xf32>,
    return
  }
}

module attributes {stable_mosaic.version = 11 : i64} {
  func.func @_encoder_layer_kernel(%arg0: memref<16x32xf32, #tpu.memory_space<vmem>>, %arg1: memref<32x96xf32, #tpu.memory_space<vmem>>, %arg2: memref<1x96xf32, #tpu.memory_space<vmem>>, %arg3: memref<32x32xf32, #tpu.memory_space<vmem>>, %arg4: memref<1x32xf32, #tpu.memory_space<vmem>>, %arg5: memref<1x32xf32, #tpu.memory_space<vmem>>, %arg6: memref<1x32xf32, #tpu.memory_space<vmem>>, %arg7: memref<32x64xf32, #tpu.memory_space<vmem>>, %arg8: memref<1x64xf32, #tpu.memory_space<vmem>>, %arg9: memref<64x32xf32, #tpu.memory_space<vmem>>, %arg10: memref<1x32xf32, #tpu.memory_space<vmem>>, %arg11: memref<1x32xf32, #tpu.memory_space<vmem>>, %arg12: memref<1x32xf32, #tpu.memory_space<vmem>>, %arg13: memref<16x32xf32, #tpu.memory_space<vmem>>) attributes {dimension_semantics = [], scalar_prefetch = 0 : i64, scratch_operands = 0 : i64, tpu.core_type = #tpu.core_type<tc>} {
    %c0 = arith.constant 0 : index
    %c0_0 = arith.constant 0 : index
    %0 = vector.load %arg0[%c0, %c0_0] : memref<16x32xf32, #tpu.memory_space<vmem>>, vector<16x32xf32>
    %c0_1 = arith.constant 0 : index
    %c0_2 = arith.constant 0 : index
    %1 = vector.load %arg1[%c0_1, %c0_2] : memref<32x96xf32, #tpu.memory_space<vmem>>, vector<32x96xf32>
    %cst = arith.constant dense<0.000000e+00> : vector<16x96xf32>
    %2 = tpu.matmul %0, %1, %cst {dimension_numbers = #tpu.dot_dimension_numbers<[1], [0], [0], [1], [0, 0, 1, 1], [], []>, precision = #tpu.contract_precision<fp32>} : vector<16x32xf32>, vector<32x96xf32>, vector<16x96xf32> -> vector<16x96xf32>
    %c0_3 = arith.constant 0 : index
    %c0_4 = arith.constant 0 : index
    %3 = vector.load %arg2[%c0_3, %c0_4] : memref<1x96xf32, #tpu.memory_space<vmem>>, vector<1x96xf32>
    %4 = vector.broadcast %3 : vector<1x96xf32> to vector<16x96xf32>
    %5 = arith.addf %2, %4 : vector<16x96xf32>
    %6 = vector.extract_strided_slice %5 {offsets = [0, 0], sizes = [16, 32], strides = [1, 1]} : vector<16x96xf32> to vector<16x32xf32>
    %7 = vector.extract_strided_slice %5 {offsets = [0, 32], sizes = [16, 32], strides = [1, 1]} : vector<16x96xf32> to vector<16x32xf32>
    %8 = vector.extract_strided_slice %5 {offsets = [0, 64], sizes = [16, 32], strides = [1, 1]} : vector<16x96xf32> to vector<16x32xf32>
    %9 = vector.extract_strided_slice %6 {offsets = [0, 0], sizes = [8, 8], strides = [1, 1]} : vector<16x32xf32> to vector<8x8xf32>
    %10 = vector.extract_strided_slice %7 {offsets = [0, 0], sizes = [8, 8], strides = [1, 1]} : vector<16x32xf32> to vector<8x8xf32>
    %11 = vector.extract_strided_slice %8 {offsets = [0, 0], sizes = [8, 8], strides = [1, 1]} : vector<16x32xf32> to vector<8x8xf32>
    %cst_5 = arith.constant dense<0.000000e+00> : vector<8x8xf32>
    %12 = tpu.matmul %9, %10, %cst_5 {dimension_numbers = #tpu.dot_dimension_numbers<[1], [1], [0], [0], [0, 0, 1, 0], [], []>, precision = #tpu.contract_precision<fp32>} : vector<8x8xf32>, vector<8x8xf32>, vector<8x8xf32> -> vector<8x8xf32>
    %cst_6 = arith.constant 0.353553385 : f32
    %13 = vector.broadcast %cst_6 : f32 to vector<8x8xf32>
    %14 = arith.mulf %12, %13 : vector<8x8xf32>
    %cst_7 = arith.constant dense<0xFF800000> : vector<8xf32>
    %15 = vector.multi_reduction <maximumf>, %14, %cst_7 [1] : vector<8x8xf32> to vector<8xf32>
    %16 = vector.shape_cast %15 : vector<8xf32> to vector<8x1xf32>
    %17 = vector.broadcast %16 : vector<8x1xf32> to vector<8x8xf32>
    %18 = arith.subf %14, %17 : vector<8x8xf32>
    %19 = math.exp %18 : vector<8x8xf32>
    %cst_8 = arith.constant dense<0.000000e+00> : vector<8xf32>
    %20 = vector.multi_reduction <add>, %19, %cst_8 [1] : vector<8x8xf32> to vector<8xf32>
    %21 = vector.shape_cast %20 : vector<8xf32> to vector<8x1xf32>
    %22 = vector.broadcast %21 : vector<8x1xf32> to vector<8x8xf32>
    %23 = arith.divf %19, %22 : vector<8x8xf32>
    %cst_9 = arith.constant dense<0.000000e+00> : vector<8x8xf32>
    %24 = tpu.matmul %23, %11, %cst_9 {dimension_numbers = #tpu.dot_dimension_numbers<[1], [0], [0], [1], [0, 0, 1, 1], [], []>, precision = #tpu.contract_precision<fp32>} : vector<8x8xf32>, vector<8x8xf32>, vector<8x8xf32> -> vector<8x8xf32>
    %25 = vector.extract_strided_slice %6 {offsets = [0, 8], sizes = [8, 8], strides = [1, 1]} : vector<16x32xf32> to vector<8x8xf32>
    %26 = vector.extract_strided_slice %7 {offsets = [0, 8], sizes = [8, 8], strides = [1, 1]} : vector<16x32xf32> to vector<8x8xf32>
    %27 = vector.extract_strided_slice %8 {offsets = [0, 8], sizes = [8, 8], strides = [1, 1]} : vector<16x32xf32> to vector<8x8xf32>
    %cst_10 = arith.constant dense<0.000000e+00> : vector<8x8xf32>
    %28 = tpu.matmul %25, %26, %cst_10 {dimension_numbers = #tpu.dot_dimension_numbers<[1], [1], [0], [0], [0, 0, 1, 0], [], []>, precision = #tpu.contract_precision<fp32>} : vector<8x8xf32>, vector<8x8xf32>, vector<8x8xf32> -> vector<8x8xf32>
    %cst_11 = arith.constant 0.353553385 : f32
    %29 = vector.broadcast %cst_11 : f32 to vector<8x8xf32>
    %30 = arith.mulf %28, %29 : vector<8x8xf32>
    %cst_12 = arith.constant dense<0xFF800000> : vector<8xf32>
    %31 = vector.multi_reduction <maximumf>, %30, %cst_12 [1] : vector<8x8xf32> to vector<8xf32>
    %32 = vector.shape_cast %31 : vector<8xf32> to vector<8x1xf32>
    %33 = vector.broadcast %32 : vector<8x1xf32> to vector<8x8xf32>
    %34 = arith.subf %30, %33 : vector<8x8xf32>
    %35 = math.exp %34 : vector<8x8xf32>
    %cst_13 = arith.constant dense<0.000000e+00> : vector<8xf32>
    %36 = vector.multi_reduction <add>, %35, %cst_13 [1] : vector<8x8xf32> to vector<8xf32>
    %37 = vector.shape_cast %36 : vector<8xf32> to vector<8x1xf32>
    %38 = vector.broadcast %37 : vector<8x1xf32> to vector<8x8xf32>
    %39 = arith.divf %35, %38 : vector<8x8xf32>
    %cst_14 = arith.constant dense<0.000000e+00> : vector<8x8xf32>
    %40 = tpu.matmul %39, %27, %cst_14 {dimension_numbers = #tpu.dot_dimension_numbers<[1], [0], [0], [1], [0, 0, 1, 1], [], []>, precision = #tpu.contract_precision<fp32>} : vector<8x8xf32>, vector<8x8xf32>, vector<8x8xf32> -> vector<8x8xf32>
    %41 = vector.extract_strided_slice %6 {offsets = [0, 16], sizes = [8, 8], strides = [1, 1]} : vector<16x32xf32> to vector<8x8xf32>
    %42 = vector.extract_strided_slice %7 {offsets = [0, 16], sizes = [8, 8], strides = [1, 1]} : vector<16x32xf32> to vector<8x8xf32>
    %43 = vector.extract_strided_slice %8 {offsets = [0, 16], sizes = [8, 8], strides = [1, 1]} : vector<16x32xf32> to vector<8x8xf32>
    %cst_15 = arith.constant dense<0.000000e+00> : vector<8x8xf32>
    %44 = tpu.matmul %41, %42, %cst_15 {dimension_numbers = #tpu.dot_dimension_numbers<[1], [1], [0], [0], [0, 0, 1, 0], [], []>, precision = #tpu.contract_precision<fp32>} : vector<8x8xf32>, vector<8x8xf32>, vector<8x8xf32> -> vector<8x8xf32>
    %cst_16 = arith.constant 0.353553385 : f32
    %45 = vector.broadcast %cst_16 : f32 to vector<8x8xf32>
    %46 = arith.mulf %44, %45 : vector<8x8xf32>
    %cst_17 = arith.constant dense<0xFF800000> : vector<8xf32>
    %47 = vector.multi_reduction <maximumf>, %46, %cst_17 [1] : vector<8x8xf32> to vector<8xf32>
    %48 = vector.shape_cast %47 : vector<8xf32> to vector<8x1xf32>
    %49 = vector.broadcast %48 : vector<8x1xf32> to vector<8x8xf32>
    %50 = arith.subf %46, %49 : vector<8x8xf32>
    %51 = math.exp %50 : vector<8x8xf32>
    %cst_18 = arith.constant dense<0.000000e+00> : vector<8xf32>
    %52 = vector.multi_reduction <add>, %51, %cst_18 [1] : vector<8x8xf32> to vector<8xf32>
    %53 = vector.shape_cast %52 : vector<8xf32> to vector<8x1xf32>
    %54 = vector.broadcast %53 : vector<8x1xf32> to vector<8x8xf32>
    %55 = arith.divf %51, %54 : vector<8x8xf32>
    %cst_19 = arith.constant dense<0.000000e+00> : vector<8x8xf32>
    %56 = tpu.matmul %55, %43, %cst_19 {dimension_numbers = #tpu.dot_dimension_numbers<[1], [0], [0], [1], [0, 0, 1, 1], [], []>, precision = #tpu.contract_precision<fp32>} : vector<8x8xf32>, vector<8x8xf32>, vector<8x8xf32> -> vector<8x8xf32>
    %57 = vector.extract_strided_slice %6 {offsets = [0, 24], sizes = [8, 8], strides = [1, 1]} : vector<16x32xf32> to vector<8x8xf32>
    %58 = vector.extract_strided_slice %7 {offsets = [0, 24], sizes = [8, 8], strides = [1, 1]} : vector<16x32xf32> to vector<8x8xf32>
    %59 = vector.extract_strided_slice %8 {offsets = [0, 24], sizes = [8, 8], strides = [1, 1]} : vector<16x32xf32> to vector<8x8xf32>
    %cst_20 = arith.constant dense<0.000000e+00> : vector<8x8xf32>
    %60 = tpu.matmul %57, %58, %cst_20 {dimension_numbers = #tpu.dot_dimension_numbers<[1], [1], [0], [0], [0, 0, 1, 0], [], []>, precision = #tpu.contract_precision<fp32>} : vector<8x8xf32>, vector<8x8xf32>, vector<8x8xf32> -> vector<8x8xf32>
    %cst_21 = arith.constant 0.353553385 : f32
    %61 = vector.broadcast %cst_21 : f32 to vector<8x8xf32>
    %62 = arith.mulf %60, %61 : vector<8x8xf32>
    %cst_22 = arith.constant dense<0xFF800000> : vector<8xf32>
    %63 = vector.multi_reduction <maximumf>, %62, %cst_22 [1] : vector<8x8xf32> to vector<8xf32>
    %64 = vector.shape_cast %63 : vector<8xf32> to vector<8x1xf32>
    %65 = vector.broadcast %64 : vector<8x1xf32> to vector<8x8xf32>
    %66 = arith.subf %62, %65 : vector<8x8xf32>
    %67 = math.exp %66 : vector<8x8xf32>
    %cst_23 = arith.constant dense<0.000000e+00> : vector<8xf32>
    %68 = vector.multi_reduction <add>, %67, %cst_23 [1] : vector<8x8xf32> to vector<8xf32>
    %69 = vector.shape_cast %68 : vector<8xf32> to vector<8x1xf32>
    %70 = vector.broadcast %69 : vector<8x1xf32> to vector<8x8xf32>
    %71 = arith.divf %67, %70 : vector<8x8xf32>
    %cst_24 = arith.constant dense<0.000000e+00> : vector<8x8xf32>
    %72 = tpu.matmul %71, %59, %cst_24 {dimension_numbers = #tpu.dot_dimension_numbers<[1], [0], [0], [1], [0, 0, 1, 1], [], []>, precision = #tpu.contract_precision<fp32>} : vector<8x8xf32>, vector<8x8xf32>, vector<8x8xf32> -> vector<8x8xf32>
    %73 = tpu.concatenate %24, %40, %56, %72 in 1 : vector<8x8xf32>, vector<8x8xf32>, vector<8x8xf32>, vector<8x8xf32> -> vector<8x32xf32>
    %74 = vector.extract_strided_slice %6 {offsets = [8, 0], sizes = [8, 8], strides = [1, 1]} : vector<16x32xf32> to vector<8x8xf32>
    %75 = vector.extract_strided_slice %7 {offsets = [8, 0], sizes = [8, 8], strides = [1, 1]} : vector<16x32xf32> to vector<8x8xf32>
    %76 = vector.extract_strided_slice %8 {offsets = [8, 0], sizes = [8, 8], strides = [1, 1]} : vector<16x32xf32> to vector<8x8xf32>
    %cst_25 = arith.constant dense<0.000000e+00> : vector<8x8xf32>
    %77 = tpu.matmul %74, %75, %cst_25 {dimension_numbers = #tpu.dot_dimension_numbers<[1], [1], [0], [0], [0, 0, 1, 0], [], []>, precision = #tpu.contract_precision<fp32>} : vector<8x8xf32>, vector<8x8xf32>, vector<8x8xf32> -> vector<8x8xf32>
    %cst_26 = arith.constant 0.353553385 : f32
    %78 = vector.broadcast %cst_26 : f32 to vector<8x8xf32>
    %79 = arith.mulf %77, %78 : vector<8x8xf32>
    %cst_27 = arith.constant dense<0xFF800000> : vector<8xf32>
    %80 = vector.multi_reduction <maximumf>, %79, %cst_27 [1] : vector<8x8xf32> to vector<8xf32>
    %81 = vector.shape_cast %80 : vector<8xf32> to vector<8x1xf32>
    %82 = vector.broadcast %81 : vector<8x1xf32> to vector<8x8xf32>
    %83 = arith.subf %79, %82 : vector<8x8xf32>
    %84 = math.exp %83 : vector<8x8xf32>
    %cst_28 = arith.constant dense<0.000000e+00> : vector<8xf32>
    %85 = vector.multi_reduction <add>, %84, %cst_28 [1] : vector<8x8xf32> to vector<8xf32>
    %86 = vector.shape_cast %85 : vector<8xf32> to vector<8x1xf32>
    %87 = vector.broadcast %86 : vector<8x1xf32> to vector<8x8xf32>
    %88 = arith.divf %84, %87 : vector<8x8xf32>
    %cst_29 = arith.constant dense<0.000000e+00> : vector<8x8xf32>
    %89 = tpu.matmul %88, %76, %cst_29 {dimension_numbers = #tpu.dot_dimension_numbers<[1], [0], [0], [1], [0, 0, 1, 1], [], []>, precision = #tpu.contract_precision<fp32>} : vector<8x8xf32>, vector<8x8xf32>, vector<8x8xf32> -> vector<8x8xf32>
    %90 = vector.extract_strided_slice %6 {offsets = [8, 8], sizes = [8, 8], strides = [1, 1]} : vector<16x32xf32> to vector<8x8xf32>
    %91 = vector.extract_strided_slice %7 {offsets = [8, 8], sizes = [8, 8], strides = [1, 1]} : vector<16x32xf32> to vector<8x8xf32>
    %92 = vector.extract_strided_slice %8 {offsets = [8, 8], sizes = [8, 8], strides = [1, 1]} : vector<16x32xf32> to vector<8x8xf32>
    %cst_30 = arith.constant dense<0.000000e+00> : vector<8x8xf32>
    %93 = tpu.matmul %90, %91, %cst_30 {dimension_numbers = #tpu.dot_dimension_numbers<[1], [1], [0], [0], [0, 0, 1, 0], [], []>, precision = #tpu.contract_precision<fp32>} : vector<8x8xf32>, vector<8x8xf32>, vector<8x8xf32> -> vector<8x8xf32>
    %cst_31 = arith.constant 0.353553385 : f32
    %94 = vector.broadcast %cst_31 : f32 to vector<8x8xf32>
    %95 = arith.mulf %93, %94 : vector<8x8xf32>
    %cst_32 = arith.constant dense<0xFF800000> : vector<8xf32>
    %96 = vector.multi_reduction <maximumf>, %95, %cst_32 [1] : vector<8x8xf32> to vector<8xf32>
    %97 = vector.shape_cast %96 : vector<8xf32> to vector<8x1xf32>
    %98 = vector.broadcast %97 : vector<8x1xf32> to vector<8x8xf32>
    %99 = arith.subf %95, %98 : vector<8x8xf32>
    %100 = math.exp %99 : vector<8x8xf32>
    %cst_33 = arith.constant dense<0.000000e+00> : vector<8xf32>
    %101 = vector.multi_reduction <add>, %100, %cst_33 [1] : vector<8x8xf32> to vector<8xf32>
    %102 = vector.shape_cast %101 : vector<8xf32> to vector<8x1xf32>
    %103 = vector.broadcast %102 : vector<8x1xf32> to vector<8x8xf32>
    %104 = arith.divf %100, %103 : vector<8x8xf32>
    %cst_34 = arith.constant dense<0.000000e+00> : vector<8x8xf32>
    %105 = tpu.matmul %104, %92, %cst_34 {dimension_numbers = #tpu.dot_dimension_numbers<[1], [0], [0], [1], [0, 0, 1, 1], [], []>, precision = #tpu.contract_precision<fp32>} : vector<8x8xf32>, vector<8x8xf32>, vector<8x8xf32> -> vector<8x8xf32>
    %106 = vector.extract_strided_slice %6 {offsets = [8, 16], sizes = [8, 8], strides = [1, 1]} : vector<16x32xf32> to vector<8x8xf32>
    %107 = vector.extract_strided_slice %7 {offsets = [8, 16], sizes = [8, 8], strides = [1, 1]} : vector<16x32xf32> to vector<8x8xf32>
    %108 = vector.extract_strided_slice %8 {offsets = [8, 16], sizes = [8, 8], strides = [1, 1]} : vector<16x32xf32> to vector<8x8xf32>
    %cst_35 = arith.constant dense<0.000000e+00> : vector<8x8xf32>
    %109 = tpu.matmul %106, %107, %cst_35 {dimension_numbers = #tpu.dot_dimension_numbers<[1], [1], [0], [0], [0, 0, 1, 0], [], []>, precision = #tpu.contract_precision<fp32>} : vector<8x8xf32>, vector<8x8xf32>, vector<8x8xf32> -> vector<8x8xf32>
    %cst_36 = arith.constant 0.353553385 : f32
    %110 = vector.broadcast %cst_36 : f32 to vector<8x8xf32>
    %111 = arith.mulf %109, %110 : vector<8x8xf32>
    %cst_37 = arith.constant dense<0xFF800000> : vector<8xf32>
    %112 = vector.multi_reduction <maximumf>, %111, %cst_37 [1] : vector<8x8xf32> to vector<8xf32>
    %113 = vector.shape_cast %112 : vector<8xf32> to vector<8x1xf32>
    %114 = vector.broadcast %113 : vector<8x1xf32> to vector<8x8xf32>
    %115 = arith.subf %111, %114 : vector<8x8xf32>
    %116 = math.exp %115 : vector<8x8xf32>
    %cst_38 = arith.constant dense<0.000000e+00> : vector<8xf32>
    %117 = vector.multi_reduction <add>, %116, %cst_38 [1] : vector<8x8xf32> to vector<8xf32>
    %118 = vector.shape_cast %117 : vector<8xf32> to vector<8x1xf32>
    %119 = vector.broadcast %118 : vector<8x1xf32> to vector<8x8xf32>
    %120 = arith.divf %116, %119 : vector<8x8xf32>
    %cst_39 = arith.constant dense<0.000000e+00> : vector<8x8xf32>
    %121 = tpu.matmul %120, %108, %cst_39 {dimension_numbers = #tpu.dot_dimension_numbers<[1], [0], [0], [1], [0, 0, 1, 1], [], []>, precision = #tpu.contract_precision<fp32>} : vector<8x8xf32>, vector<8x8xf32>, vector<8x8xf32> -> vector<8x8xf32>
    %122 = vector.extract_strided_slice %6 {offsets = [8, 24], sizes = [8, 8], strides = [1, 1]} : vector<16x32xf32> to vector<8x8xf32>
    %123 = vector.extract_strided_slice %7 {offsets = [8, 24], sizes = [8, 8], strides = [1, 1]} : vector<16x32xf32> to vector<8x8xf32>
    %124 = vector.extract_strided_slice %8 {offsets = [8, 24], sizes = [8, 8], strides = [1, 1]} : vector<16x32xf32> to vector<8x8xf32>
    %cst_40 = arith.constant dense<0.000000e+00> : vector<8x8xf32>
    %125 = tpu.matmul %122, %123, %cst_40 {dimension_numbers = #tpu.dot_dimension_numbers<[1], [1], [0], [0], [0, 0, 1, 0], [], []>, precision = #tpu.contract_precision<fp32>} : vector<8x8xf32>, vector<8x8xf32>, vector<8x8xf32> -> vector<8x8xf32>
    %cst_41 = arith.constant 0.353553385 : f32
    %126 = vector.broadcast %cst_41 : f32 to vector<8x8xf32>
    %127 = arith.mulf %125, %126 : vector<8x8xf32>
    %cst_42 = arith.constant dense<0xFF800000> : vector<8xf32>
    %128 = vector.multi_reduction <maximumf>, %127, %cst_42 [1] : vector<8x8xf32> to vector<8xf32>
    %129 = vector.shape_cast %128 : vector<8xf32> to vector<8x1xf32>
    %130 = vector.broadcast %129 : vector<8x1xf32> to vector<8x8xf32>
    %131 = arith.subf %127, %130 : vector<8x8xf32>
    %132 = math.exp %131 : vector<8x8xf32>
    %cst_43 = arith.constant dense<0.000000e+00> : vector<8xf32>
    %133 = vector.multi_reduction <add>, %132, %cst_43 [1] : vector<8x8xf32> to vector<8xf32>
    %134 = vector.shape_cast %133 : vector<8xf32> to vector<8x1xf32>
    %135 = vector.broadcast %134 : vector<8x1xf32> to vector<8x8xf32>
    %136 = arith.divf %132, %135 : vector<8x8xf32>
    %cst_44 = arith.constant dense<0.000000e+00> : vector<8x8xf32>
    %137 = tpu.matmul %136, %124, %cst_44 {dimension_numbers = #tpu.dot_dimension_numbers<[1], [0], [0], [1], [0, 0, 1, 1], [], []>, precision = #tpu.contract_precision<fp32>} : vector<8x8xf32>, vector<8x8xf32>, vector<8x8xf32> -> vector<8x8xf32>
    %138 = tpu.concatenate %89, %105, %121, %137 in 1 : vector<8x8xf32>, vector<8x8xf32>, vector<8x8xf32>, vector<8x8xf32> -> vector<8x32xf32>
    %139 = tpu.concatenate %73, %138 in 0 : vector<8x32xf32>, vector<8x32xf32> -> vector<16x32xf32>
    %c0_45 = arith.constant 0 : index
    %c0_46 = arith.constant 0 : index
    %140 = vector.load %arg3[%c0_45, %c0_46] : memref<32x32xf32, #tpu.memory_space<vmem>>, vector<32x32xf32>
    %cst_47 = arith.constant dense<0.000000e+00> : vector<16x32xf32>
    %141 = tpu.matmul %139, %140, %cst_47 {dimension_numbers = #tpu.dot_dimension_numbers<[1], [0], [0], [1], [0, 0, 1, 1], [], []>, precision = #tpu.contract_precision<fp32>} : vector<16x32xf32>, vector<32x32xf32>, vector<16x32xf32> -> vector<16x32xf32>
    %c0_48 = arith.constant 0 : index
    %c0_49 = arith.constant 0 : index
    %142 = vector.load %arg4[%c0_48, %c0_49] : memref<1x32xf32, #tpu.memory_space<vmem>>, vector<1x32xf32>
    %143 = vector.broadcast %142 : vector<1x32xf32> to vector<16x32xf32>
    %144 = arith.addf %141, %143 : vector<16x32xf32>
    %145 = arith.addf %0, %144 : vector<16x32xf32>
    %c0_50 = arith.constant 0 : index
    %c0_51 = arith.constant 0 : index
    %146 = vector.load %arg5[%c0_50, %c0_51] : memref<1x32xf32, #tpu.memory_space<vmem>>, vector<1x32xf32>
    %c0_52 = arith.constant 0 : index
    %c0_53 = arith.constant 0 : index
    %147 = vector.load %arg6[%c0_52, %c0_53] : memref<1x32xf32, #tpu.memory_space<vmem>>, vector<1x32xf32>
    %cst_54 = arith.constant dense<0.000000e+00> : vector<16xf32>
    %148 = vector.multi_reduction <add>, %145, %cst_54 [1] : vector<16x32xf32> to vector<16xf32>
    %149 = vector.shape_cast %148 : vector<16xf32> to vector<16x1xf32>
    %cst_55 = arith.constant 3.200000e+01 : f32
    %150 = vector.broadcast %cst_55 : f32 to vector<16x1xf32>
    %151 = arith.divf %149, %150 : vector<16x1xf32>
    %152 = vector.broadcast %151 : vector<16x1xf32> to vector<16x32xf32>
    %153 = arith.subf %145, %152 : vector<16x32xf32>
    %154 = arith.mulf %153, %153 : vector<16x32xf32>
    %cst_56 = arith.constant dense<0.000000e+00> : vector<16xf32>
    %155 = vector.multi_reduction <add>, %154, %cst_56 [1] : vector<16x32xf32> to vector<16xf32>
    %156 = vector.shape_cast %155 : vector<16xf32> to vector<16x1xf32>
    %cst_57 = arith.constant 3.200000e+01 : f32
    %157 = vector.broadcast %cst_57 : f32 to vector<16x1xf32>
    %158 = arith.divf %156, %157 : vector<16x1xf32>
    %159 = vector.broadcast %151 : vector<16x1xf32> to vector<16x32xf32>
    %160 = arith.subf %145, %159 : vector<16x32xf32>
    %cst_58 = arith.constant 9.99999974E-6 : f32
    %161 = vector.broadcast %cst_58 : f32 to vector<16x1xf32>
    %162 = arith.addf %158, %161 : vector<16x1xf32>
    %163 = math.rsqrt %162 : vector<16x1xf32>
    %164 = vector.broadcast %163 : vector<16x1xf32> to vector<16x32xf32>
    %165 = arith.mulf %160, %164 : vector<16x32xf32>
    %166 = vector.broadcast %146 : vector<1x32xf32> to vector<16x32xf32>
    %167 = arith.mulf %165, %166 : vector<16x32xf32>
    %168 = vector.broadcast %147 : vector<1x32xf32> to vector<16x32xf32>
    %169 = arith.addf %167, %168 : vector<16x32xf32>
    %c0_59 = arith.constant 0 : index
    %c0_60 = arith.constant 0 : index
    %170 = vector.load %arg7[%c0_59, %c0_60] : memref<32x64xf32, #tpu.memory_space<vmem>>, vector<32x64xf32>
    %cst_61 = arith.constant dense<0.000000e+00> : vector<16x64xf32>
    %171 = tpu.matmul %169, %170, %cst_61 {dimension_numbers = #tpu.dot_dimension_numbers<[1], [0], [0], [1], [0, 0, 1, 1], [], []>, precision = #tpu.contract_precision<fp32>} : vector<16x32xf32>, vector<32x64xf32>, vector<16x64xf32> -> vector<16x64xf32>
    %c0_62 = arith.constant 0 : index
    %c0_63 = arith.constant 0 : index
    %172 = vector.load %arg8[%c0_62, %c0_63] : memref<1x64xf32, #tpu.memory_space<vmem>>, vector<1x64xf32>
    %173 = vector.broadcast %172 : vector<1x64xf32> to vector<16x64xf32>
    %174 = arith.addf %171, %173 : vector<16x64xf32>
    %cst_64 = arith.constant 0.000000e+00 : f32
    %175 = vector.broadcast %cst_64 : f32 to vector<16x64xf32>
    %176 = arith.maximumf %174, %175 : vector<16x64xf32>
    %c0_65 = arith.constant 0 : index
    %c0_66 = arith.constant 0 : index
    %177 = vector.load %arg9[%c0_65, %c0_66] : memref<64x32xf32, #tpu.memory_space<vmem>>, vector<64x32xf32>
    %cst_67 = arith.constant dense<0.000000e+00> : vector<16x32xf32>
    %178 = tpu.matmul %176, %177, %cst_67 {dimension_numbers = #tpu.dot_dimension_numbers<[1], [0], [0], [1], [0, 0, 1, 1], [], []>, precision = #tpu.contract_precision<fp32>} : vector<16x64xf32>, vector<64x32xf32>, vector<16x32xf32> -> vector<16x32xf32>
    %c0_68 = arith.constant 0 : index
    %c0_69 = arith.constant 0 : index
    %179 = vector.load %arg10[%c0_68, %c0_69] : memref<1x32xf32, #tpu.memory_space<vmem>>, vector<1x32xf32>
    %180 = vector.broadcast %179 : vector<1x32xf32> to vector<16x32xf32>
    %181 = arith.addf %178, %180 : vector<16x32xf32>
    %182 = arith.addf %169, %181 : vector<16x32xf32>
    %c0_70 = arith.constant 0 : index
    %c0_71 = arith.constant 0 : index
    %183 = vector.load %arg11[%c0_70, %c0_71] : memref<1x32xf32, #tpu.memory_space<vmem>>, vector<1x32xf32>
    %c0_72 = arith.constant 0 : index
    %c0_73 = arith.constant 0 : index
    %184 = vector.load %arg12[%c0_72, %c0_73] : memref<1x32xf32, #tpu.memory_space<vmem>>, vector<1x32xf32>
    %cst_74 = arith.constant dense<0.000000e+00> : vector<16xf32>
    %185 = vector.multi_reduction <add>, %182, %cst_74 [1] : vector<16x32xf32> to vector<16xf32>
    %186 = vector.shape_cast %185 : vector<16xf32> to vector<16x1xf32>
    %cst_75 = arith.constant 3.200000e+01 : f32
    %187 = vector.broadcast %cst_75 : f32 to vector<16x1xf32>
    %188 = arith.divf %186, %187 : vector<16x1xf32>
    %189 = vector.broadcast %188 : vector<16x1xf32> to vector<16x32xf32>
    %190 = arith.subf %182, %189 : vector<16x32xf32>
    %191 = arith.mulf %190, %190 : vector<16x32xf32>
    %cst_76 = arith.constant dense<0.000000e+00> : vector<16xf32>
    %192 = vector.multi_reduction <add>, %191, %cst_76 [1] : vector<16x32xf32> to vector<16xf32>
    %193 = vector.shape_cast %192 : vector<16xf32> to vector<16x1xf32>
    %cst_77 = arith.constant 3.200000e+01 : f32
    %194 = vector.broadcast %cst_77 : f32 to vector<16x1xf32>
    %195 = arith.divf %193, %194 : vector<16x1xf32>
    %196 = vector.broadcast %188 : vector<16x1xf32> to vector<16x32xf32>
    %197 = arith.subf %182, %196 : vector<16x32xf32>
    %cst_78 = arith.constant 9.99999974E-6 : f32
    %198 = vector.broadcast %cst_78 : f32 to vector<16x1xf32>
    %199 = arith.addf %195, %198 : vector<16x1xf32>
    %200 = math.rsqrt %199 : vector<16x1xf32>
    %201 = vector.broadcast %200 : vector<16x1xf32> to vector<16x32xf32>
    %202 = arith.mulf %197, %201 : vector<16x32xf32>
    %203 = vector.broadcast %183 : vector<1x32xf32> to vector<16x32xf32>
    %204 = arith.mulf %202, %203 : vector<16x32xf32>
    %205 = vector.broadcast %184 : vector<1x32xf32> to vector<16x32xf32>
    %206 = arith.addf %204, %205 : vector<16x32xf32>
    %c0_79 = arith.constant 0 : index
    %c0_80 = arith.constant 0 : index
    %207 = vector.load %arg13[%c0_79, %c0_80] : memref<16x32xf32, #tpu.memory_space<vmem>>, vector<16x32xf32>
    tpu.vector_store %arg13[%c0_79, %c0_80], %206 {strides = array<i32>} : memref<16x32xf32, #tpu.memory_space<vmem>>, vector<16x32xf32>,
    return
  }
}

module attributes {stable_mosaic.version = 11 : i64} {
  func.func @_encoder_layer_kernel(%arg0: memref<16x32xf32, #tpu.memory_space<vmem>>, %arg1: memref<32x96xf32, #tpu.memory_space<vmem>>, %arg2: memref<1x96xf32, #tpu.memory_space<vmem>>, %arg3: memref<32x32xf32, #tpu.memory_space<vmem>>, %arg4: memref<1x32xf32, #tpu.memory_space<vmem>>, %arg5: memref<1x32xf32, #tpu.memory_space<vmem>>, %arg6: memref<1x32xf32, #tpu.memory_space<vmem>>, %arg7: memref<32x64xf32, #tpu.memory_space<vmem>>, %arg8: memref<1x64xf32, #tpu.memory_space<vmem>>, %arg9: memref<64x32xf32, #tpu.memory_space<vmem>>, %arg10: memref<1x32xf32, #tpu.memory_space<vmem>>, %arg11: memref<1x32xf32, #tpu.memory_space<vmem>>, %arg12: memref<1x32xf32, #tpu.memory_space<vmem>>, %arg13: memref<16x32xf32, #tpu.memory_space<vmem>>) attributes {dimension_semantics = [], scalar_prefetch = 0 : i64, scratch_operands = 0 : i64, tpu.core_type = #tpu.core_type<tc>} {
    %c0 = arith.constant 0 : index
    %c0_0 = arith.constant 0 : index
    %0 = vector.load %arg0[%c0, %c0_0] : memref<16x32xf32, #tpu.memory_space<vmem>>, vector<16x32xf32>
    %c0_1 = arith.constant 0 : index
    %c0_2 = arith.constant 0 : index
    %1 = vector.load %arg1[%c0_1, %c0_2] : memref<32x96xf32, #tpu.memory_space<vmem>>, vector<32x96xf32>
    %cst = arith.constant dense<0.000000e+00> : vector<16x96xf32>
    %2 = tpu.matmul %0, %1, %cst {dimension_numbers = #tpu.dot_dimension_numbers<[1], [0], [0], [1], [0, 0, 1, 1], [], []>, precision = #tpu.contract_precision<fp32>} : vector<16x32xf32>, vector<32x96xf32>, vector<16x96xf32> -> vector<16x96xf32>
    %c0_3 = arith.constant 0 : index
    %c0_4 = arith.constant 0 : index
    %3 = vector.load %arg2[%c0_3, %c0_4] : memref<1x96xf32, #tpu.memory_space<vmem>>, vector<1x96xf32>
    %4 = vector.broadcast %3 : vector<1x96xf32> to vector<16x96xf32>
    %5 = arith.addf %2, %4 : vector<16x96xf32>
    %6 = vector.extract_strided_slice %5 {offsets = [0, 0], sizes = [16, 32], strides = [1, 1]} : vector<16x96xf32> to vector<16x32xf32>
    %7 = vector.extract_strided_slice %5 {offsets = [0, 32], sizes = [16, 32], strides = [1, 1]} : vector<16x96xf32> to vector<16x32xf32>
    %8 = vector.extract_strided_slice %5 {offsets = [0, 64], sizes = [16, 32], strides = [1, 1]} : vector<16x96xf32> to vector<16x32xf32>
    %9 = vector.extract_strided_slice %6 {offsets = [0, 0], sizes = [8, 8], strides = [1, 1]} : vector<16x32xf32> to vector<8x8xf32>
    %10 = vector.extract_strided_slice %7 {offsets = [0, 0], sizes = [8, 8], strides = [1, 1]} : vector<16x32xf32> to vector<8x8xf32>
    %11 = vector.extract_strided_slice %8 {offsets = [0, 0], sizes = [8, 8], strides = [1, 1]} : vector<16x32xf32> to vector<8x8xf32>
    %cst_5 = arith.constant dense<0.000000e+00> : vector<8x8xf32>
    %12 = tpu.matmul %9, %10, %cst_5 {dimension_numbers = #tpu.dot_dimension_numbers<[1], [1], [0], [0], [0, 0, 1, 0], [], []>, precision = #tpu.contract_precision<fp32>} : vector<8x8xf32>, vector<8x8xf32>, vector<8x8xf32> -> vector<8x8xf32>
    %cst_6 = arith.constant 0.353553385 : f32
    %13 = vector.broadcast %cst_6 : f32 to vector<8x8xf32>
    %14 = arith.mulf %12, %13 : vector<8x8xf32>
    %cst_7 = arith.constant dense<0xFF800000> : vector<8xf32>
    %15 = vector.multi_reduction <maximumf>, %14, %cst_7 [1] : vector<8x8xf32> to vector<8xf32>
    %16 = vector.shape_cast %15 : vector<8xf32> to vector<8x1xf32>
    %17 = vector.broadcast %16 : vector<8x1xf32> to vector<8x8xf32>
    %18 = arith.subf %14, %17 : vector<8x8xf32>
    %19 = math.exp %18 : vector<8x8xf32>
    %cst_8 = arith.constant dense<0.000000e+00> : vector<8xf32>
    %20 = vector.multi_reduction <add>, %19, %cst_8 [1] : vector<8x8xf32> to vector<8xf32>
    %21 = vector.shape_cast %20 : vector<8xf32> to vector<8x1xf32>
    %22 = vector.broadcast %21 : vector<8x1xf32> to vector<8x8xf32>
    %23 = arith.divf %19, %22 : vector<8x8xf32>
    %cst_9 = arith.constant dense<0.000000e+00> : vector<8x8xf32>
    %24 = tpu.matmul %23, %11, %cst_9 {dimension_numbers = #tpu.dot_dimension_numbers<[1], [0], [0], [1], [0, 0, 1, 1], [], []>, precision = #tpu.contract_precision<fp32>} : vector<8x8xf32>, vector<8x8xf32>, vector<8x8xf32> -> vector<8x8xf32>
    %25 = vector.extract_strided_slice %6 {offsets = [0, 8], sizes = [8, 8], strides = [1, 1]} : vector<16x32xf32> to vector<8x8xf32>
    %26 = vector.extract_strided_slice %7 {offsets = [0, 8], sizes = [8, 8], strides = [1, 1]} : vector<16x32xf32> to vector<8x8xf32>
    %27 = vector.extract_strided_slice %8 {offsets = [0, 8], sizes = [8, 8], strides = [1, 1]} : vector<16x32xf32> to vector<8x8xf32>
    %cst_10 = arith.constant dense<0.000000e+00> : vector<8x8xf32>
    %28 = tpu.matmul %25, %26, %cst_10 {dimension_numbers = #tpu.dot_dimension_numbers<[1], [1], [0], [0], [0, 0, 1, 0], [], []>, precision = #tpu.contract_precision<fp32>} : vector<8x8xf32>, vector<8x8xf32>, vector<8x8xf32> -> vector<8x8xf32>
    %cst_11 = arith.constant 0.353553385 : f32
    %29 = vector.broadcast %cst_11 : f32 to vector<8x8xf32>
    %30 = arith.mulf %28, %29 : vector<8x8xf32>
    %cst_12 = arith.constant dense<0xFF800000> : vector<8xf32>
    %31 = vector.multi_reduction <maximumf>, %30, %cst_12 [1] : vector<8x8xf32> to vector<8xf32>
    %32 = vector.shape_cast %31 : vector<8xf32> to vector<8x1xf32>
    %33 = vector.broadcast %32 : vector<8x1xf32> to vector<8x8xf32>
    %34 = arith.subf %30, %33 : vector<8x8xf32>
    %35 = math.exp %34 : vector<8x8xf32>
    %cst_13 = arith.constant dense<0.000000e+00> : vector<8xf32>
    %36 = vector.multi_reduction <add>, %35, %cst_13 [1] : vector<8x8xf32> to vector<8xf32>
    %37 = vector.shape_cast %36 : vector<8xf32> to vector<8x1xf32>
    %38 = vector.broadcast %37 : vector<8x1xf32> to vector<8x8xf32>
    %39 = arith.divf %35, %38 : vector<8x8xf32>
    %cst_14 = arith.constant dense<0.000000e+00> : vector<8x8xf32>
    %40 = tpu.matmul %39, %27, %cst_14 {dimension_numbers = #tpu.dot_dimension_numbers<[1], [0], [0], [1], [0, 0, 1, 1], [], []>, precision = #tpu.contract_precision<fp32>} : vector<8x8xf32>, vector<8x8xf32>, vector<8x8xf32> -> vector<8x8xf32>
    %41 = vector.extract_strided_slice %6 {offsets = [0, 16], sizes = [8, 8], strides = [1, 1]} : vector<16x32xf32> to vector<8x8xf32>
    %42 = vector.extract_strided_slice %7 {offsets = [0, 16], sizes = [8, 8], strides = [1, 1]} : vector<16x32xf32> to vector<8x8xf32>
    %43 = vector.extract_strided_slice %8 {offsets = [0, 16], sizes = [8, 8], strides = [1, 1]} : vector<16x32xf32> to vector<8x8xf32>
    %cst_15 = arith.constant dense<0.000000e+00> : vector<8x8xf32>
    %44 = tpu.matmul %41, %42, %cst_15 {dimension_numbers = #tpu.dot_dimension_numbers<[1], [1], [0], [0], [0, 0, 1, 0], [], []>, precision = #tpu.contract_precision<fp32>} : vector<8x8xf32>, vector<8x8xf32>, vector<8x8xf32> -> vector<8x8xf32>
    %cst_16 = arith.constant 0.353553385 : f32
    %45 = vector.broadcast %cst_16 : f32 to vector<8x8xf32>
    %46 = arith.mulf %44, %45 : vector<8x8xf32>
    %cst_17 = arith.constant dense<0xFF800000> : vector<8xf32>
    %47 = vector.multi_reduction <maximumf>, %46, %cst_17 [1] : vector<8x8xf32> to vector<8xf32>
    %48 = vector.shape_cast %47 : vector<8xf32> to vector<8x1xf32>
    %49 = vector.broadcast %48 : vector<8x1xf32> to vector<8x8xf32>
    %50 = arith.subf %46, %49 : vector<8x8xf32>
    %51 = math.exp %50 : vector<8x8xf32>
    %cst_18 = arith.constant dense<0.000000e+00> : vector<8xf32>
    %52 = vector.multi_reduction <add>, %51, %cst_18 [1] : vector<8x8xf32> to vector<8xf32>
    %53 = vector.shape_cast %52 : vector<8xf32> to vector<8x1xf32>
    %54 = vector.broadcast %53 : vector<8x1xf32> to vector<8x8xf32>
    %55 = arith.divf %51, %54 : vector<8x8xf32>
    %cst_19 = arith.constant dense<0.000000e+00> : vector<8x8xf32>
    %56 = tpu.matmul %55, %43, %cst_19 {dimension_numbers = #tpu.dot_dimension_numbers<[1], [0], [0], [1], [0, 0, 1, 1], [], []>, precision = #tpu.contract_precision<fp32>} : vector<8x8xf32>, vector<8x8xf32>, vector<8x8xf32> -> vector<8x8xf32>
    %57 = vector.extract_strided_slice %6 {offsets = [0, 24], sizes = [8, 8], strides = [1, 1]} : vector<16x32xf32> to vector<8x8xf32>
    %58 = vector.extract_strided_slice %7 {offsets = [0, 24], sizes = [8, 8], strides = [1, 1]} : vector<16x32xf32> to vector<8x8xf32>
    %59 = vector.extract_strided_slice %8 {offsets = [0, 24], sizes = [8, 8], strides = [1, 1]} : vector<16x32xf32> to vector<8x8xf32>
    %cst_20 = arith.constant dense<0.000000e+00> : vector<8x8xf32>
    %60 = tpu.matmul %57, %58, %cst_20 {dimension_numbers = #tpu.dot_dimension_numbers<[1], [1], [0], [0], [0, 0, 1, 0], [], []>, precision = #tpu.contract_precision<fp32>} : vector<8x8xf32>, vector<8x8xf32>, vector<8x8xf32> -> vector<8x8xf32>
    %cst_21 = arith.constant 0.353553385 : f32
    %61 = vector.broadcast %cst_21 : f32 to vector<8x8xf32>
    %62 = arith.mulf %60, %61 : vector<8x8xf32>
    %cst_22 = arith.constant dense<0xFF800000> : vector<8xf32>
    %63 = vector.multi_reduction <maximumf>, %62, %cst_22 [1] : vector<8x8xf32> to vector<8xf32>
    %64 = vector.shape_cast %63 : vector<8xf32> to vector<8x1xf32>
    %65 = vector.broadcast %64 : vector<8x1xf32> to vector<8x8xf32>
    %66 = arith.subf %62, %65 : vector<8x8xf32>
    %67 = math.exp %66 : vector<8x8xf32>
    %cst_23 = arith.constant dense<0.000000e+00> : vector<8xf32>
    %68 = vector.multi_reduction <add>, %67, %cst_23 [1] : vector<8x8xf32> to vector<8xf32>
    %69 = vector.shape_cast %68 : vector<8xf32> to vector<8x1xf32>
    %70 = vector.broadcast %69 : vector<8x1xf32> to vector<8x8xf32>
    %71 = arith.divf %67, %70 : vector<8x8xf32>
    %cst_24 = arith.constant dense<0.000000e+00> : vector<8x8xf32>
    %72 = tpu.matmul %71, %59, %cst_24 {dimension_numbers = #tpu.dot_dimension_numbers<[1], [0], [0], [1], [0, 0, 1, 1], [], []>, precision = #tpu.contract_precision<fp32>} : vector<8x8xf32>, vector<8x8xf32>, vector<8x8xf32> -> vector<8x8xf32>
    %73 = tpu.concatenate %24, %40, %56, %72 in 1 : vector<8x8xf32>, vector<8x8xf32>, vector<8x8xf32>, vector<8x8xf32> -> vector<8x32xf32>
    %74 = vector.extract_strided_slice %6 {offsets = [8, 0], sizes = [8, 8], strides = [1, 1]} : vector<16x32xf32> to vector<8x8xf32>
    %75 = vector.extract_strided_slice %7 {offsets = [8, 0], sizes = [8, 8], strides = [1, 1]} : vector<16x32xf32> to vector<8x8xf32>
    %76 = vector.extract_strided_slice %8 {offsets = [8, 0], sizes = [8, 8], strides = [1, 1]} : vector<16x32xf32> to vector<8x8xf32>
    %cst_25 = arith.constant dense<0.000000e+00> : vector<8x8xf32>
    %77 = tpu.matmul %74, %75, %cst_25 {dimension_numbers = #tpu.dot_dimension_numbers<[1], [1], [0], [0], [0, 0, 1, 0], [], []>, precision = #tpu.contract_precision<fp32>} : vector<8x8xf32>, vector<8x8xf32>, vector<8x8xf32> -> vector<8x8xf32>
    %cst_26 = arith.constant 0.353553385 : f32
    %78 = vector.broadcast %cst_26 : f32 to vector<8x8xf32>
    %79 = arith.mulf %77, %78 : vector<8x8xf32>
    %cst_27 = arith.constant dense<0xFF800000> : vector<8xf32>
    %80 = vector.multi_reduction <maximumf>, %79, %cst_27 [1] : vector<8x8xf32> to vector<8xf32>
    %81 = vector.shape_cast %80 : vector<8xf32> to vector<8x1xf32>
    %82 = vector.broadcast %81 : vector<8x1xf32> to vector<8x8xf32>
    %83 = arith.subf %79, %82 : vector<8x8xf32>
    %84 = math.exp %83 : vector<8x8xf32>
    %cst_28 = arith.constant dense<0.000000e+00> : vector<8xf32>
    %85 = vector.multi_reduction <add>, %84, %cst_28 [1] : vector<8x8xf32> to vector<8xf32>
    %86 = vector.shape_cast %85 : vector<8xf32> to vector<8x1xf32>
    %87 = vector.broadcast %86 : vector<8x1xf32> to vector<8x8xf32>
    %88 = arith.divf %84, %87 : vector<8x8xf32>
    %cst_29 = arith.constant dense<0.000000e+00> : vector<8x8xf32>
    %89 = tpu.matmul %88, %76, %cst_29 {dimension_numbers = #tpu.dot_dimension_numbers<[1], [0], [0], [1], [0, 0, 1, 1], [], []>, precision = #tpu.contract_precision<fp32>} : vector<8x8xf32>, vector<8x8xf32>, vector<8x8xf32> -> vector<8x8xf32>
    %90 = vector.extract_strided_slice %6 {offsets = [8, 8], sizes = [8, 8], strides = [1, 1]} : vector<16x32xf32> to vector<8x8xf32>
    %91 = vector.extract_strided_slice %7 {offsets = [8, 8], sizes = [8, 8], strides = [1, 1]} : vector<16x32xf32> to vector<8x8xf32>
    %92 = vector.extract_strided_slice %8 {offsets = [8, 8], sizes = [8, 8], strides = [1, 1]} : vector<16x32xf32> to vector<8x8xf32>
    %cst_30 = arith.constant dense<0.000000e+00> : vector<8x8xf32>
    %93 = tpu.matmul %90, %91, %cst_30 {dimension_numbers = #tpu.dot_dimension_numbers<[1], [1], [0], [0], [0, 0, 1, 0], [], []>, precision = #tpu.contract_precision<fp32>} : vector<8x8xf32>, vector<8x8xf32>, vector<8x8xf32> -> vector<8x8xf32>
    %cst_31 = arith.constant 0.353553385 : f32
    %94 = vector.broadcast %cst_31 : f32 to vector<8x8xf32>
    %95 = arith.mulf %93, %94 : vector<8x8xf32>
    %cst_32 = arith.constant dense<0xFF800000> : vector<8xf32>
    %96 = vector.multi_reduction <maximumf>, %95, %cst_32 [1] : vector<8x8xf32> to vector<8xf32>
    %97 = vector.shape_cast %96 : vector<8xf32> to vector<8x1xf32>
    %98 = vector.broadcast %97 : vector<8x1xf32> to vector<8x8xf32>
    %99 = arith.subf %95, %98 : vector<8x8xf32>
    %100 = math.exp %99 : vector<8x8xf32>
    %cst_33 = arith.constant dense<0.000000e+00> : vector<8xf32>
    %101 = vector.multi_reduction <add>, %100, %cst_33 [1] : vector<8x8xf32> to vector<8xf32>
    %102 = vector.shape_cast %101 : vector<8xf32> to vector<8x1xf32>
    %103 = vector.broadcast %102 : vector<8x1xf32> to vector<8x8xf32>
    %104 = arith.divf %100, %103 : vector<8x8xf32>
    %cst_34 = arith.constant dense<0.000000e+00> : vector<8x8xf32>
    %105 = tpu.matmul %104, %92, %cst_34 {dimension_numbers = #tpu.dot_dimension_numbers<[1], [0], [0], [1], [0, 0, 1, 1], [], []>, precision = #tpu.contract_precision<fp32>} : vector<8x8xf32>, vector<8x8xf32>, vector<8x8xf32> -> vector<8x8xf32>
    %106 = vector.extract_strided_slice %6 {offsets = [8, 16], sizes = [8, 8], strides = [1, 1]} : vector<16x32xf32> to vector<8x8xf32>
    %107 = vector.extract_strided_slice %7 {offsets = [8, 16], sizes = [8, 8], strides = [1, 1]} : vector<16x32xf32> to vector<8x8xf32>
    %108 = vector.extract_strided_slice %8 {offsets = [8, 16], sizes = [8, 8], strides = [1, 1]} : vector<16x32xf32> to vector<8x8xf32>
    %cst_35 = arith.constant dense<0.000000e+00> : vector<8x8xf32>
    %109 = tpu.matmul %106, %107, %cst_35 {dimension_numbers = #tpu.dot_dimension_numbers<[1], [1], [0], [0], [0, 0, 1, 0], [], []>, precision = #tpu.contract_precision<fp32>} : vector<8x8xf32>, vector<8x8xf32>, vector<8x8xf32> -> vector<8x8xf32>
    %cst_36 = arith.constant 0.353553385 : f32
    %110 = vector.broadcast %cst_36 : f32 to vector<8x8xf32>
    %111 = arith.mulf %109, %110 : vector<8x8xf32>
    %cst_37 = arith.constant dense<0xFF800000> : vector<8xf32>
    %112 = vector.multi_reduction <maximumf>, %111, %cst_37 [1] : vector<8x8xf32> to vector<8xf32>
    %113 = vector.shape_cast %112 : vector<8xf32> to vector<8x1xf32>
    %114 = vector.broadcast %113 : vector<8x1xf32> to vector<8x8xf32>
    %115 = arith.subf %111, %114 : vector<8x8xf32>
    %116 = math.exp %115 : vector<8x8xf32>
    %cst_38 = arith.constant dense<0.000000e+00> : vector<8xf32>
    %117 = vector.multi_reduction <add>, %116, %cst_38 [1] : vector<8x8xf32> to vector<8xf32>
    %118 = vector.shape_cast %117 : vector<8xf32> to vector<8x1xf32>
    %119 = vector.broadcast %118 : vector<8x1xf32> to vector<8x8xf32>
    %120 = arith.divf %116, %119 : vector<8x8xf32>
    %cst_39 = arith.constant dense<0.000000e+00> : vector<8x8xf32>
    %121 = tpu.matmul %120, %108, %cst_39 {dimension_numbers = #tpu.dot_dimension_numbers<[1], [0], [0], [1], [0, 0, 1, 1], [], []>, precision = #tpu.contract_precision<fp32>} : vector<8x8xf32>, vector<8x8xf32>, vector<8x8xf32> -> vector<8x8xf32>
    %122 = vector.extract_strided_slice %6 {offsets = [8, 24], sizes = [8, 8], strides = [1, 1]} : vector<16x32xf32> to vector<8x8xf32>
    %123 = vector.extract_strided_slice %7 {offsets = [8, 24], sizes = [8, 8], strides = [1, 1]} : vector<16x32xf32> to vector<8x8xf32>
    %124 = vector.extract_strided_slice %8 {offsets = [8, 24], sizes = [8, 8], strides = [1, 1]} : vector<16x32xf32> to vector<8x8xf32>
    %cst_40 = arith.constant dense<0.000000e+00> : vector<8x8xf32>
    %125 = tpu.matmul %122, %123, %cst_40 {dimension_numbers = #tpu.dot_dimension_numbers<[1], [1], [0], [0], [0, 0, 1, 0], [], []>, precision = #tpu.contract_precision<fp32>} : vector<8x8xf32>, vector<8x8xf32>, vector<8x8xf32> -> vector<8x8xf32>
    %cst_41 = arith.constant 0.353553385 : f32
    %126 = vector.broadcast %cst_41 : f32 to vector<8x8xf32>
    %127 = arith.mulf %125, %126 : vector<8x8xf32>
    %cst_42 = arith.constant dense<0xFF800000> : vector<8xf32>
    %128 = vector.multi_reduction <maximumf>, %127, %cst_42 [1] : vector<8x8xf32> to vector<8xf32>
    %129 = vector.shape_cast %128 : vector<8xf32> to vector<8x1xf32>
    %130 = vector.broadcast %129 : vector<8x1xf32> to vector<8x8xf32>
    %131 = arith.subf %127, %130 : vector<8x8xf32>
    %132 = math.exp %131 : vector<8x8xf32>
    %cst_43 = arith.constant dense<0.000000e+00> : vector<8xf32>
    %133 = vector.multi_reduction <add>, %132, %cst_43 [1] : vector<8x8xf32> to vector<8xf32>
    %134 = vector.shape_cast %133 : vector<8xf32> to vector<8x1xf32>
    %135 = vector.broadcast %134 : vector<8x1xf32> to vector<8x8xf32>
    %136 = arith.divf %132, %135 : vector<8x8xf32>
    %cst_44 = arith.constant dense<0.000000e+00> : vector<8x8xf32>
    %137 = tpu.matmul %136, %124, %cst_44 {dimension_numbers = #tpu.dot_dimension_numbers<[1], [0], [0], [1], [0, 0, 1, 1], [], []>, precision = #tpu.contract_precision<fp32>} : vector<8x8xf32>, vector<8x8xf32>, vector<8x8xf32> -> vector<8x8xf32>
    %138 = tpu.concatenate %89, %105, %121, %137 in 1 : vector<8x8xf32>, vector<8x8xf32>, vector<8x8xf32>, vector<8x8xf32> -> vector<8x32xf32>
    %139 = tpu.concatenate %73, %138 in 0 : vector<8x32xf32>, vector<8x32xf32> -> vector<16x32xf32>
    %c0_45 = arith.constant 0 : index
    %c0_46 = arith.constant 0 : index
    %140 = vector.load %arg3[%c0_45, %c0_46] : memref<32x32xf32, #tpu.memory_space<vmem>>, vector<32x32xf32>
    %cst_47 = arith.constant dense<0.000000e+00> : vector<16x32xf32>
    %141 = tpu.matmul %139, %140, %cst_47 {dimension_numbers = #tpu.dot_dimension_numbers<[1], [0], [0], [1], [0, 0, 1, 1], [], []>, precision = #tpu.contract_precision<fp32>} : vector<16x32xf32>, vector<32x32xf32>, vector<16x32xf32> -> vector<16x32xf32>
    %c0_48 = arith.constant 0 : index
    %c0_49 = arith.constant 0 : index
    %142 = vector.load %arg4[%c0_48, %c0_49] : memref<1x32xf32, #tpu.memory_space<vmem>>, vector<1x32xf32>
    %143 = vector.broadcast %142 : vector<1x32xf32> to vector<16x32xf32>
    %144 = arith.addf %141, %143 : vector<16x32xf32>
    %145 = arith.addf %0, %144 : vector<16x32xf32>
    %c0_50 = arith.constant 0 : index
    %c0_51 = arith.constant 0 : index
    %146 = vector.load %arg5[%c0_50, %c0_51] : memref<1x32xf32, #tpu.memory_space<vmem>>, vector<1x32xf32>
    %c0_52 = arith.constant 0 : index
    %c0_53 = arith.constant 0 : index
    %147 = vector.load %arg6[%c0_52, %c0_53] : memref<1x32xf32, #tpu.memory_space<vmem>>, vector<1x32xf32>
    %cst_54 = arith.constant dense<0.000000e+00> : vector<16xf32>
    %148 = vector.multi_reduction <add>, %145, %cst_54 [1] : vector<16x32xf32> to vector<16xf32>
    %149 = vector.shape_cast %148 : vector<16xf32> to vector<16x1xf32>
    %cst_55 = arith.constant 3.200000e+01 : f32
    %150 = vector.broadcast %cst_55 : f32 to vector<16x1xf32>
    %151 = arith.divf %149, %150 : vector<16x1xf32>
    %152 = vector.broadcast %151 : vector<16x1xf32> to vector<16x32xf32>
    %153 = arith.subf %145, %152 : vector<16x32xf32>
    %154 = arith.mulf %153, %153 : vector<16x32xf32>
    %cst_56 = arith.constant dense<0.000000e+00> : vector<16xf32>
    %155 = vector.multi_reduction <add>, %154, %cst_56 [1] : vector<16x32xf32> to vector<16xf32>
    %156 = vector.shape_cast %155 : vector<16xf32> to vector<16x1xf32>
    %cst_57 = arith.constant 3.200000e+01 : f32
    %157 = vector.broadcast %cst_57 : f32 to vector<16x1xf32>
    %158 = arith.divf %156, %157 : vector<16x1xf32>
    %159 = vector.broadcast %151 : vector<16x1xf32> to vector<16x32xf32>
    %160 = arith.subf %145, %159 : vector<16x32xf32>
    %cst_58 = arith.constant 9.99999974E-6 : f32
    %161 = vector.broadcast %cst_58 : f32 to vector<16x1xf32>
    %162 = arith.addf %158, %161 : vector<16x1xf32>
    %163 = math.rsqrt %162 : vector<16x1xf32>
    %164 = vector.broadcast %163 : vector<16x1xf32> to vector<16x32xf32>
    %165 = arith.mulf %160, %164 : vector<16x32xf32>
    %166 = vector.broadcast %146 : vector<1x32xf32> to vector<16x32xf32>
    %167 = arith.mulf %165, %166 : vector<16x32xf32>
    %168 = vector.broadcast %147 : vector<1x32xf32> to vector<16x32xf32>
    %169 = arith.addf %167, %168 : vector<16x32xf32>
    %c0_59 = arith.constant 0 : index
    %c0_60 = arith.constant 0 : index
    %170 = vector.load %arg7[%c0_59, %c0_60] : memref<32x64xf32, #tpu.memory_space<vmem>>, vector<32x64xf32>
    %cst_61 = arith.constant dense<0.000000e+00> : vector<16x64xf32>
    %171 = tpu.matmul %169, %170, %cst_61 {dimension_numbers = #tpu.dot_dimension_numbers<[1], [0], [0], [1], [0, 0, 1, 1], [], []>, precision = #tpu.contract_precision<fp32>} : vector<16x32xf32>, vector<32x64xf32>, vector<16x64xf32> -> vector<16x64xf32>
    %c0_62 = arith.constant 0 : index
    %c0_63 = arith.constant 0 : index
    %172 = vector.load %arg8[%c0_62, %c0_63] : memref<1x64xf32, #tpu.memory_space<vmem>>, vector<1x64xf32>
    %173 = vector.broadcast %172 : vector<1x64xf32> to vector<16x64xf32>
    %174 = arith.addf %171, %173 : vector<16x64xf32>
    %cst_64 = arith.constant 0.000000e+00 : f32
    %175 = vector.broadcast %cst_64 : f32 to vector<16x64xf32>
    %176 = arith.maximumf %174, %175 : vector<16x64xf32>
    %c0_65 = arith.constant 0 : index
    %c0_66 = arith.constant 0 : index
    %177 = vector.load %arg9[%c0_65, %c0_66] : memref<64x32xf32, #tpu.memory_space<vmem>>, vector<64x32xf32>
    %cst_67 = arith.constant dense<0.000000e+00> : vector<16x32xf32>
    %178 = tpu.matmul %176, %177, %cst_67 {dimension_numbers = #tpu.dot_dimension_numbers<[1], [0], [0], [1], [0, 0, 1, 1], [], []>, precision = #tpu.contract_precision<fp32>} : vector<16x64xf32>, vector<64x32xf32>, vector<16x32xf32> -> vector<16x32xf32>
    %c0_68 = arith.constant 0 : index
    %c0_69 = arith.constant 0 : index
    %179 = vector.load %arg10[%c0_68, %c0_69] : memref<1x32xf32, #tpu.memory_space<vmem>>, vector<1x32xf32>
    %180 = vector.broadcast %179 : vector<1x32xf32> to vector<16x32xf32>
    %181 = arith.addf %178, %180 : vector<16x32xf32>
    %182 = arith.addf %169, %181 : vector<16x32xf32>
    %c0_70 = arith.constant 0 : index
    %c0_71 = arith.constant 0 : index
    %183 = vector.load %arg11[%c0_70, %c0_71] : memref<1x32xf32, #tpu.memory_space<vmem>>, vector<1x32xf32>
    %c0_72 = arith.constant 0 : index
    %c0_73 = arith.constant 0 : index
    %184 = vector.load %arg12[%c0_72, %c0_73] : memref<1x32xf32, #tpu.memory_space<vmem>>, vector<1x32xf32>
    %cst_74 = arith.constant dense<0.000000e+00> : vector<16xf32>
    %185 = vector.multi_reduction <add>, %182, %cst_74 [1] : vector<16x32xf32> to vector<16xf32>
    %186 = vector.shape_cast %185 : vector<16xf32> to vector<16x1xf32>
    %cst_75 = arith.constant 3.200000e+01 : f32
    %187 = vector.broadcast %cst_75 : f32 to vector<16x1xf32>
    %188 = arith.divf %186, %187 : vector<16x1xf32>
    %189 = vector.broadcast %188 : vector<16x1xf32> to vector<16x32xf32>
    %190 = arith.subf %182, %189 : vector<16x32xf32>
    %191 = arith.mulf %190, %190 : vector<16x32xf32>
    %cst_76 = arith.constant dense<0.000000e+00> : vector<16xf32>
    %192 = vector.multi_reduction <add>, %191, %cst_76 [1] : vector<16x32xf32> to vector<16xf32>
    %193 = vector.shape_cast %192 : vector<16xf32> to vector<16x1xf32>
    %cst_77 = arith.constant 3.200000e+01 : f32
    %194 = vector.broadcast %cst_77 : f32 to vector<16x1xf32>
    %195 = arith.divf %193, %194 : vector<16x1xf32>
    %196 = vector.broadcast %188 : vector<16x1xf32> to vector<16x32xf32>
    %197 = arith.subf %182, %196 : vector<16x32xf32>
    %cst_78 = arith.constant 9.99999974E-6 : f32
    %198 = vector.broadcast %cst_78 : f32 to vector<16x1xf32>
    %199 = arith.addf %195, %198 : vector<16x1xf32>
    %200 = math.rsqrt %199 : vector<16x1xf32>
    %201 = vector.broadcast %200 : vector<16x1xf32> to vector<16x32xf32>
    %202 = arith.mulf %197, %201 : vector<16x32xf32>
    %203 = vector.broadcast %183 : vector<1x32xf32> to vector<16x32xf32>
    %204 = arith.mulf %202, %203 : vector<16x32xf32>
    %205 = vector.broadcast %184 : vector<1x32xf32> to vector<16x32xf32>
    %206 = arith.addf %204, %205 : vector<16x32xf32>
    %c0_79 = arith.constant 0 : index
    %c0_80 = arith.constant 0 : index
    %207 = vector.load %arg13[%c0_79, %c0_80] : memref<16x32xf32, #tpu.memory_space<vmem>>, vector<16x32xf32>
    tpu.vector_store %arg13[%c0_79, %c0_80], %206 {strides = array<i32>} : memref<16x32xf32, #tpu.memory_space<vmem>>, vector<16x32xf32>,
    return
  }
}

module attributes {stable_mosaic.version = 11 : i64} {
  func.func @_linear_kernel(%arg0: memref<16x32xf32, #tpu.memory_space<vmem>>, %arg1: memref<32x8xf32, #tpu.memory_space<vmem>>, %arg2: memref<1x8xf32, #tpu.memory_space<vmem>>, %arg3: memref<16x8xf32, #tpu.memory_space<vmem>>) attributes {dimension_semantics = [], scalar_prefetch = 0 : i64, scratch_operands = 0 : i64, tpu.core_type = #tpu.core_type<tc>} {
    %c0 = arith.constant 0 : index
    %c0_0 = arith.constant 0 : index
    %0 = vector.load %arg0[%c0, %c0_0] : memref<16x32xf32, #tpu.memory_space<vmem>>, vector<16x32xf32>
    %c0_1 = arith.constant 0 : index
    %c0_2 = arith.constant 0 : index
    %1 = vector.load %arg1[%c0_1, %c0_2] : memref<32x8xf32, #tpu.memory_space<vmem>>, vector<32x8xf32>
    %cst = arith.constant dense<0.000000e+00> : vector<16x8xf32>
    %2 = tpu.matmul %0, %1, %cst {dimension_numbers = #tpu.dot_dimension_numbers<[1], [0], [0], [1], [0, 0, 1, 1], [], []>, precision = #tpu.contract_precision<fp32>} : vector<16x32xf32>, vector<32x8xf32>, vector<16x8xf32> -> vector<16x8xf32>
    %c0_3 = arith.constant 0 : index
    %c0_4 = arith.constant 0 : index
    %3 = vector.load %arg2[%c0_3, %c0_4] : memref<1x8xf32, #tpu.memory_space<vmem>>, vector<1x8xf32>
    %4 = vector.broadcast %3 : vector<1x8xf32> to vector<16x8xf32>
    %5 = arith.addf %2, %4 : vector<16x8xf32>
    %c0_5 = arith.constant 0 : index
    %c0_6 = arith.constant 0 : index
    %6 = vector.load %arg3[%c0_5, %c0_6] : memref<16x8xf32, #tpu.memory_space<vmem>>, vector<16x8xf32>
    tpu.vector_store %arg3[%c0_5, %c0_6], %5 {strides = array<i32>} : memref<16x8xf32, #tpu.memory_space<vmem>>, vector<16x8xf32>,
    return
  }
}

</mosaic_0001>

<bundles_post_ra>
// kernel: vanilla_transformer_forward.4
= control target key start
LH: loop header
LB: loop body
LE: loop exit
PB: predicated region body
PF: predicated region fallthrough
CT: control target
= control target key end

     0   :  { %vm30_vm0 = vcmask 261120   ;;  %s355_s2 = inlined_call_operand.vmem [shape: f32[32,32], index: 2, kind: input, shape index: {}]   ;;  %s356_s0 = inlined_call_operand.vmem [shape: f32[16,32], index: 0, kind: input, shape index: {}]   ;;  %s357_s1 = inlined_call_operand.vmem [shape: f32[8,32], index: 1, kind: input, shape index: {}]   ;;  %s358_s3 = inlined_call_operand.vmem [shape: f32[1,32], index: 3, kind: input, shape index: {}]   ;;  %s359_s4 = inlined_call_operand.vmem [shape: f32[16,32], index: 4, kind: output, shape index: {}]  }
   0x1   :  { %v25_v0 = vld [vmem:[%s355_s2 + $0x18] sm:$0xff]  ;;  %v24_v1 = vld [vmem:[%s355_s2 + $0x10] sm:$0xff]  ;;  %v23_v2 = vld [vmem:[%s355_s2 + $0x8] sm:$0xff] }
   0x2   :  { %v302_v3 = vand.u32 4294901760, %v25_v0  ;;  %v304_v4 = vand.u32 4294901760, %v24_v1  ;;  %v306_v5 = vand.u32 4294901760, %v23_v2  ;;  %v22_v6 = vld [vmem:[%s355_s2] sm:$0xff]  ;;  %v18_v7 = vld [vmem:[%s356_s0 + $0x8] sm:$0xff] }
   0x3   :  { %v19_v8 = vld [vmem:[%s357_s1] sm:$0xff]  ;;  %v317_v9 = vand.u32 4294901760, %v22_v6 }
   0x4   :  { %v21_v10 = vadd.f32 %v19_v8, %v18_v7  ;;  %v17_v11 = vld [vmem:[%s356_s0] sm:$0xff]  ;;  %259 = vmatpush.msra.mxu2 %v302_v3  ;;  %v87_v12 = vsub.f32 %v25_v0, %v302_v3  ;;  %v93_v13 = vsub.f32 %v24_v1, %v304_v4  ;;  %v99_v14 = vsub.f32 %v23_v2, %v306_v5 }
   0x5   :  { %50 = vmatpush.msra.mxu0 %v302_v3  ;;  %v105_v16 = vsub.f32 %v22_v6, %v317_v9  ;;  %v20_v17 = vadd.f32 %v19_v8, %v17_v11  ;;  %v267_v42 = vld [vmem:[%s358_s3] ss:$0 sm:$0xff] }
   0x6   :  { %v35_v15 = vsel %vm30_vm0, %v21_v10, 0  ;;  %260 = vmatpush.msra.mxu2 %v304_v4  ;;  %v88_v18 = vand.u32 4294901760, %v87_v12  ;;  %v94_v19 = vand.u32 4294901760, %v93_v13  ;;  %v100_v21 = vand.u32 4294901760, %v99_v14 }
   0x7   :  { %v65_v20 = vand.u32 4294901760, %v35_v15  ;;  %52 = vmatpush.msra.mxu0 %v304_v4  ;;  %v106_v22 = vand.u32 4294901760, %v105_v16  ;;  %v32_v23 = vsel %vm30_vm0, %v20_v17, 0 }
   0x8   :  { %261 = vmatpush.msra.mxu2 %v306_v5  ;;  %v89_v24 = vsub.f32 %v87_v12, %v88_v18  ;;  %v95_v25 = vsub.f32 %v93_v13, %v94_v19  ;;  %v101_v27 = vsub.f32 %v99_v14, %v100_v21  ;;  %v57_v28 = vand.u32 4294901760, %v32_v23 }
   0x9   :  { %v66_v26 = vsub.f32 %v35_v15, %v65_v20  ;;  %54 = vmatpush.msra.mxu0 %v306_v5  ;;  %v107_v32 = vsub.f32 %v105_v16, %v106_v22 }
   0xa   :  { %v90_v29 = vand.u32 4294901760, %v89_v24  ;;  %262 = vmatpush.msra.mxu2 %v317_v9  ;;  %v96_v30 = vand.u32 4294901760, %v95_v25  ;;  %v58_v33 = vsub.f32 %v32_v23, %v57_v28  ;;  %v102_v35 = vand.u32 4294901760, %v101_v27 }
   0xb   :  { %v67_v31 = vand.u32 4294901760, %v66_v26  ;;  %56 = vmatpush.msra.mxu0 %v317_v9  ;;  %v108_v38 = vand.u32 4294901760, %v107_v32 }
   0xc   :  { %133 = vmatpush.msrb.mxu2 %v87_v12  ;;  %263 = vmatpush.msra.mxu3 %v90_v29  ;;  %v59_v36 = vand.u32 4294901760, %v58_v33 }
   0xd   :  { %v68_v34 = vsub.f32 %v66_v26, %v67_v31  ;;  %91 = vmatpush.msra.mxu1 %v90_v29  ;;  %202 = vmatpush.msrb.mxu0 %v88_v18 }
   0xe   :  { %136 = vmatpush.msrb.mxu2 %v93_v13  ;;  %264 = vmatpush.msra.mxu3 %v96_v30  ;;  %v60_v39 = vsub.f32 %v58_v33, %v59_v36 }
   0xf   :  { %v69_v37 = vand.u32 4294901760, %v68_v34  ;;  %97 = vmatpush.msra.mxu1 %v96_v30  ;;  %206 = vmatpush.msrb.mxu0 %v94_v19 }
  0x10   :  { %139 = vmatpush.msrb.mxu2 %v99_v14  ;;  %265 = vmatpush.msra.mxu3 %v102_v35  ;;  %v61_v40 = vand.u32 4294901760, %v60_v39 }
  0x11   :  { %70 = vmatmul.f32.vlgmr.msra.gmra.mxu2 %v69_v37  ;;  %103 = vmatpush.msra.mxu1 %v102_v35 }
  0x12   :  { %142 = vmatpush.msrb.mxu2 %v105_v16  ;;  %266 = vmatpush.msra.mxu3 %v108_v38 }
  0x13   :  { %210 = vmatpush.msrb.mxu0 %v100_v21  ;;  %115 = vmatmul.f32.vlgmr.msra.gmra.mxu3 %v65_v20 }
  0x14   :  { %62 = vmatmul.f32.vlgmr.msra.gmra.mxu0 %v61_v40  ;;  %167 = vmatpush.msrb.mxu3 %v302_v3 }
  0x15   :  { %109 = vmatpush.msra.mxu1 %v108_v38  ;;  %214 = vmatpush.msrb.mxu0 %v106_v22 }
  0x16   :  { %111 = vmatmul.f32.vlgmr.msra.gmra.mxu1 %v57_v28  ;;  %169 = vmatpush.msrb.mxu3 %v304_v4 }
  0x17   :  { %237 = vmatpush.msrb.mxu1 %v302_v3 }
  0x18   :  { %171 = vmatpush.msrb.mxu3 %v306_v5 }
  0x19   :  { %145 = vmatmul.f32.vlgmr.msrb.gmra.mxu2 %v58_v33  ;;  %239 = vmatpush.msrb.mxu1 %v304_v4 }
  0x1a   :  { %173 = vmatpush.msrb.mxu3 %v317_v9 }
  0x1b   :  { %177 = vmatmul.f32.vlgmr.msrb.gmra.mxu3 %v59_v36  ;;  %241 = vmatpush.msrb.mxu1 %v306_v5 }
  0x1c   :  { %216 = vmatmul.f32.vlgmr.msrb.gmra.mxu0 %v57_v28 }
  0x1d   :  { %243 = vmatpush.msrb.mxu1 %v317_v9 }
  0x1e   :  { %245 = vmatmul.f32.vlgmr.msrb.gmra.mxu1 %v57_v28 }
  0x21   :  { %150 = vmatmul.f32.gmra.mxu2 %v66_v26 }
  0x23   :  { %183 = vmatmul.f32.gmra.mxu3 %v67_v31 }
  0x24   :  { %220 = vmatmul.f32.gmra.mxu0 %v65_v20 }
  0x26   :  { %249 = vmatmul.f32.gmra.mxu1 %v65_v20 }
  0x91   :  { %v63_v41 = vpop.f32.mrf.mxu0 }
  0x92   :  { %v64_v44 = vadd.f32 %v267_v42, %v63_v41 }
  0x93   :  { %v112_v45 = vpop.f32.mrf.mxu1 }
  0x94   :  { %v71_v43 = vpop.f32.mrf.mxu2  ;;  %v113_v47 = vadd.f32 %v112_v45, %v64_v44 }
  0x95   :  { %v72_v53 = vadd.f32 %v267_v42, %v71_v43 }
  0x96   :  { %v116_v46 = vpop.f32.mrf.mxu3 }
  0x97   :  { %v117_v56 = vadd.f32 %v116_v46, %v72_v53 }
  0x99   :  { %v217_v50 = vpop.f32.mrf.mxu0 }
  0x9b   :  { %v246_v52 = vpop.f32.mrf.mxu1 }
  0x9c   :  { %v146_v48 = vpop.f32.mrf.mxu2 }
  0x9d   :  { %v147_v49 = vadd.f32 %v146_v48, %v113_v47 }
  0x9e   :  { %v178_v51 = vpop.f32.mrf.mxu3 }
  0x9f   :  { %v179_v54 = vadd.f32 %v178_v51, %v147_v49 }
  0xa1   :  { %v218_v55 = vadd.f32 %v217_v50, %v179_v54  ;;  %v221_v61 = vpop.f32.mrf.mxu0 }
  0xa3   :  { %v247_v58 = vadd.f32 %v246_v52, %v218_v55  ;;  %v250_v63 = vpop.f32.mrf.mxu1 }
  0xa4   :  { %v151_v57 = vpop.f32.mrf.mxu2 }
  0xa5   :  { %v152_v59 = vadd.f32 %v151_v57, %v117_v56  ;;  %253 = vst.msk [vmem:[%s359_s4] sm:$0xff] %vm30_vm0, %v247_v58 }
  0xa6   :  { %v184_v60 = vpop.f32.mrf.mxu3 }
  0xa7   :  { %v185_v62 = vadd.f32 %v184_v60, %v152_v59 }
  0xa9   :  { %v222_v0 = vadd.f32 %v221_v61, %v185_v62 }
  0xab   :  { %v251_v1 = vadd.f32 %v250_v63, %v222_v0 }
  0xad   :  { %254 = vst.msk [vmem:[%s359_s4 + $0x8] sm:$0xff] %vm30_vm0, %v251_v1 }

// kernel: vanilla_transformer_forward.7
= control target key start
LH: loop header
LB: loop body
LE: loop exit
PB: predicated region body
PF: predicated region fallthrough
CT: control target
= control target key end

     0   :  { %vm25_vm0 = vcmask 261120   ;;  %s390_s0 = inlined_call_operand.vmem [shape: f32[16,32], index: 0, kind: input, shape index: {}]   ;;  %s391_s1 = inlined_call_operand.vmem [shape: f32[32,8], index: 1, kind: input, shape index: {}]   ;;  %s392_s2 = inlined_call_operand.vmem [shape: f32[1,8], index: 2, kind: input, shape index: {}]   ;;  %s393_s3 = inlined_call_operand.hbm [shape: f32[16,8], index: 3, kind: output, shape index: {}]  }
   0x1   :  { %v20_v0 = vld [vmem:[%s391_s1 + $0x18] sm:$0xff]  ;;  %v19_v1 = vld [vmem:[%s391_s1 + $0x10] sm:$0xff]  ;;  %v18_v2 = vld [vmem:[%s391_s1 + $0x8] sm:$0xff] }
   0x2   :  { %v339_v3 = vand.u32 4294901760, %v20_v0  ;;  %v341_v4 = vand.u32 4294901760, %v19_v1  ;;  %v343_v5 = vand.u32 4294901760, %v18_v2  ;;  %v17_v6 = vld [vmem:[%s391_s1] sm:$0xff]  ;;  %v16_v7 = vld [vmem:[%s390_s0 + $0x8] sm:$0xff] }
   0x3   :  { %v15_v8 = vld [vmem:[%s390_s0] sm:$0xff]  ;;  %v354_v9 = vand.u32 4294901760, %v17_v6  ;;  %v30_v10 = vsel %vm25_vm0, %v16_v7, 0 }
   0x4   :  { %v27_v11 = vsel %vm25_vm0, %v15_v8, 0  ;;  %269 = vmatpush.msra.mxu2 %v339_v3  ;;  %v82_v12 = vsub.f32 %v20_v0, %v339_v3  ;;  %v358_v13 = vand.u32 4294901760, %v30_v10  ;;  %v88_v14 = vsub.f32 %v19_v1, %v341_v4  ;;  %45 = vmatpush.msra.mxu0 %v339_v3 }
   0x5   :  { %v94_v15 = vsub.f32 %v18_v2, %v343_v5 }
   0x6   :  { %8 = vsyncpa [#allocation3], 0  ;;  %v100_v16 = vsub.f32 %v17_v6, %v354_v9  ;;  %v52_v17 = vand.u32 4294901760, %v27_v11  ;;  %270 = vmatpush.msra.mxu2 %v341_v4  ;;  %v83_v18 = vand.u32 4294901760, %v82_v12  ;;  %v61_v19 = vsub.f32 %v30_v10, %v358_v13  ;;  %47 = vmatpush.msra.mxu0 %v341_v4  ;;  %v280_v39 = vld [vmem:[%s392_s2] ss:$0 sm:$0xff] }
   0x7   :  { %v89_v20 = vand.u32 4294901760, %v88_v14  ;;  %v95_v21 = vand.u32 4294901760, %v94_v15  ;;  %vm248_vm1 = vcmask 64512   ;;  %s307_s2 = smov [#allocation2]   ;;  %s257_s27 = sshll.u32 %s393_s3, 4  ;;  %s258_s27 = int_to_ptr.hbm [resolvable:$true] %s257_s27 }
   0x8   :  { %v101_v22 = vand.u32 4294901760, %v100_v16  ;;  %v53_v23 = vsub.f32 %v27_v11, %v52_v17  ;;  %271 = vmatpush.msra.mxu2 %v343_v5  ;;  %v84_v24 = vsub.f32 %v82_v12, %v83_v18  ;;  %v62_v25 = vand.u32 4294901760, %v61_v19  ;;  %49 = vmatpush.msra.mxu0 %v343_v5  ;;  %s255_s24 = sshll.u32 %s307_s2, 4  ;;  %s308_s28 = smov 128   ;;  %s256_s24 = int_to_ptr.vmem [resolvable:$true] %s255_s24 }
   0x9   :  { %v90_v26 = vsub.f32 %v88_v14, %v89_v20  ;;  %v96_v27 = vsub.f32 %v94_v15, %v95_v21  ;;  %s309_s29 = smov 8  }
   0xa   :  { %v54_v28 = vand.u32 4294901760, %v53_v23  ;;  %272 = vmatpush.msra.mxu2 %v354_v9  ;;  %v85_v29 = vand.u32 4294901760, %v84_v24  ;;  %v63_v30 = vsub.f32 %v61_v19, %v62_v25  ;;  %v102_v32 = vsub.f32 %v100_v16, %v101_v22  ;;  %51 = vmatpush.msra.mxu0 %v354_v9 }
   0xb   :  { %v91_v31 = vand.u32 4294901760, %v90_v26  ;;  %v97_v35 = vand.u32 4294901760, %v96_v27 }
   0xc   :  { %128 = vmatpush.msrb.mxu2 %v82_v12  ;;  %v55_v33 = vsub.f32 %v53_v23, %v54_v28  ;;  %197 = vmatpush.msrb.mxu0 %v83_v18  ;;  %v64_v34 = vand.u32 4294901760, %v63_v30  ;;  %v103_v37 = vand.u32 4294901760, %v102_v32 }
   0xd   :  { %273 = vmatpush.msra.mxu3 %v85_v29  ;;  %86 = vmatpush.msra.mxu1 %v85_v29 }
   0xe   :  { %131 = vmatpush.msrb.mxu2 %v88_v14  ;;  %v56_v36 = vand.u32 4294901760, %v55_v33  ;;  %201 = vmatpush.msrb.mxu0 %v89_v20 }
   0xf   :  { %65 = vmatmul.f32.vlgmr.msra.gmra.mxu2 %v64_v34  ;;  %274 = vmatpush.msra.mxu3 %v91_v31 }
  0x10   :  { %134 = vmatpush.msrb.mxu2 %v94_v15  ;;  %92 = vmatpush.msra.mxu1 %v91_v31 }
  0x11   :  { %275 = vmatpush.msra.mxu3 %v97_v35  ;;  %57 = vmatmul.f32.vlgmr.msra.gmra.mxu0 %v56_v36 }
  0x12   :  { %137 = vmatpush.msrb.mxu2 %v100_v16  ;;  %98 = vmatpush.msra.mxu1 %v97_v35 }
  0x13   :  { %276 = vmatpush.msra.mxu3 %v103_v37  ;;  %205 = vmatpush.msrb.mxu0 %v95_v21 }
  0x14   :  { %110 = vmatmul.f32.vlgmr.msra.gmra.mxu3 %v358_v13  ;;  %104 = vmatpush.msra.mxu1 %v103_v37 }
  0x15   :  { %162 = vmatpush.msrb.mxu3 %v339_v3  ;;  %106 = vmatmul.f32.vlgmr.msra.gmra.mxu1 %v52_v17 }
  0x16   :  { %232 = vmatpush.msrb.mxu1 %v339_v3  ;;  %209 = vmatpush.msrb.mxu0 %v101_v22 }
  0x17   :  { %140 = vmatmul.f32.vlgmr.msrb.gmra.mxu2 %v53_v23  ;;  %164 = vmatpush.msrb.mxu3 %v341_v4 }
  0x18   :  { %234 = vmatpush.msrb.mxu1 %v341_v4 }
  0x19   :  { %166 = vmatpush.msrb.mxu3 %v343_v5  ;;  %211 = vmatmul.f32.vlgmr.msrb.gmra.mxu0 %v52_v17 }
  0x1a   :  { %236 = vmatpush.msrb.mxu1 %v343_v5 }
  0x1b   :  { %168 = vmatpush.msrb.mxu3 %v354_v9 }
  0x1c   :  { %172 = vmatmul.f32.vlgmr.msrb.gmra.mxu3 %v54_v28  ;;  %238 = vmatpush.msrb.mxu1 %v354_v9 }
  0x1d   :  { %240 = vmatmul.f32.vlgmr.msrb.gmra.mxu1 %v52_v17 }
  0x1f   :  { %145 = vmatmul.f32.gmra.mxu2 %v61_v19 }
  0x21   :  { %215 = vmatmul.f32.gmra.mxu0 %v358_v13 }
  0x24   :  { %178 = vmatmul.f32.gmra.mxu3 %v62_v25 }
  0x25   :  { %244 = vmatmul.f32.gmra.mxu1 %v358_v13 }
  0x8e   :  { %v58_v38 = vpop.f32.mrf.mxu0 }
  0x8f   :  { %v59_v41 = vadd.f32 %v280_v39, %v58_v38 }
  0x92   :  { %v66_v40 = vpop.f32.mrf.mxu2  ;;  %v107_v42 = vpop.f32.mrf.mxu1 }
  0x93   :  { %v108_v44 = vadd.f32 %v107_v42, %v59_v41  ;;  %v67_v50 = vadd.f32 %v280_v39, %v66_v40 }
  0x96   :  { %v212_v47 = vpop.f32.mrf.mxu0 }
  0x97   :  { %v111_v43 = vpop.f32.mrf.mxu3 }
  0x98   :  { %v112_v54 = vadd.f32 %v111_v43, %v67_v50 }
  0x9a   :  { %v141_v45 = vpop.f32.mrf.mxu2  ;;  %v241_v49 = vpop.f32.mrf.mxu1 }
  0x9b   :  { %v142_v46 = vadd.f32 %v141_v45, %v108_v44 }
  0x9e   :  { %v216_v58 = vpop.f32.mrf.mxu0 }
  0x9f   :  { %v173_v48 = vpop.f32.mrf.mxu3 }
  0xa0   :  { %v174_v51 = vadd.f32 %v173_v48, %v142_v46 }
  0xa2   :  { %v213_v52 = vadd.f32 %v212_v47, %v174_v51  ;;  %v146_v53 = vpop.f32.mrf.mxu2  ;;  %v245_v60 = vpop.f32.mrf.mxu1 }
  0xa3   :  { %v147_v56 = vadd.f32 %v146_v53, %v112_v54 }
  0xa4   :  { %v242_v55 = vadd.f32 %v241_v49, %v213_v52 }
  0xa6   :  { %249 = vst.msk [vmem:[#allocation2] sm:$0xff] %vm248_vm1, %v242_v55 }
  0xa7   :  { %v179_v57 = vpop.f32.mrf.mxu3 }
  0xa8   :  { %v180_v59 = vadd.f32 %v179_v57, %v147_v56 }
  0xaa   :  { %v217_v61 = vadd.f32 %v216_v58, %v180_v59 }
  0xac   :  { %v246_v62 = vadd.f32 %v245_v60, %v217_v61 }
  0xae   :  { %250 = vst.msk [vmem:[#allocation2 + $0x8] sm:$0xff] %vm248_vm1, %v246_v62 }
  0xaf   :  { %263 = dma.vmem_to_hbm [thread:$0]  %s256_s24, 256, %s258_s27, [#allocation3], %s308_s28, %s308_s28, %s309_s29  }
  0xb0   :  { %305 = dma.done.wait [#allocation3], 256  }
  0xb1   :  { %306 = vsyncadd [#allocation3], 4294967040 }
  0xb2   :  { %268 = vsyncpa [#allocation3], 1 }

// kernel: vanilla_transformer_forward.5
= control target key start
LH: loop header
LB: loop body
LE: loop exit
PB: predicated region body
PF: predicated region fallthrough
CT: control target
= control target key end

     0   :  { %18 = vsyncpa [#allocation3], 0  ;;  %s4851_s0 = inlined_call_operand.vmem [shape: f32[16,32], index: 0, kind: input, shape index: {}]   ;;  %s4852_s1 = inlined_call_operand.vmem [shape: f32[32,96], index: 1, kind: input, shape index: {}]   ;;  %s4853_s2 = inlined_call_operand.hbm [shape: f32[1,96], index: 2, kind: input, shape index: {}]   ;;  %s4854_s3 = inlined_call_operand.hbm [shape: f32[32,32], index: 3, kind: input, shape index: {}]   ;;  %s4855_s4 = inlined_call_operand.hbm [shape: f32[1,32], index: 4, kind: input, shape index: {}]   ;;  %s4856_s5 = inlined_call_operand.hbm [shape: f32[1,32], index: 5, kind: input, shape index: {}]   ;;  %s4857_s6 = inlined_call_operand.hbm [shape: f32[1,32], index: 6, kind: input, shape index: {}]   ;;  %s4858_s7 = inlined_call_operand.hbm [shape: f32[32,64], index: 7, kind: input, shape index: {}]   ;;  %s4859_s8 = inlined_call_operand.hbm [shape: f32[1,64], index: 8, kind: input, shape index: {}]   ;;  %s4860_s9 = inlined_call_operand.vmem [shape: f32[64,32], index: 9, kind: input, shape index: {}]   ;;  %s4861_s10 = inlined_call_operand.hbm [shape: f32[1,32], index: 10, kind: input, shape index: {}]   ;;  %s4862_s11 = inlined_call_operand.hbm [shape: f32[1,32], index: 11, kind: input, shape index: {}]   ;;  %s4863_s12 = inlined_call_operand.hbm [shape: f32[1,32], index: 12, kind: input, shape index: {}]   ;;  %s4864_s13 = inlined_call_operand.vmem [shape: f32[16,32], index: 13, kind: output, shape index: {}]  }
   0x1   :  { %19 = vsyncpa [#allocation5], 0 }
   0x2   :  { %20 = vsyncpa [#allocation8], 0 }
   0x3   :  { %21 = vsyncpa [#allocation11], 0 }
   0x4   :  { %22 = vsyncpa [#allocation14], 0  ;;  %s43_s27 = sshll.u32 %s4854_s3, 4  ;;  %s44_s27 = int_to_ptr.hbm [resolvable:$true] %s43_s27 }
   0x5   :  { %23 = vsyncpa [#allocation17], 0  ;;  %s4318_s28 = smov [#allocation4]   ;;  %s68_s15 = sshll.u32 %s4856_s5, 4  ;;  %s69_s15 = int_to_ptr.hbm [resolvable:$true] %s68_s15 }
   0x6   :  { %s45_s29 = sshll.u32 %s4318_s28, 4  ;;  %s4319_s16 = smov 128   ;;  %s46_s29 = int_to_ptr.vmem [resolvable:$true] %s45_s29 }
   0x7   :  { %s4320_s17 = smov 8   ;;  %s4321_s18 = smov [#allocation7]  }
   0x8   :  { %51 = dma.hbm_to_vmem [thread:$0]  %s44_s27, 512, %s46_s29, [#allocation5], %s4319_s16, %s4319_s16, %s4320_s17  }
   0x9   :  { %s70_s19 = sshll.u32 %s4321_s18, 4  ;;  %s89_s3 = sshll.u32 %s4858_s7, 4  ;;  %s71_s19 = int_to_ptr.vmem [resolvable:$true] %s70_s19  ;;  %s90_s3 = int_to_ptr.hbm [resolvable:$true] %s89_s3 }
   0xa   :  { %73 = dma.hbm_to_vmem [thread:$0]  %s69_s15, 16, %s71_s19, [#allocation8]  }
   0xb   :  { %s116_s24 = sshll.u32 %s4861_s10, 4  ;;  %s4322_s25 = smov [#allocation10]   ;;  %s117_s24 = int_to_ptr.hbm [resolvable:$true] %s116_s24 }
   0xc   :  { %s91_s5 = sshll.u32 %s4322_s25, 4  ;;  %s4323_s26 = smov [#allocation13]   ;;  %s92_s5 = int_to_ptr.vmem [resolvable:$true] %s91_s5 }
   0xd   :  { %97 = dma.hbm_to_vmem [thread:$0]  %s90_s3, 512, %s92_s5, [#allocation11], %s4319_s16, %s4319_s16, %s4320_s17  }
   0xe   :  { %s118_s27 = sshll.u32 %s4323_s26, 4  ;;  %s33_s30 = sshll.u32 %s4853_s2, 4  ;;  %s119_s27 = int_to_ptr.vmem [resolvable:$true] %s118_s27  ;;  %s34_s30 = int_to_ptr.hbm [resolvable:$true] %s33_s30 }
   0xf   :  { %121 = dma.hbm_to_vmem [thread:$0]  %s117_s24, 16, %s119_s27, [#allocation14]  }
  0x10   :  { %s57_s15 = sshll.u32 %s4855_s4, 4  ;;  %s4324_s10 = smov [#allocation2]   ;;  %s58_s15 = int_to_ptr.hbm [resolvable:$true] %s57_s15 }
  0x11   :  { %s35_s18 = sshll.u32 %s4324_s10, 4  ;;  %s4325_s19 = smov [#allocation6]   ;;  %s36_s18 = int_to_ptr.vmem [resolvable:$true] %s35_s18 }
  0x12   :  { %38 = dma.hbm_to_vmem [thread:$0]  %s34_s30, 16, %s36_s18, [#allocation3]  }
  0x13   :  { %s59_s16 = sshll.u32 %s4325_s19, 4  ;;  %s79_s3 = sshll.u32 %s4857_s6, 4  ;;  %s60_s16 = int_to_ptr.vmem [resolvable:$true] %s59_s16  ;;  %s80_s3 = int_to_ptr.hbm [resolvable:$true] %s79_s3 }
  0x14   :  { %62 = dma.hbm_to_vmem [thread:$0]  %s58_s15, 16, %s60_s16, [#allocation5]  }
  0x15   :  { %s103_s23 = sshll.u32 %s4859_s8, 4  ;;  %s4326_s24 = smov [#allocation9]   ;;  %s104_s23 = int_to_ptr.hbm [resolvable:$true] %s103_s23 }
  0x16   :  { %s81_s4 = sshll.u32 %s4326_s24, 4  ;;  %s4327_s25 = smov [#allocation12]   ;;  %s82_s4 = int_to_ptr.vmem [resolvable:$true] %s81_s4 }
  0x17   :  { %84 = dma.hbm_to_vmem [thread:$0]  %s80_s3, 16, %s82_s4, [#allocation8]  }
  0x18   :  { %s105_s5 = sshll.u32 %s4327_s25, 4  ;;  %s127_s28 = sshll.u32 %s4862_s11, 4  ;;  %s106_s5 = int_to_ptr.vmem [resolvable:$true] %s105_s5  ;;  %s128_s28 = int_to_ptr.hbm [resolvable:$true] %s127_s28 }
  0x19   :  { %108 = dma.hbm_to_vmem [thread:$0]  %s104_s23, 16, %s106_s5, [#allocation11]  }
  0x1a   :  { %s138_s30 = sshll.u32 %s4863_s12, 4  ;;  %s4328_s7 = smov [#allocation15]   ;;  %s139_s30 = int_to_ptr.hbm [resolvable:$true] %s138_s30 }
  0x1b   :  { %s129_s8 = sshll.u32 %s4328_s7, 4  ;;  %s4329_s14 = smov [#allocation16]   ;;  %s130_s8 = int_to_ptr.vmem [resolvable:$true] %s129_s8 }
  0x1c   :  { %132 = dma.hbm_to_vmem [thread:$0]  %s128_s28, 16, %s130_s8, [#allocation14]  }
  0x1d   :  { %s140_s15 = sshll.u32 %s4329_s14, 4  ;;  %s141_s15 = int_to_ptr.vmem [resolvable:$true] %s140_s15 }
  0x1e   :  { %143 = dma.hbm_to_vmem [thread:$0]  %s139_s30, 16, %s141_s15, [#allocation17]  }
  0x1f   :  { %4306 = dma.done.wait [#allocation3], 16  }
  0x20   :  { %4307 = vsyncadd [#allocation3], 4294967280 }
  0x21   :  { %4308 = dma.done.wait [#allocation5], 528  }
  0x22   :  { %4309 = vsyncadd [#allocation5], 4294966768 }
  0x23   :  { %4310 = dma.done.wait [#allocation8], 32  }
  0x24   :  { %4311 = vsyncadd [#allocation8], 4294967264 }
  0x25   :  { %4312 = dma.done.wait [#allocation11], 528  }
  0x26   :  { %4313 = vsyncadd [#allocation11], 4294966768 }
  0x27   :  { %4314 = dma.done.wait [#allocation14], 32  }
  0x28   :  { %4315 = vsyncadd [#allocation14], 4294967264 }
  0x29   :  { %4316 = dma.done.wait [#allocation17], 16  }
  0x2a   :  { %4317 = vsyncadd [#allocation17], 4294967280  ;;  %vm194_vm0 = vcmask 261120   ;;  %v189_v0 = vld [vmem:[%s4852_s1 + $0x18] sm:$0xff]  ;;  %v188_v1 = vld [vmem:[%s4852_s1 + $0x10] sm:$0xff]  ;;  %s4331_s24 = smov 96  }
  0x2b   :  { %v187_v2 = vld [vmem:[%s4852_s1 + $0x8] sm:$0xff]  ;;  %v213_v3 = vand.u32 4294901760, %v189_v0  ;;  %v4455_v4 = vand.u32 4294901760, %v188_v1  ;;  %v186_v6 = vld [vmem:[%s4852_s1] sm:$0xff]  ;;  %s4330_s1 = smov 88   ;;  %s4332_s4 = smov 120  }
  0x2c   :  { %v4457_v5 = vand.u32 4294901760, %v187_v2  ;;  %v185_v7 = vld [vmem:[%s4851_s0 + $0x8] sm:$0xff]  ;;  %v184_v8 = vld [vmem:[%s4851_s0] sm:$0xff]  ;;  %v4468_v9 = vand.u32 4294901760, %v186_v6  ;;  %vm420_vm1 = vcmask 64512   ;;  %s4333_s25 = smov 56  }
  0x2d   :  { %v199_v10 = vsel %vm194_vm0, %v185_v7, 0  ;;  %v196_v11 = vsel %vm194_vm0, %v184_v8, 0  ;;  %3980 = vmatpush.msra.mxu2 %v213_v3  ;;  %v251_v12 = vsub.f32 %v189_v0, %v213_v3  ;;  %v257_v14 = vsub.f32 %v188_v1, %v4455_v4  ;;  %214 = vmatpush.msra.mxu0 %v213_v3  ;;  %v4493_v39 = vld [vmem:[#allocation2] ss:$0 sm:$0xff]  ;;  %s4334_s5 = smov 112   ;;  %s4335_s26 = smov 64  }
  0x2e   :  { %v4472_v13 = vand.u32 4294901760, %v199_v10  ;;  %v263_v15 = vsub.f32 %v187_v2, %v4457_v5  ;;  %v269_v16 = vsub.f32 %v186_v6, %v4468_v9  ;;  %v221_v17 = vand.u32 4294901760, %v196_v11  ;;  %s4336_s27 = smov 80   ;;  %s4337_s28 = smov 48  }
  0x2f   :  { %3981 = vmatpush.msra.mxu2 %v4455_v4  ;;  %v252_v18 = vand.u32 4294901760, %v251_v12  ;;  %v258_v20 = vand.u32 4294901760, %v257_v14  ;;  %216 = vmatpush.msra.mxu0 %v4455_v4  ;;  %s4338_s6 = smov 104   ;;  %s4339_s29 = smov 72  }
  0x30   :  { %v230_v19 = vsub.f32 %v199_v10, %v4472_v13  ;;  %v264_v21 = vand.u32 4294901760, %v263_v15  ;;  %v270_v22 = vand.u32 4294901760, %v269_v16  ;;  %v222_v23 = vsub.f32 %v196_v11, %v221_v17  ;;  %s4340_s30 = smov 40   ;;  %s4341_s7 = smov 16  }
  0x31   :  { %3982 = vmatpush.msra.mxu2 %v4457_v5  ;;  %v253_v24 = vsub.f32 %v251_v12, %v252_v18  ;;  %v259_v26 = vsub.f32 %v257_v14, %v258_v20  ;;  %218 = vmatpush.msra.mxu0 %v4457_v5 }
  0x32   :  { %v231_v25 = vand.u32 4294901760, %v230_v19  ;;  %v265_v27 = vsub.f32 %v263_v15, %v264_v21  ;;  %v223_v28 = vand.u32 4294901760, %v222_v23  ;;  %v271_v32 = vsub.f32 %v269_v16, %v270_v22 }
  0x33   :  { %3983 = vmatpush.msra.mxu2 %v4468_v9  ;;  %v254_v29 = vand.u32 4294901760, %v253_v24  ;;  %v260_v31 = vand.u32 4294901760, %v259_v26  ;;  %220 = vmatpush.msra.mxu0 %v4468_v9 }
  0x34   :  { %v232_v30 = vsub.f32 %v230_v19, %v231_v25  ;;  %v224_v33 = vsub.f32 %v222_v23, %v223_v28  ;;  %v266_v35 = vand.u32 4294901760, %v265_v27  ;;  %v272_v37 = vand.u32 4294901760, %v271_v32 }
  0x35   :  { %297 = vmatpush.msrb.mxu2 %v251_v12  ;;  %366 = vmatpush.msrb.mxu0 %v252_v18 }
  0x36   :  { %3984 = vmatpush.msra.mxu3 %v254_v29  ;;  %v233_v34 = vand.u32 4294901760, %v232_v30  ;;  %255 = vmatpush.msra.mxu1 %v254_v29  ;;  %v225_v36 = vand.u32 4294901760, %v224_v33 }
  0x37   :  { %300 = vmatpush.msrb.mxu2 %v257_v14  ;;  %370 = vmatpush.msrb.mxu0 %v258_v20 }
  0x38   :  { %234 = vmatmul.f32.vlgmr.msra.gmra.mxu2 %v233_v34  ;;  %3985 = vmatpush.msra.mxu3 %v260_v31 }
  0x39   :  { %303 = vmatpush.msrb.mxu2 %v263_v15  ;;  %261 = vmatpush.msra.mxu1 %v260_v31 }
  0x3a   :  { %3986 = vmatpush.msra.mxu3 %v266_v35  ;;  %226 = vmatmul.f32.vlgmr.msra.gmra.mxu0 %v225_v36 }
  0x3b   :  { %306 = vmatpush.msrb.mxu2 %v269_v16  ;;  %267 = vmatpush.msra.mxu1 %v266_v35 }
  0x3c   :  { %3987 = vmatpush.msra.mxu3 %v272_v37  ;;  %374 = vmatpush.msrb.mxu0 %v264_v21 }
  0x3d   :  { %279 = vmatmul.f32.vlgmr.msra.gmra.mxu3 %v4472_v13  ;;  %273 = vmatpush.msra.mxu1 %v272_v37 }
  0x3e   :  { %331 = vmatpush.msrb.mxu3 %v213_v3  ;;  %275 = vmatmul.f32.vlgmr.msra.gmra.mxu1 %v221_v17 }
  0x3f   :  { %401 = vmatpush.msrb.mxu1 %v213_v3  ;;  %378 = vmatpush.msrb.mxu0 %v270_v22 }
  0x40   :  { %309 = vmatmul.f32.vlgmr.msrb.gmra.mxu2 %v222_v23  ;;  %333 = vmatpush.msrb.mxu3 %v4455_v4 }
  0x41   :  { %403 = vmatpush.msrb.mxu1 %v4455_v4 }
  0x42   :  { %335 = vmatpush.msrb.mxu3 %v4457_v5  ;;  %380 = vmatmul.f32.vlgmr.msrb.gmra.mxu0 %v221_v17 }
  0x43   :  { %405 = vmatpush.msrb.mxu1 %v4457_v5 }
  0x44   :  { %337 = vmatpush.msrb.mxu3 %v4468_v9 }
  0x45   :  { %341 = vmatmul.f32.vlgmr.msrb.gmra.mxu3 %v223_v28  ;;  %407 = vmatpush.msrb.mxu1 %v4468_v9 }
  0x46   :  { %409 = vmatmul.f32.vlgmr.msrb.gmra.mxu1 %v221_v17 }
  0x48   :  { %314 = vmatmul.f32.gmra.mxu2 %v230_v19 }
  0x4a   :  { %384 = vmatmul.f32.gmra.mxu0 %v4472_v13 }
  0x4d   :  { %347 = vmatmul.f32.gmra.mxu3 %v231_v25 }
  0x4e   :  { %413 = vmatmul.f32.gmra.mxu1 %v4472_v13 }
  0xb7   :  { %v227_v38 = vpop.f32.mrf.mxu0 }
  0xb8   :  { %v228_v41 = vadd.f32 %v4493_v39, %v227_v38 }
  0xbb   :  { %v4495_v40 = vpop.f32.mrf.mxu2  ;;  %v276_v42 = vpop.f32.mrf.mxu1 }
  0xbc   :  { %v277_v44 = vadd.f32 %v276_v42, %v228_v41 }
  0xbf   :  { %v381_v48 = vpop.f32.mrf.mxu0 }
  0xc0   :  { %v4498_v43 = vpop.f32.mrf.mxu3 }
  0xc3   :  { %v310_v45 = vpop.f32.mrf.mxu2  ;;  %v410_v50 = vpop.f32.mrf.mxu1 }
  0xc4   :  { %v311_v46 = vadd.f32 %v310_v45, %v277_v44 }
  0xc7   :  { %v4515_v6 = vpop.f32.mrf.mxu0 }
  0xc8   :  { %v342_v47 = vpop.f32.mrf.mxu3 }
  0xc9   :  { %v343_v49 = vadd.f32 %v342_v47, %v311_v46 }
  0xcb   :  { %v382_v51 = vadd.f32 %v381_v48, %v343_v49  ;;  %v4511_v2 = vpop.f32.mrf.mxu2  ;;  %v4517_v8 = vpop.f32.mrf.mxu1 }
  0xcd   :  { %v4500_v52 = vadd.f32 %v410_v50, %v382_v51 }
  0xcf   :  { %750 = vrot.lane.b32.xlu2 %v4500_v52, %s4330_s1  ;;  %418 = vrot.lane.b32.xlu0 %v4500_v52, %s4331_s24  ;;  %v421_v53 = vsel %vm420_vm1, %v4500_v52, 0 }
  0xd0   :  { %v442_v54 = vand.u32 4294901760, %v421_v53  ;;  %v4513_v3 = vpop.f32.mrf.mxu3 }
  0xd2   :  { %v443_v55 = vsub.f32 %v421_v53, %v442_v54 }
  0xd4   :  { %v444_v56 = vand.u32 4294901760, %v443_v55 }
  0xd6   :  { %v445_v59 = vsub.f32 %v443_v55, %v444_v56 }
  0xd7   :  { %748 = vrot.lane.b32.xlu2 %v4500_v52, %s4332_s4 }
  0xd8   :  { %v446_v62 = vand.u32 4294901760, %v445_v59 }
 0x129   :  { %v751_v25 = vpop.permute.xlu2 %750 }
 0x12a   :  { %v754_v27 = vsel %vm420_vm1, %v751_v25, 0 }
 0x12b   :  { %v771_v30 = vand.u32 4294901760, %v754_v27 }
 0x12d   :  { %v798_v36 = vsub.f32 %v754_v27, %v771_v30 }
 0x12f   :  { %v799_v45 = vand.u32 4294901760, %v798_v36 }
 0x131   :  { %v749_v34 = vpop.permute.xlu2 %748  ;;  %v800_v49 = vsub.f32 %v798_v36, %v799_v45 }
 0x132   :  { %v752_v41 = vsel %vm420_vm1, %v749_v34, 0 }
 0x133   :  { %v773_v46 = vand.u32 4294901760, %v752_v41 }
 0x135   :  { %v774_v51 = vsub.f32 %v752_v41, %v773_v46 }
 0x141   :  { %v419_v57 = vpop.permute.xlu0 %418 }
 0x142   :  { %v423_v58 = vsel %vm420_vm1, %v419_v57, 0  ;;  %v801_v57 = vand.u32 4294901760, %v800_v49 }
 0x143   :  { %v440_v60 = vand.u32 4294901760, %v423_v58 }
 0x145   :  { %v467_v61 = vsub.f32 %v423_v58, %v440_v60  ;;  %441 = vmatpush.xpose.msra.mxu2 %v440_v60  ;;  %565 = vmatpush.xpose.msra.mxu1 %v440_v60 }
 0x147   :  { %v468_v63 = vand.u32 4294901760, %v467_v61 }
 0x148   :  { %447 = vmatmul.f32.vlgmr.msra.gmra.mxu2 %v446_v62  ;;  %567 = vmatmul.f32.vlgmr.msra.gmra.mxu1 %v442_v54 }
 0x149   :  { %494 = vmatpush.xpose.msrb.mxu2 %v467_v61  ;;  %v469_v0 = vsub.f32 %v467_v61, %v468_v63  ;;  %543 = vmatpush.xpose.msra.mxu0 %v468_v63  ;;  %v775_v61 = vand.u32 4294901760, %v774_v51 }
 0x14b   :  { %v470_v1 = vand.u32 4294901760, %v469_v0 }
 0x14c   :  { %545 = vmatmul.f32.vlgmr.msra.gmra.mxu0 %v442_v54 }
 0x14d   :  { %471 = vmatpush.xpose.msra.mxu3 %v470_v1 }
 0x150   :  { %473 = vmatmul.f32.vlgmr.msra.gmra.mxu3 %v442_v54  ;;  %497 = vmatmul.f32.vlgmr.msrb.gmra.mxu2 %v443_v55 }
 0x151   :  { %517 = vmatpush.xpose.msrb.mxu3 %v440_v60 }
 0x158   :  { %521 = vmatmul.f32.vlgmr.msrb.gmra.mxu3 %v444_v56 }
 0x1c5   :  { %v568_v15 = vpop.f32.mrf.mxu1 }
 0x1c9   :  { %v546_v13 = vpop.f32.mrf.mxu0 }
 0x1cb   :  { %v448_v4 = vpop.f32.mrf.mxu2 }
 0x1d3   :  { %v474_v5 = vpop.f32.mrf.mxu3  ;;  %v498_v9 = vpop.f32.mrf.mxu2 }
 0x1d4   :  { %v475_v7 = vadd.f32 %v474_v5, %v448_v4  ;;  %v776_v4 = vsub.f32 %v774_v51, %v775_v61 }
 0x1d6   :  { %v499_v10 = vadd.f32 %v498_v9, %v475_v7  ;;  %v777_v9 = vand.u32 4294901760, %v776_v4 }
 0x1db   :  { %v522_v11 = vpop.f32.mrf.mxu3 }
 0x1dc   :  { %v523_v12 = vadd.f32 %v522_v11, %v499_v10 }
 0x1de   :  { %v547_v14 = vadd.f32 %v546_v13, %v523_v12 }
 0x1e0   :  { %v569_v16 = vadd.f32 %v568_v15, %v547_v14 }
 0x1e2   :  { %v571_v17 = vmul.f32 0.35355338, %v569_v16 }
 0x1e4   :  { %v572_v18 = vsel %vm420_vm1, %v571_v17, -inf }
 0x1e5   :  { %573 = vmax.xlane.f32.xlu0 %v572_v18 }
 0x1f9   :  { %927 = vrot.lane.b32.xlu0 %v4500_v52, %s4333_s25 }
 0x201   :  { %1079 = vrot.lane.b32.xlu0 %v4500_v52, %s4334_s5 }
 0x258   :  { %v574_v19 = vpop.xlane.xlu0 %573 }
 0x259   :  { %v575_v20 = vsub.f32 %v571_v17, %v574_v19 }
 0x25b   :  { %v576_v21 = vmul.f32 1.442695, %v575_v20 }
 0x25d   :  { %4022 = vpow2.f32 %v576_v21 }
 0x263   :  { %v4023_v22 = vpop.eup %4022 }
 0x264   :  { %v578_v23 = vsel %vm420_vm1, %v4023_v22, 0.0 }
 0x265   :  { %579 = vadd.xlane.f32.xlu1 %v578_v23 }
 0x26b   :  { %v928_v53 = vpop.permute.xlu0 %927 }
 0x26c   :  { %v948_v58 = vand.u32 4294901760, %v928_v53 }
 0x26e   :  { %v975_v0 = vsub.f32 %v928_v53, %v948_v58 }
 0x270   :  { %v976_v7 = vand.u32 4294901760, %v975_v0 }
 0x272   :  { %v977_v10 = vsub.f32 %v975_v0, %v976_v7 }
 0x273   :  { %v1080_v49 = vpop.permute.xlu0 %1079 }
 0x274   :  { %v978_v11 = vand.u32 4294901760, %v977_v10 }
 0x27e   :  { %596 = vrot.lane.b32.xlu1 %v4500_v52, %s4335_s26 }
 0x2d8   :  { %v580_v24 = vpop.xlane.xlu1 %579 }
 0x2d9   :  { %4024 = vrcp.f32 %v580_v24  ;;  %v592_v31 = vand.u32 2147483648, %v580_v24  ;;  %v590_v33 = vand.u32 2147483647, %v580_v24  ;;  %vm586_vm3 = vweird.f32 %v580_v24 }
 0x2db   :  { %v593_v37 = vor.u32 1.1754944e-38, %v592_v31  ;;  %vm591_vm5 = vcmp.eq.f32.partialorder %v590_v33, 8.507059e+37 }
 0x2df   :  { %v4025_v26 = vpop.eup %4024 }
 0x2e0   :  { %v582_v28 = vmul.f32 %v4025_v26, %v580_v24  ;;  %vm587_vm2 = vweird.f32 %v4025_v26 }
 0x2e1   :  { %vm588_vm4 = vmor %vm586_vm3, %vm587_vm2 }
 0x2e2   :  { %v583_v29 = vsub.f32 1.0, %v582_v28 }
 0x2e4   :  { %v584_v32 = vmul.f32 %v4025_v26, %v583_v29 }
 0x2e6   :  { %v585_v35 = vadd.f32 %v4025_v26, %v584_v32 }
 0x2e8   :  { %v589_v38 = vsel %vm588_vm4, %v4025_v26, %v585_v35 }
 0x2e9   :  { %v594_v42 = vsel %vm591_vm5, %v593_v37, %v589_v38 }
 0x2ea   :  { %v595_v44 = vmul.f32 %v4023_v22, %v594_v42 }
 0x2ec   :  { %v600_v47 = vsel %vm420_vm1, %v595_v44, 0 }
 0x2ed   :  { %v619_v48 = vand.u32 4294901760, %v600_v47 }
 0x2ef   :  { %v620_v50 = vsub.f32 %v600_v47, %v619_v48 }
 0x2f0   :  { %v597_v54 = vpop.permute.xlu1 %596 }
 0x2f1   :  { %v617_v55 = vand.u32 4294901760, %v597_v54  ;;  %v621_v56 = vand.u32 4294901760, %v620_v50 }
 0x2f3   :  { %v644_v59 = vsub.f32 %v597_v54, %v617_v55  ;;  %618 = vmatpush.msra.mxu2 %v617_v55  ;;  %694 = vmatpush.msrb.mxu1 %v617_v55  ;;  %v622_v60 = vsub.f32 %v620_v50, %v621_v56  ;;  %v1083_v54 = vsel %vm420_vm1, %v1080_v49, 0 }
 0x2f4   :  { %698 = vmatmul.f32.vlgmr.msrb.gmra.mxu1 %v621_v56 }
 0x2f5   :  { %v645_v62 = vand.u32 4294901760, %v644_v59  ;;  %802 = vmatpush.xpose.msra.mxu1 %v801_v57  ;;  %671 = vmatpush.msrb.mxu0 %v644_v59  ;;  %v623_v63 = vand.u32 4294901760, %v622_v60 }
 0x2f6   :  { %674 = vmatmul.f32.vlgmr.msrb.gmra.mxu0 %v620_v50 }
 0x2f7   :  { %v646_v1 = vsub.f32 %v644_v59, %v645_v62  ;;  %772 = vmatpush.xpose.msra.mxu0 %v771_v30  ;;  %624 = vmatmul.f32.vlgmr.msra.gmra.mxu2 %v623_v63  ;;  %v1104_v59 = vand.u32 4294901760, %v1083_v54 }
 0x2f8   :  { %720 = vmatpush.msrb.mxu2 %v645_v62 }
 0x2f9   :  { %896 = vmatpush.xpose.msrb.mxu1 %v771_v30  ;;  %v647_v5 = vand.u32 4294901760, %v646_v1  ;;  %v1105_v1 = vsub.f32 %v1083_v54, %v1104_v59 }
 0x2fa   :  { %825 = vmatpush.xpose.msra.mxu2 %v798_v36 }
 0x2fb   :  { %874 = vmatpush.xpose.msrb.mxu0 %v799_v45  ;;  %648 = vmatpush.msra.mxu3 %v647_v5 }
 0x2fc   :  { %650 = vmatmul.f32.vlgmr.msra.gmra.mxu3 %v619_v48  ;;  %804 = vmatmul.f32.vlgmr.msra.gmra.mxu1 %v773_v46 }
 0x2fd   :  { %742 = vmatpush.msrb.mxu3 %v617_v55  ;;  %1025 = vmatpush.msra.mxu1 %v948_v58 }
 0x2fe   :  { %778 = vmatmul.f32.vlgmr.msra.gmra.mxu0 %v777_v9  ;;  %v1106_v9 = vand.u32 4294901760, %v1105_v1 }
 0x2ff   :  { %848 = vmatpush.xpose.msra.mxu3 %v771_v30  ;;  %1002 = vmatpush.msra.mxu0 %v975_v0 }
 0x300   :  { %722 = vmatmul.f32.vlgmr.msrb.gmra.mxu2 %v619_v48 }
 0x301   :  { %949 = vmatpush.msrb.mxu2 %v948_v58 }
 0x304   :  { %744 = vmatmul.f32.vlgmr.msrb.gmra.mxu3 %v619_v48  ;;  %898 = vmatmul.f32.vlgmr.msrb.gmra.mxu1 %v773_v46 }
 0x305   :  { %979 = vmatpush.msrb.mxu3 %v978_v11 }
 0x306   :  { %876 = vmatmul.f32.vlgmr.msrb.gmra.mxu0 %v773_v46 }
 0x308   :  { %828 = vmatmul.f32.vlgmr.msra.gmra.mxu2 %v774_v51 }
 0x309   :  { %1051 = vmatpush.msra.mxu2 %v976_v7 }
 0x30c   :  { %852 = vmatmul.f32.vlgmr.msra.gmra.mxu3 %v775_v61 }
 0x30d   :  { %1073 = vmatpush.msra.mxu3 %v948_v58 }
 0x371   :  { %v4534_v14 = vpop.f32.mrf.mxu1 }
 0x373   :  { %v4532_v13 = vpop.f32.mrf.mxu0 }
 0x379   :  { %v805_v19 = vpop.f32.mrf.mxu1 }
 0x37a   :  { %v4530_v12 = vpop.f32.mrf.mxu2 }
 0x37b   :  { %v779_v17 = vpop.f32.mrf.mxu0 }
 0x37c   :  { %v806_v21 = vadd.f32 %v805_v19, %v779_v17  ;;  %v1107_v19 = vsub.f32 %v1105_v1, %v1106_v9 }
 0x37f   :  { %v4536_v15 = vpop.f32.mrf.mxu3 }
 0x381   :  { %v899_v27 = vpop.f32.mrf.mxu1 }
 0x383   :  { %v4538_v16 = vpop.f32.mrf.mxu2  ;;  %v877_v25 = vpop.f32.mrf.mxu0 }
 0x387   :  { %v4540_v18 = vpop.f32.mrf.mxu3 }
 0x38b   :  { %v829_v20 = vpop.f32.mrf.mxu2 }
 0x38c   :  { %v830_v22 = vadd.f32 %v829_v20, %v806_v21 }
 0x38f   :  { %v853_v23 = vpop.f32.mrf.mxu3 }
 0x390   :  { %v854_v24 = vadd.f32 %v853_v23, %v830_v22  ;;  %v1108_v23 = vand.u32 4294901760, %v1107_v19 }
 0x392   :  { %v878_v26 = vadd.f32 %v877_v25, %v854_v24 }
 0x394   :  { %v900_v28 = vadd.f32 %v899_v27, %v878_v26 }
 0x396   :  { %v902_v29 = vmul.f32 0.35355338, %v900_v28 }
 0x398   :  { %v903_v30 = vsel %vm420_vm1, %v902_v29, -inf }
 0x399   :  { %904 = vmax.xlane.f32.xlu2 %v903_v30 }
 0x3b1   :  { %1081 = vrot.lane.b32.xlu2 %v4500_v52, %s4336_s27 }
 0x3b9   :  { %1258 = vrot.lane.b32.xlu2 %v4500_v52, %s4337_s28 }
 0x3c1   :  { %1410 = vrot.lane.b32.xlu2 %v4500_v52, %s4338_s6 }
 0x40c   :  { %v905_v31 = vpop.xlane.xlu2 %904 }
 0x40d   :  { %v906_v32 = vsub.f32 %v902_v29, %v905_v31 }
 0x40f   :  { %v907_v33 = vmul.f32 1.442695, %v906_v32 }
 0x411   :  { %4026 = vpow2.f32 %v907_v33 }
 0x414   :  { %v1082_v34 = vpop.permute.xlu2 %1081 }
 0x415   :  { %v1085_v35 = vsel %vm420_vm1, %v1082_v34, 0 }
 0x416   :  { %v1102_v36 = vand.u32 4294901760, %v1085_v35 }
 0x417   :  { %v4027_v37 = vpop.eup %4026 }
 0x418   :  { %v1129_v38 = vsub.f32 %v1085_v35, %v1102_v36  ;;  %1103 = vmatpush.xpose.msrb.mxu0 %v1102_v36  ;;  %v909_v41 = vsel %vm420_vm1, %v4027_v37, 0.0 }
 0x419   :  { %910 = vadd.xlane.f32.xlu1 %v909_v41 }
 0x41a   :  { %v1130_v42 = vand.u32 4294901760, %v1129_v38 }
 0x41c   :  { %v1131_v44 = vsub.f32 %v1129_v38, %v1130_v42  ;;  %v1259_v51 = vpop.permute.xlu2 %1258 }
 0x41d   :  { %v1279_v57 = vand.u32 4294901760, %v1259_v51 }
 0x41e   :  { %v1132_v45 = vand.u32 4294901760, %v1131_v44 }
 0x41f   :  { %v1306_v63 = vsub.f32 %v1259_v51, %v1279_v57 }
 0x420   :  { %1133 = vmatpush.xpose.msrb.mxu1 %v1132_v45 }
 0x421   :  { %v1307_v7 = vand.u32 4294901760, %v1306_v63 }
 0x423   :  { %v1308_v17 = vsub.f32 %v1306_v63, %v1307_v7 }
 0x425   :  { %v1309_v22 = vand.u32 4294901760, %v1308_v17 }
 0x48c   :  { %v911_v46 = vpop.xlane.xlu1 %910 }
 0x48d   :  { %4028 = vrcp.f32 %v911_v46  ;;  %v923_v53 = vand.u32 2147483648, %v911_v46  ;;  %v921_v56 = vand.u32 2147483647, %v911_v46  ;;  %vm917_vm7 = vweird.f32 %v911_v46 }
 0x48f   :  { %v924_v60 = vor.u32 1.1754944e-38, %v923_v53  ;;  %vm922_vm9 = vcmp.eq.f32.partialorder %v921_v56, 8.507059e+37 }
 0x493   :  { %v4029_v47 = vpop.eup %4028 }
 0x494   :  { %v913_v48 = vmul.f32 %v4029_v47, %v911_v46  ;;  %vm918_vm6 = vweird.f32 %v4029_v47 }
 0x495   :  { %vm919_vm8 = vmor %vm917_vm7, %vm918_vm6 }
 0x496   :  { %v914_v50 = vsub.f32 1.0, %v913_v48 }
 0x498   :  { %v915_v55 = vmul.f32 %v4029_v47, %v914_v50 }
 0x49a   :  { %v916_v58 = vadd.f32 %v4029_v47, %v915_v55 }
 0x49c   :  { %v920_v61 = vsel %vm919_vm8, %v4029_v47, %v916_v58 }
 0x49d   :  { %v925_v62 = vsel %vm922_vm9, %v924_v60, %v920_v61 }
 0x49e   :  { %v926_v0 = vmul.f32 %v4027_v37, %v925_v62  ;;  %v1411_v62 = vpop.permute.xlu2 %1410 }
 0x4a0   :  { %v931_v4 = vsel %vm420_vm1, %v926_v0, 0 }
 0x4a1   :  { %v950_v5 = vand.u32 4294901760, %v931_v4 }
 0x4a3   :  { %981 = vmatmul.f32.vlgmr.msrb.gmra.mxu3 %v950_v5  ;;  %v951_v10 = vsub.f32 %v931_v4, %v950_v5 }
 0x4a4   :  { %1179 = vmatpush.xpose.msrb.mxu3 %v1102_v36 }
 0x4a5   :  { %1005 = vmatmul.f32.vlgmr.msra.gmra.mxu0 %v951_v10  ;;  %v952_v11 = vand.u32 4294901760, %v951_v10 }
 0x4a6   :  { %1205 = vmatpush.xpose.msra.mxu0 %v1130_v42 }
 0x4a7   :  { %1029 = vmatmul.f32.vlgmr.msra.gmra.mxu1 %v952_v11  ;;  %v953_v20 = vsub.f32 %v951_v10, %v952_v11 }
 0x4a8   :  { %1227 = vmatpush.xpose.msra.mxu1 %v1102_v36 }
 0x4a9   :  { %v954_v21 = vand.u32 4294901760, %v953_v20 }
 0x4ab   :  { %955 = vmatmul.f32.vlgmr.msrb.gmra.mxu2 %v954_v21  ;;  %1075 = vmatmul.f32.vlgmr.msra.gmra.mxu3 %v950_v5 }
 0x4ac   :  { %1156 = vmatpush.xpose.msrb.mxu2 %v1129_v38  ;;  %1310 = vmatpush.msra.mxu3 %v1309_v22 }
 0x4ad   :  { %1109 = vmatmul.f32.vlgmr.msrb.gmra.mxu0 %v1108_v23 }
 0x4ae   :  { %1333 = vmatpush.msrb.mxu0 %v1306_v63 }
 0x4af   :  { %1135 = vmatmul.f32.vlgmr.msrb.gmra.mxu1 %v1104_v59 }
 0x4b0   :  { %1356 = vmatpush.msrb.mxu1 %v1279_v57 }
 0x4b3   :  { %1053 = vmatmul.f32.vlgmr.msra.gmra.mxu2 %v950_v5  ;;  %1183 = vmatmul.f32.vlgmr.msrb.gmra.mxu3 %v1106_v9 }
 0x4b4   :  { %1280 = vmatpush.msra.mxu2 %v1279_v57  ;;  %1404 = vmatpush.msrb.mxu3 %v1279_v57 }
 0x4b5   :  { %1207 = vmatmul.f32.vlgmr.msra.gmra.mxu0 %v1104_v59 }
 0x4b7   :  { %1229 = vmatmul.f32.vlgmr.msra.gmra.mxu1 %v1104_v59 }
 0x4bb   :  { %1159 = vmatmul.f32.vlgmr.msrb.gmra.mxu2 %v1105_v1  ;;  %v1414_v1 = vsel %vm420_vm1, %v1411_v62, 0 }
 0x4bc   :  { %1382 = vmatpush.msrb.mxu2 %v1307_v7  ;;  %v1435_v9 = vand.u32 4294901760, %v1414_v1 }
 0x4be   :  { %v1436_v19 = vsub.f32 %v1414_v1, %v1435_v9 }
 0x522   :  { %v4555_v25 = vpop.f32.mrf.mxu0 }
 0x524   :  { %v4559_v27 = vpop.f32.mrf.mxu1 }
 0x526   :  { %v4553_v24 = vpop.f32.mrf.mxu3 }
 0x52a   :  { %v1110_v30 = vpop.f32.mrf.mxu0 }
 0x52c   :  { %v1136_v31 = vpop.f32.mrf.mxu1 }
 0x52d   :  { %v1137_v32 = vadd.f32 %v1136_v31, %v1110_v30  ;;  %v1437_v31 = vand.u32 4294901760, %v1436_v19 }
 0x52e   :  { %v4557_v26 = vpop.f32.mrf.mxu2  ;;  %v4561_v28 = vpop.f32.mrf.mxu3 }
 0x532   :  { %v1208_v37 = vpop.f32.mrf.mxu0 }
 0x534   :  { %v1230_v41 = vpop.f32.mrf.mxu1 }
 0x536   :  { %v4563_v29 = vpop.f32.mrf.mxu2  ;;  %v1184_v35 = vpop.f32.mrf.mxu3 }
 0x53e   :  { %v1160_v33 = vpop.f32.mrf.mxu2 }
 0x53f   :  { %v1161_v34 = vadd.f32 %v1160_v33, %v1137_v32 }
 0x541   :  { %v1185_v36 = vadd.f32 %v1184_v35, %v1161_v34 }
 0x543   :  { %v1209_v38 = vadd.f32 %v1208_v37, %v1185_v36  ;;  %v1438_v36 = vsub.f32 %v1436_v19, %v1437_v31 }
 0x545   :  { %v1231_v42 = vadd.f32 %v1230_v41, %v1209_v38 }
 0x547   :  { %v1233_v44 = vmul.f32 0.35355338, %v1231_v42  ;;  %v1439_v42 = vand.u32 4294901760, %v1438_v36 }
 0x549   :  { %v1234_v45 = vsel %vm420_vm1, %v1233_v44, -inf }
 0x54a   :  { %1235 = vmax.xlane.f32.xlu1 %v1234_v45 }
 0x563   :  { %1412 = vrot.lane.b32.xlu1 %v4500_v52, %s4339_s29 }
 0x5bd   :  { %v1236_v46 = vpop.xlane.xlu1 %1235 }
 0x5be   :  { %v1237_v47 = vsub.f32 %v1233_v44, %v1236_v46 }
 0x5c0   :  { %v1238_v48 = vmul.f32 1.442695, %v1237_v47 }
 0x5c2   :  { %4030 = vpow2.f32 %v1238_v48 }
 0x5c8   :  { %v4031_v49 = vpop.eup %4030 }
 0x5c9   :  { %v1240_v50 = vsel %vm420_vm1, %v4031_v49, 0.0 }
 0x5ca   :  { %1241 = vadd.xlane.f32.xlu0 %v1240_v50 }
 0x5d5   :  { %v1413_v51 = vpop.permute.xlu1 %1412 }
 0x5d6   :  { %v1416_v53 = vsel %vm420_vm1, %v1413_v51, 0 }
 0x5d7   :  { %v1433_v54 = vand.u32 4294901760, %v1416_v53 }
 0x5d9   :  { %v1460_v55 = vsub.f32 %v1416_v53, %v1433_v54  ;;  %1434 = vmatpush.xpose.msra.mxu0 %v1433_v54 }
 0x5db   :  { %v1461_v56 = vand.u32 4294901760, %v1460_v55 }
 0x5dd   :  { %v1462_v57 = vsub.f32 %v1460_v55, %v1461_v56 }
 0x5de   :  { %1589 = vrot.lane.b32.xlu0 %v4500_v52, %s4340_s30 }
 0x5df   :  { %v1463_v58 = vand.u32 4294901760, %v1462_v57 }
 0x5e1   :  { %1464 = vmatpush.xpose.msra.mxu1 %v1463_v58 }
 0x63d   :  { %v1242_v59 = vpop.xlane.xlu0 %1241 }
 0x63e   :  { %4032 = vrcp.f32 %v1242_v59  ;;  %v1254_v0 = vand.u32 2147483648, %v1242_v59  ;;  %v1252_v5 = vand.u32 2147483647, %v1242_v59  ;;  %vm1248_vm11 = vweird.f32 %v1242_v59 }
 0x640   :  { %v1255_v10 = vor.u32 1.1754944e-38, %v1254_v0  ;;  %vm1253_vm13 = vcmp.eq.f32.partialorder %v1252_v5, 8.507059e+37 }
 0x644   :  { %v4033_v60 = vpop.eup %4032 }
 0x645   :  { %v1244_v61 = vmul.f32 %v4033_v60, %v1242_v59  ;;  %vm1249_vm10 = vweird.f32 %v4033_v60 }
 0x646   :  { %vm1250_vm12 = vmor %vm1248_vm11, %vm1249_vm10 }
 0x647   :  { %v1245_v63 = vsub.f32 1.0, %v1244_v61 }
 0x649   :  { %v1246_v4 = vmul.f32 %v4033_v60, %v1245_v63 }
 0x64b   :  { %v1247_v7 = vadd.f32 %v4033_v60, %v1246_v4 }
 0x64d   :  { %v1251_v52 = vsel %vm1250_vm12, %v4033_v60, %v1247_v7 }
 0x64e   :  { %v1256_v11 = vsel %vm1253_vm13, %v1255_v10, %v1251_v52 }
 0x64f   :  { %v1257_v17 = vmul.f32 %v4031_v49, %v1256_v11 }
 0x650   :  { %v1590_v20 = vpop.permute.xlu0 %1589 }
 0x651   :  { %v1610_v21 = vand.u32 4294901760, %v1590_v20  ;;  %v1262_v22 = vsel %vm420_vm1, %v1257_v17, 0 }
 0x652   :  { %v1281_v23 = vand.u32 4294901760, %v1262_v22 }
 0x653   :  { %v1637_v30 = vsub.f32 %v1590_v20, %v1610_v21 }
 0x654   :  { %1312 = vmatmul.f32.vlgmr.msra.gmra.mxu3 %v1281_v23  ;;  %v1282_v32 = vsub.f32 %v1262_v22, %v1281_v23 }
 0x655   :  { %v1638_v33 = vand.u32 4294901760, %v1637_v30  ;;  %1510 = vmatpush.xpose.msra.mxu3 %v1433_v54 }
 0x656   :  { %1336 = vmatmul.f32.vlgmr.msrb.gmra.mxu0 %v1282_v32  ;;  %v1283_v34 = vand.u32 4294901760, %v1282_v32 }
 0x657   :  { %v1639_v35 = vsub.f32 %v1637_v30, %v1638_v33  ;;  %1536 = vmatpush.xpose.msrb.mxu0 %v1461_v56 }
 0x658   :  { %1360 = vmatmul.f32.vlgmr.msrb.gmra.mxu1 %v1283_v34  ;;  %v1284_v37 = vsub.f32 %v1282_v32, %v1283_v34 }
 0x659   :  { %v1640_v38 = vand.u32 4294901760, %v1639_v35  ;;  %1558 = vmatpush.xpose.msrb.mxu1 %v1433_v54 }
 0x65a   :  { %v1285_v41 = vand.u32 4294901760, %v1284_v37 }
 0x65c   :  { %1286 = vmatmul.f32.vlgmr.msra.gmra.mxu2 %v1285_v41  ;;  %1406 = vmatmul.f32.vlgmr.msrb.gmra.mxu3 %v1281_v23 }
 0x65d   :  { %1487 = vmatpush.xpose.msra.mxu2 %v1460_v55  ;;  %1641 = vmatpush.msrb.mxu3 %v1640_v38 }
 0x65e   :  { %1440 = vmatmul.f32.vlgmr.msra.gmra.mxu0 %v1439_v42 }
 0x65f   :  { %1664 = vmatpush.msra.mxu0 %v1637_v30 }
 0x660   :  { %1466 = vmatmul.f32.vlgmr.msra.gmra.mxu1 %v1435_v9 }
 0x661   :  { %1687 = vmatpush.msra.mxu1 %v1610_v21 }
 0x664   :  { %1384 = vmatmul.f32.vlgmr.msrb.gmra.mxu2 %v1281_v23  ;;  %1514 = vmatmul.f32.vlgmr.msra.gmra.mxu3 %v1437_v31 }
 0x665   :  { %1611 = vmatpush.msrb.mxu2 %v1610_v21  ;;  %1735 = vmatpush.msra.mxu3 %v1610_v21 }
 0x666   :  { %1538 = vmatmul.f32.vlgmr.msrb.gmra.mxu0 %v1435_v9 }
 0x668   :  { %1560 = vmatmul.f32.vlgmr.msrb.gmra.mxu1 %v1435_v9  ;;  %v236_v9 = vadd.f32 %v4493_v39, %v4495_v40 }
 0x66a   :  { %v281_v10 = vadd.f32 %v4498_v43, %v236_v9 }
 0x66c   :  { %1490 = vmatmul.f32.vlgmr.msra.gmra.mxu2 %v1436_v19  ;;  %v316_v52 = vadd.f32 %v4511_v2, %v281_v10 }
 0x66d   :  { %1713 = vmatpush.msra.mxu2 %v1638_v33 }
 0x66e   :  { %v349_v11 = vadd.f32 %v4513_v3, %v316_v52 }
 0x670   :  { %v386_v17 = vadd.f32 %v4515_v6, %v349_v11 }
 0x672   :  { %v4584_v19 = vadd.f32 %v4517_v8, %v386_v17 }
 0x674   :  { %v1761_v38 = vsel %vm420_vm1, %v4584_v19, 0 }
 0x6d3   :  { %v1337_v45 = vpop.f32.mrf.mxu0 }
 0x6d5   :  { %v1361_v48 = vpop.f32.mrf.mxu1 }
 0x6d7   :  { %v1313_v44 = vpop.f32.mrf.mxu3 }
 0x6db   :  { %v1441_v55 = vpop.f32.mrf.mxu0 }
 0x6dd   :  { %v1467_v57 = vpop.f32.mrf.mxu1 }
 0x6de   :  { %v1468_v58 = vadd.f32 %v1467_v57, %v1441_v55 }
 0x6df   :  { %v1287_v46 = vpop.f32.mrf.mxu2  ;;  %v1407_v51 = vpop.f32.mrf.mxu3 }
 0x6e0   :  { %v1314_v47 = vadd.f32 %v1313_v44, %v1287_v46  ;;  %v1782_v44 = vand.u32 4294901760, %v1761_v38 }
 0x6e2   :  { %v1338_v49 = vadd.f32 %v1337_v45, %v1314_v47 }
 0x6e3   :  { %v1539_v63 = vpop.f32.mrf.mxu0 }
 0x6e4   :  { %v1362_v50 = vadd.f32 %v1361_v48, %v1338_v49  ;;  %v1783_v48 = vsub.f32 %v1761_v38, %v1782_v44 }
 0x6e5   :  { %v1561_v1 = vpop.f32.mrf.mxu1 }
 0x6e7   :  { %v1385_v53 = vpop.f32.mrf.mxu2  ;;  %v1515_v61 = vpop.f32.mrf.mxu3 }
 0x6e8   :  { %v1386_v54 = vadd.f32 %v1385_v53, %v1362_v50  ;;  %v1784_v53 = vand.u32 4294901760, %v1783_v48 }
 0x6ea   :  { %v4574_v56 = vadd.f32 %v1407_v51, %v1386_v54  ;;  %v1785_v57 = vsub.f32 %v1783_v48, %v1784_v53 }
 0x6ef   :  { %v1491_v59 = vpop.f32.mrf.mxu2 }
 0x6f0   :  { %v1492_v60 = vadd.f32 %v1491_v59, %v1468_v58  ;;  %v1786_v59 = vand.u32 4294901760, %v1785_v57 }
 0x6f2   :  { %v1516_v62 = vadd.f32 %v1515_v61, %v1492_v60 }
 0x6f4   :  { %v1540_v0 = vadd.f32 %v1539_v63, %v1516_v62 }
 0x6f6   :  { %v1562_v4 = vadd.f32 %v1561_v1, %v1540_v0 }
 0x6f8   :  { %v1564_v5 = vmul.f32 0.35355338, %v1562_v4 }
 0x6fa   :  { %v1565_v7 = vsel %vm420_vm1, %v1564_v5, -inf }
 0x6fb   :  { %1566 = vmax.xlane.f32.xlu2 %v1565_v7 }
 0x713   :  { %1759 = vrot.lane.b32.xlu2 %v4584_v19, %s4331_s24 }
 0x71b   :  { %2090 = vrot.lane.b32.xlu2 %v4584_v19, %s4330_s1 }
 0x723   :  { %2088 = vrot.lane.b32.xlu2 %v4584_v19, %s4332_s4 }
 0x76e   :  { %v1567_v39 = vpop.xlane.xlu2 %1566 }
 0x76f   :  { %v1568_v40 = vsub.f32 %v1564_v5, %v1567_v39 }
 0x771   :  { %v1569_v43 = vmul.f32 1.442695, %v1568_v40 }
 0x773   :  { %4034 = vpow2.f32 %v1569_v43 }
 0x776   :  { %v1760_v2 = vpop.permute.xlu2 %1759 }
 0x777   :  { %v1763_v3 = vsel %vm420_vm1, %v1760_v2, 0 }
 0x778   :  { %v1780_v6 = vand.u32 4294901760, %v1763_v3 }
 0x779   :  { %v4035_v20 = vpop.eup %4034 }
 0x77a   :  { %v1807_v8 = vsub.f32 %v1763_v3, %v1780_v6  ;;  %1781 = vmatpush.xpose.msrb.mxu0 %v1780_v6  ;;  %v1571_v21 = vsel %vm420_vm1, %v4035_v20, 0.0 }
 0x77b   :  { %1572 = vadd.xlane.f32.xlu1 %v1571_v21 }
 0x77c   :  { %v1808_v22 = vand.u32 4294901760, %v1807_v8 }
 0x77e   :  { %v1809_v23 = vsub.f32 %v1807_v8, %v1808_v22 }
 0x780   :  { %v1810_v30 = vand.u32 4294901760, %v1809_v23 }
 0x782   :  { %1811 = vmatpush.xpose.msrb.mxu1 %v1810_v30 }
 0x7ee   :  { %v1573_v31 = vpop.xlane.xlu1 %1572 }
 0x7ef   :  { %4036 = vrcp.f32 %v1573_v31  ;;  %v1585_v35 = vand.u32 2147483648, %v1573_v31  ;;  %v1583_v37 = vand.u32 2147483647, %v1573_v31  ;;  %vm1579_vm15 = vweird.f32 %v1573_v31 }
 0x7f1   :  { %v1586_v42 = vor.u32 1.1754944e-38, %v1585_v35  ;;  %vm1584_vm3 = vcmp.eq.f32.partialorder %v1583_v37, 8.507059e+37  ;;  %v2091_v35 = vpop.permute.xlu2 %2090 }
 0x7f2   :  { %v2094_v37 = vsel %vm420_vm1, %v2091_v35, 0 }
 0x7f5   :  { %v4037_v32 = vpop.eup %4036 }
 0x7f6   :  { %v1575_v33 = vmul.f32 %v4037_v32, %v1573_v31  ;;  %vm1580_vm14 = vweird.f32 %v4037_v32 }
 0x7f7   :  { %vm1581_vm2 = vmor %vm1579_vm15, %vm1580_vm14 }
 0x7f8   :  { %v1576_v34 = vsub.f32 1.0, %v1575_v33 }
 0x7fa   :  { %v1577_v36 = vmul.f32 %v4037_v32, %v1576_v34 }
 0x7fc   :  { %v1578_v41 = vadd.f32 %v4037_v32, %v1577_v36 }
 0x7fe   :  { %v1582_v45 = vsel %vm1581_vm2, %v4037_v32, %v1578_v41 }
 0x7ff   :  { %v1587_v46 = vsel %vm1584_vm3, %v1586_v42, %v1582_v45  ;;  %v2111_v42 = vand.u32 4294901760, %v2094_v37 }
 0x800   :  { %v1588_v47 = vmul.f32 %v4035_v20, %v1587_v46 }
 0x802   :  { %v1593_v49 = vsel %vm420_vm1, %v1588_v47, 0  ;;  %v2089_v47 = vpop.permute.xlu2 %2088 }
 0x803   :  { %v1612_v50 = vand.u32 4294901760, %v1593_v49 }
 0x805   :  { %1643 = vmatmul.f32.vlgmr.msrb.gmra.mxu3 %v1612_v50  ;;  %v1613_v51 = vsub.f32 %v1593_v49, %v1612_v50  ;;  %v2138_v49 = vsub.f32 %v2094_v37, %v2111_v42 }
 0x806   :  { %1857 = vmatpush.xpose.msrb.mxu3 %v1780_v6 }
 0x807   :  { %1667 = vmatmul.f32.vlgmr.msra.gmra.mxu0 %v1613_v51  ;;  %v1614_v54 = vand.u32 4294901760, %v1613_v51  ;;  %v2139_v57 = vand.u32 4294901760, %v2138_v49 }
 0x808   :  { %1883 = vmatpush.xpose.msra.mxu0 %v1808_v22 }
 0x809   :  { %1691 = vmatmul.f32.vlgmr.msra.gmra.mxu1 %v1614_v54  ;;  %v1615_v55 = vsub.f32 %v1613_v51, %v1614_v54 }
 0x80a   :  { %1905 = vmatpush.xpose.msra.mxu1 %v1780_v6 }
 0x80b   :  { %v1616_v58 = vand.u32 4294901760, %v1615_v55 }
 0x80d   :  { %1617 = vmatmul.f32.vlgmr.msrb.gmra.mxu2 %v1616_v58  ;;  %1737 = vmatmul.f32.vlgmr.msra.gmra.mxu3 %v1612_v50 }
 0x80e   :  { %1834 = vmatpush.xpose.msrb.mxu2 %v1807_v8 }
 0x80f   :  { %1787 = vmatmul.f32.vlgmr.msrb.gmra.mxu0 %v1786_v59 }
 0x811   :  { %1813 = vmatmul.f32.vlgmr.msrb.gmra.mxu1 %v1782_v44 }
 0x815   :  { %1715 = vmatmul.f32.vlgmr.msra.gmra.mxu2 %v1612_v50  ;;  %1861 = vmatmul.f32.vlgmr.msrb.gmra.mxu3 %v1784_v53  ;;  %v2092_v53 = vsel %vm420_vm1, %v2089_v47, 0 }
 0x816   :  { %v2113_v58 = vand.u32 4294901760, %v2092_v53 }
 0x817   :  { %1885 = vmatmul.f32.vlgmr.msra.gmra.mxu0 %v1782_v44 }
 0x819   :  { %1907 = vmatmul.f32.vlgmr.msra.gmra.mxu1 %v1782_v44 }
 0x81d   :  { %1837 = vmatmul.f32.vlgmr.msrb.gmra.mxu2 %v1783_v48 }
 0x884   :  { %v1668_v61 = vpop.f32.mrf.mxu0 }
 0x886   :  { %v1692_v0 = vpop.f32.mrf.mxu1 }
 0x888   :  { %v1644_v60 = vpop.f32.mrf.mxu3 }
 0x88c   :  { %v1788_v10 = vpop.f32.mrf.mxu0 }
 0x88e   :  { %v1814_v11 = vpop.f32.mrf.mxu1 }
 0x88f   :  { %v1815_v17 = vadd.f32 %v1814_v11, %v1788_v10 }
 0x890   :  { %v1618_v62 = vpop.f32.mrf.mxu2  ;;  %v1738_v5 = vpop.f32.mrf.mxu3 }
 0x891   :  { %v1645_v63 = vadd.f32 %v1644_v60, %v1618_v62 }
 0x893   :  { %v1669_v1 = vadd.f32 %v1668_v61, %v1645_v63  ;;  %v2140_v61 = vsub.f32 %v2138_v49, %v2139_v57  ;;  %v2114_v63 = vsub.f32 %v2092_v53, %v2113_v58 }
 0x894   :  { %v1886_v3 = vpop.f32.mrf.mxu0 }
 0x895   :  { %v1693_v4 = vadd.f32 %v1692_v0, %v1669_v1  ;;  %v2115_v10 = vand.u32 4294901760, %v2114_v63 }
 0x896   :  { %v1908_v20 = vpop.f32.mrf.mxu1 }
 0x898   :  { %v1716_v7 = vpop.f32.mrf.mxu2  ;;  %v1862_v43 = vpop.f32.mrf.mxu3 }
 0x899   :  { %v1717_v9 = vadd.f32 %v1716_v7, %v1693_v4 }
 0x89b   :  { %v4597_v52 = vadd.f32 %v1738_v5, %v1717_v9  ;;  %v2141_v5 = vand.u32 4294901760, %v2140_v61 }
 0x8a0   :  { %v1838_v39 = vpop.f32.mrf.mxu2 }
 0x8a1   :  { %v1839_v40 = vadd.f32 %v1838_v39, %v1815_v17 }
 0x8a3   :  { %v1863_v2 = vadd.f32 %v1862_v43, %v1839_v40  ;;  %v2116_v40 = vsub.f32 %v2114_v63, %v2115_v10 }
 0x8a5   :  { %v1887_v6 = vadd.f32 %v1886_v3, %v1863_v2 }
 0x8a7   :  { %v1909_v8 = vadd.f32 %v1908_v20, %v1887_v6  ;;  %v2117_v20 = vand.u32 4294901760, %v2116_v40 }
 0x8a9   :  { %v1911_v21 = vmul.f32 0.35355338, %v1909_v8 }
 0x8ab   :  { %v1912_v22 = vsel %vm420_vm1, %v1911_v21, -inf }
 0x8ac   :  { %1913 = vmax.xlane.f32.xlu0 %v1912_v22 }
 0x91f   :  { %v1914_v23 = vpop.xlane.xlu0 %1913 }
 0x920   :  { %v1915_v30 = vsub.f32 %v1911_v21, %v1914_v23 }
 0x922   :  { %v1916_v31 = vmul.f32 1.442695, %v1915_v30 }
 0x924   :  { %4038 = vpow2.f32 %v1916_v31 }
 0x92a   :  { %v4039_v32 = vpop.eup %4038 }
 0x92b   :  { %v1918_v33 = vsel %vm420_vm1, %v4039_v32, 0.0 }
 0x92c   :  { %1919 = vadd.xlane.f32.xlu1 %v1918_v33 }
 0x945   :  { %1936 = vrot.lane.b32.xlu1 %v4584_v19, %s4335_s26 }
 0x94d   :  { %2267 = vrot.lane.b32.xlu1 %v4584_v19, %s4333_s25 }
 0x955   :  { %2419 = vrot.lane.b32.xlu1 %v4584_v19, %s4334_s5 }
 0x99f   :  { %v1920_v34 = vpop.xlane.xlu1 %1919 }
 0x9a0   :  { %4040 = vrcp.f32 %v1920_v34  ;;  %v1932_v44 = vand.u32 2147483648, %v1920_v34  ;;  %v1930_v46 = vand.u32 2147483647, %v1920_v34  ;;  %vm1926_vm5 = vweird.f32 %v1920_v34 }
 0x9a2   :  { %v1933_v50 = vor.u32 1.1754944e-38, %v1932_v44  ;;  %vm1931_vm7 = vcmp.eq.f32.partialorder %v1930_v46, 8.507059e+37 }
 0x9a6   :  { %v4041_v36 = vpop.eup %4040 }
 0x9a7   :  { %v1922_v38 = vmul.f32 %v4041_v36, %v1920_v34  ;;  %vm1927_vm4 = vweird.f32 %v4041_v36 }
 0x9a8   :  { %vm1928_vm6 = vmor %vm1926_vm5, %vm1927_vm4 }
 0x9a9   :  { %v1923_v41 = vsub.f32 1.0, %v1922_v38 }
 0x9ab   :  { %v1924_v45 = vmul.f32 %v4041_v36, %v1923_v41 }
 0x9ad   :  { %v1925_v48 = vadd.f32 %v4041_v36, %v1924_v45 }
 0x9af   :  { %v1929_v51 = vsel %vm1928_vm6, %v4041_v36, %v1925_v48  ;;  %vm1754_vm6 = vcmask 130048  }
 0x9b0   :  { %v1934_v54 = vsel %vm1931_vm7, %v1933_v50, %v1929_v51  ;;  %vm1756_vm7 = vcmask 195584  }
 0x9b1   :  { %v1935_v55 = vmul.f32 %v4039_v32, %v1934_v54 }
 0x9b3   :  { %v1940_v59 = vsel %vm420_vm1, %v1935_v55, 0 }
 0x9b4   :  { %v1959_v60 = vand.u32 4294901760, %v1940_v59 }
 0x9b6   :  { %v1960_v62 = vsub.f32 %v1940_v59, %v1959_v60 }
 0x9b7   :  { %v1937_v0 = vpop.permute.xlu1 %1936 }
 0x9b8   :  { %v1957_v1 = vand.u32 4294901760, %v1937_v0  ;;  %v1961_v4 = vand.u32 4294901760, %v1960_v62 }
 0x9ba   :  { %v1984_v7 = vsub.f32 %v1937_v0, %v1957_v1  ;;  %1958 = vmatpush.msra.mxu2 %v1957_v1  ;;  %2034 = vmatpush.msrb.mxu1 %v1957_v1  ;;  %v1962_v9 = vsub.f32 %v1960_v62, %v1961_v4 }
 0x9bb   :  { %2038 = vmatmul.f32.vlgmr.msrb.gmra.mxu1 %v1961_v4 }
 0x9bc   :  { %v1985_v11 = vand.u32 4294901760, %v1984_v7  ;;  %2142 = vmatpush.xpose.msra.mxu1 %v2141_v5  ;;  %2011 = vmatpush.msrb.mxu0 %v1984_v7  ;;  %v1963_v17 = vand.u32 4294901760, %v1962_v9 }
 0x9bd   :  { %2014 = vmatmul.f32.vlgmr.msrb.gmra.mxu0 %v1960_v62 }
 0x9be   :  { %v1986_v39 = vsub.f32 %v1984_v7, %v1985_v11  ;;  %2112 = vmatpush.xpose.msra.mxu0 %v2111_v42  ;;  %1964 = vmatmul.f32.vlgmr.msra.gmra.mxu2 %v1963_v17 }
 0x9bf   :  { %2060 = vmatpush.msrb.mxu2 %v1985_v11  ;;  %v2268_v43 = vpop.permute.xlu1 %2267 }
 0x9c0   :  { %2236 = vmatpush.xpose.msrb.mxu1 %v2111_v42  ;;  %v1987_v2 = vand.u32 4294901760, %v1986_v39  ;;  %v2288_v3 = vand.u32 4294901760, %v2268_v43 }
 0x9c1   :  { %2165 = vmatpush.xpose.msra.mxu2 %v2138_v49 }
 0x9c2   :  { %2214 = vmatpush.xpose.msrb.mxu0 %v2139_v57  ;;  %v2315_v6 = vsub.f32 %v2268_v43, %v2288_v3  ;;  %1988 = vmatpush.msra.mxu3 %v1987_v2 }
 0x9c3   :  { %1990 = vmatmul.f32.vlgmr.msra.gmra.mxu3 %v1959_v60  ;;  %2144 = vmatmul.f32.vlgmr.msra.gmra.mxu1 %v2113_v58 }
 0x9c4   :  { %v2316_v8 = vand.u32 4294901760, %v2315_v6  ;;  %2082 = vmatpush.msrb.mxu3 %v1957_v1  ;;  %2365 = vmatpush.msra.mxu1 %v2288_v3 }
 0x9c5   :  { %2118 = vmatmul.f32.vlgmr.msra.gmra.mxu0 %v2117_v20 }
 0x9c6   :  { %2188 = vmatpush.xpose.msra.mxu3 %v2111_v42  ;;  %v2317_v21 = vsub.f32 %v2315_v6, %v2316_v8  ;;  %2342 = vmatpush.msra.mxu0 %v2315_v6 }
 0x9c7   :  { %2062 = vmatmul.f32.vlgmr.msrb.gmra.mxu2 %v1959_v60  ;;  %v2420_v4 = vpop.permute.xlu1 %2419 }
 0x9c8   :  { %2289 = vmatpush.msrb.mxu2 %v2288_v3  ;;  %v2318_v22 = vand.u32 4294901760, %v2317_v21  ;;  %v2423_v17 = vsel %vm420_vm1, %v2420_v4, 0 }
 0x9c9   :  { %v2444_v2 = vand.u32 4294901760, %v2423_v17 }
 0x9cb   :  { %2084 = vmatmul.f32.vlgmr.msrb.gmra.mxu3 %v1959_v60  ;;  %2238 = vmatmul.f32.vlgmr.msrb.gmra.mxu1 %v2113_v58 }
 0x9cc   :  { %2319 = vmatpush.msrb.mxu3 %v2318_v22  ;;  %v2445_v22 = vsub.f32 %v2423_v17, %v2444_v2 }
 0x9cd   :  { %2216 = vmatmul.f32.vlgmr.msrb.gmra.mxu0 %v2113_v58 }
 0x9cf   :  { %2168 = vmatmul.f32.vlgmr.msra.gmra.mxu2 %v2114_v63 }
 0x9d0   :  { %2391 = vmatpush.msra.mxu2 %v2316_v8 }
 0x9d3   :  { %2192 = vmatmul.f32.vlgmr.msra.gmra.mxu3 %v2115_v10 }
 0x9d4   :  { %2413 = vmatpush.msra.mxu3 %v2288_v3 }
 0xa38   :  { %v2039_v31 = vpop.f32.mrf.mxu1 }
 0xa3a   :  { %v2015_v30 = vpop.f32.mrf.mxu0 }
 0xa40   :  { %v2145_v44 = vpop.f32.mrf.mxu1 }
 0xa41   :  { %v1965_v23 = vpop.f32.mrf.mxu2 }
 0xa42   :  { %v2119_v38 = vpop.f32.mrf.mxu0 }
 0xa43   :  { %v2146_v46 = vadd.f32 %v2145_v44, %v2119_v38 }
 0xa46   :  { %v1991_v32 = vpop.f32.mrf.mxu3 }
 0xa47   :  { %v1992_v33 = vadd.f32 %v1991_v32, %v1965_v23 }
 0xa48   :  { %v2239_v53 = vpop.f32.mrf.mxu1 }
 0xa49   :  { %v2016_v34 = vadd.f32 %v2015_v30, %v1992_v33 }
 0xa4a   :  { %v2063_v35 = vpop.f32.mrf.mxu2  ;;  %v2217_v50 = vpop.f32.mrf.mxu0 }
 0xa4b   :  { %v2040_v36 = vadd.f32 %v2039_v31, %v2016_v34 }
 0xa4d   :  { %v2064_v37 = vadd.f32 %v2063_v35, %v2040_v36  ;;  %v2446_v36 = vand.u32 4294901760, %v2445_v22 }
 0xa4e   :  { %v2085_v41 = vpop.f32.mrf.mxu3 }
 0xa4f   :  { %v4610_v42 = vadd.f32 %v2085_v41, %v2064_v37 }
 0xa52   :  { %v2169_v45 = vpop.f32.mrf.mxu2 }
 0xa53   :  { %v2170_v47 = vadd.f32 %v2169_v45, %v2146_v46  ;;  %v2447_v46 = vsub.f32 %v2445_v22, %v2446_v36 }
 0xa56   :  { %v2193_v48 = vpop.f32.mrf.mxu3 }
 0xa57   :  { %v2194_v49 = vadd.f32 %v2193_v48, %v2170_v47 }
 0xa59   :  { %v2218_v51 = vadd.f32 %v2217_v50, %v2194_v49  ;;  %v2448_v50 = vand.u32 4294901760, %v2447_v46 }
 0xa5b   :  { %v2240_v54 = vadd.f32 %v2239_v53, %v2218_v51 }
 0xa5d   :  { %v2242_v55 = vmul.f32 0.35355338, %v2240_v54 }
 0xa5f   :  { %v2243_v57 = vsel %vm420_vm1, %v2242_v55, -inf }
 0xa60   :  { %2244 = vmax.xlane.f32.xlu2 %v2243_v57 }
 0xa78   :  { %2598 = vrot.lane.b32.xlu2 %v4584_v19, %s4337_s28 }
 0xa80   :  { %2750 = vrot.lane.b32.xlu2 %v4584_v19, %s4338_s6 }
 0xad3   :  { %v2245_v58 = vpop.xlane.xlu2 %2244 }
 0xad4   :  { %v2246_v59 = vsub.f32 %v2242_v55, %v2245_v58 }
 0xad6   :  { %v2247_v60 = vmul.f32 1.442695, %v2246_v59 }
 0xad8   :  { %4042 = vpow2.f32 %v2247_v60 }
 0xadb   :  { %v2599_v9 = vpop.permute.xlu2 %2598 }
 0xadc   :  { %v2619_v40 = vand.u32 4294901760, %v2599_v9 }
 0xade   :  { %v4043_v61 = vpop.eup %4042  ;;  %v2646_v8 = vsub.f32 %v2599_v9, %v2619_v40 }
 0xadf   :  { %v2249_v62 = vsel %vm420_vm1, %v4043_v61, 0.0 }
 0xae0   :  { %2250 = vadd.xlane.f32.xlu0 %v2249_v62  ;;  %v2647_v33 = vand.u32 4294901760, %v2646_v8 }
 0xae2   :  { %v2648_v41 = vsub.f32 %v2646_v8, %v2647_v33 }
 0xae4   :  { %v2649_v49 = vand.u32 4294901760, %v2648_v41 }
 0xaf4   :  { %2421 = vrot.lane.b32.xlu0 %v4584_v19, %s4336_s27 }
 0xb53   :  { %v2251_v63 = vpop.xlane.xlu0 %2250 }
 0xb54   :  { %4044 = vrcp.f32 %v2251_v63  ;;  %v2263_v7 = vand.u32 2147483648, %v2251_v63  ;;  %v2261_v11 = vand.u32 2147483647, %v2251_v63  ;;  %vm2257_vm9 = vweird.f32 %v2251_v63 }
 0xb56   :  { %v2264_v43 = vor.u32 1.1754944e-38, %v2263_v7  ;;  %vm2262_vm11 = vcmp.eq.f32.partialorder %v2261_v11, 8.507059e+37 }
 0xb5a   :  { %v4045_v0 = vpop.eup %4044 }
 0xb5b   :  { %v2253_v1 = vmul.f32 %v4045_v0, %v2251_v63  ;;  %vm2258_vm8 = vweird.f32 %v4045_v0 }
 0xb5c   :  { %vm2259_vm10 = vmor %vm2257_vm9, %vm2258_vm8 }
 0xb5d   :  { %v2254_v5 = vsub.f32 1.0, %v2253_v1 }
 0xb5f   :  { %v2255_v10 = vmul.f32 %v4045_v0, %v2254_v5 }
 0xb61   :  { %v2256_v39 = vadd.f32 %v4045_v0, %v2255_v10 }
 0xb63   :  { %v2260_v3 = vsel %vm2259_vm10, %v4045_v0, %v2256_v39 }
 0xb64   :  { %v2265_v6 = vsel %vm2262_vm11, %v2264_v43, %v2260_v3  ;;  %v983_v3 = vadd.f32 %v4553_v24, %v4557_v26 }
 0xb65   :  { %v2266_v20 = vmul.f32 %v4043_v61, %v2265_v6 }
 0xb66   :  { %v2422_v21 = vpop.permute.xlu0 %2421  ;;  %v1007_v6 = vadd.f32 %v4555_v25, %v983_v3 }
 0xb67   :  { %v2425_v23 = vsel %vm420_vm1, %v2422_v21, 0  ;;  %v2271_v30 = vsel %vm420_vm1, %v2266_v20, 0 }
 0xb68   :  { %v2442_v31 = vand.u32 4294901760, %v2425_v23  ;;  %v2290_v32 = vand.u32 4294901760, %v2271_v30  ;;  %v1031_v20 = vadd.f32 %v4559_v27, %v1007_v6 }
 0xb6a   :  { %v2469_v34 = vsub.f32 %v2425_v23, %v2442_v31  ;;  %2321 = vmatmul.f32.vlgmr.msrb.gmra.mxu3 %v2290_v32  ;;  %2443 = vmatpush.xpose.msrb.mxu0 %v2442_v31  ;;  %v2291_v35 = vsub.f32 %v2271_v30, %v2290_v32 }
 0xb6b   :  { %2519 = vmatpush.xpose.msrb.mxu3 %v2442_v31 }
 0xb6c   :  { %v2470_v37 = vand.u32 4294901760, %v2469_v34  ;;  %2345 = vmatmul.f32.vlgmr.msra.gmra.mxu0 %v2291_v35  ;;  %v2292_v38 = vand.u32 4294901760, %v2291_v35 }
 0xb6e   :  { %v2471_v44 = vsub.f32 %v2469_v34, %v2470_v37  ;;  %2369 = vmatmul.f32.vlgmr.msra.gmra.mxu1 %v2292_v38  ;;  %2545 = vmatpush.xpose.msra.mxu0 %v2470_v37  ;;  %v2293_v45 = vsub.f32 %v2291_v35, %v2292_v38 }
 0xb70   :  { %v2472_v47 = vand.u32 4294901760, %v2471_v44  ;;  %v2294_v48 = vand.u32 4294901760, %v2293_v45 }
 0xb72   :  { %2295 = vmatmul.f32.vlgmr.msrb.gmra.mxu2 %v2294_v48  ;;  %2415 = vmatmul.f32.vlgmr.msra.gmra.mxu3 %v2290_v32 }
 0xb73   :  { %2473 = vmatpush.xpose.msrb.mxu1 %v2472_v47  ;;  %2496 = vmatpush.xpose.msrb.mxu2 %v2469_v34 }
 0xb74   :  { %2650 = vmatpush.msra.mxu3 %v2649_v49  ;;  %2449 = vmatmul.f32.vlgmr.msrb.gmra.mxu0 %v2448_v50 }
 0xb75   :  { %2673 = vmatpush.msrb.mxu0 %v2646_v8  ;;  %v1055_v8 = vadd.f32 %v4563_v29, %v1031_v20 }
 0xb76   :  { %2475 = vmatmul.f32.vlgmr.msrb.gmra.mxu1 %v2444_v2 }
 0xb77   :  { %2567 = vmatpush.xpose.msra.mxu1 %v2442_v31  ;;  %v1077_v21 = vadd.f32 %v4561_v28, %v1055_v8 }
 0xb7a   :  { %2393 = vmatmul.f32.vlgmr.msra.gmra.mxu2 %v2290_v32  ;;  %2523 = vmatmul.f32.vlgmr.msrb.gmra.mxu3 %v2446_v36  ;;  %v2751_v36 = vpop.permute.xlu2 %2750 }
 0xb7b   :  { %2696 = vmatpush.msrb.mxu1 %v2619_v40  ;;  %2620 = vmatpush.msra.mxu2 %v2619_v40  ;;  %v2754_v41 = vsel %vm420_vm1, %v2751_v36, 0 }
 0xb7c   :  { %2744 = vmatpush.msrb.mxu3 %v2619_v40  ;;  %2547 = vmatmul.f32.vlgmr.msra.gmra.mxu0 %v2444_v2  ;;  %v2775_v47 = vand.u32 4294901760, %v2754_v41 }
 0xb7e   :  { %2569 = vmatmul.f32.vlgmr.msra.gmra.mxu1 %v2444_v2 }
 0xb82   :  { %2499 = vmatmul.f32.vlgmr.msrb.gmra.mxu2 %v2445_v22 }
 0xb83   :  { %2722 = vmatpush.msrb.mxu2 %v2647_v33 }
 0xbe9   :  { %v2346_v53 = vpop.f32.mrf.mxu0 }
 0xbeb   :  { %v2370_v57 = vpop.f32.mrf.mxu1 }
 0xbed   :  { %v2322_v51 = vpop.f32.mrf.mxu3 }
 0xbf1   :  { %v2450_v63 = vpop.f32.mrf.mxu0 }
 0xbf3   :  { %v2476_v1 = vpop.f32.mrf.mxu1 }
 0xbf4   :  { %v2477_v4 = vadd.f32 %v2476_v1, %v2450_v63 }
 0xbf5   :  { %v2296_v54 = vpop.f32.mrf.mxu2  ;;  %v2416_v60 = vpop.f32.mrf.mxu3 }
 0xbf6   :  { %v2323_v55 = vadd.f32 %v2322_v51, %v2296_v54 }
 0xbf8   :  { %v2347_v58 = vadd.f32 %v2346_v53, %v2323_v55  ;;  %v2776_v53 = vsub.f32 %v2754_v41, %v2775_v47  ;;  %v652_v41 = vadd.f32 %v4536_v15, %v4530_v12 }
 0xbf9   :  { %v2548_v11 = vpop.f32.mrf.mxu0 }
 0xbfa   :  { %v2371_v59 = vadd.f32 %v2370_v57, %v2347_v58  ;;  %v2777_v57 = vand.u32 4294901760, %v2776_v53 }
 0xbfb   :  { %v2570_v39 = vpop.f32.mrf.mxu1 }
 0xbfd   :  { %v2394_v61 = vpop.f32.mrf.mxu2  ;;  %v2524_v9 = vpop.f32.mrf.mxu3 }
 0xbfe   :  { %v2395_v62 = vadd.f32 %v2394_v61, %v2371_v59 }
 0xc00   :  { %v2417_v0 = vadd.f32 %v2416_v60, %v2395_v62  ;;  %v2778_v60 = vsub.f32 %v2776_v53, %v2777_v57 }
 0xc02   :  { %v2779_v63 = vand.u32 4294901760, %v2778_v60 }
 0xc05   :  { %v2500_v5 = vpop.f32.mrf.mxu2 }
 0xc06   :  { %v2501_v7 = vadd.f32 %v2500_v5, %v2477_v4 }
 0xc08   :  { %v2525_v10 = vadd.f32 %v2524_v9, %v2501_v7 }
 0xc0a   :  { %v2549_v17 = vadd.f32 %v2548_v11, %v2525_v10 }
 0xc0c   :  { %v2571_v40 = vadd.f32 %v2570_v39, %v2549_v17 }
 0xc0e   :  { %v2573_v43 = vmul.f32 0.35355338, %v2571_v40 }
 0xc10   :  { %v2574_v2 = vsel %vm420_vm1, %v2573_v43, -inf }
 0xc11   :  { %2575 = vmax.xlane.f32.xlu1 %v2574_v2 }
 0xc2a   :  { %2752 = vrot.lane.b32.xlu1 %v4584_v19, %s4339_s29 }
 0xc32   :  { %1742 = vrot.lane.b32.xlu1 %v1077_v21, %s4320_s17 }
 0xc3a   :  { %1746 = vrot.lane.b32.xlu1 %v4574_v56, %s4341_s7 }
 0xc42   :  { %3082 = vrot.lane.b32.xlu1 %v2417_v0, %s4320_s17  ;;  %s4342_s17 = smov 24  }
 0xc84   :  { %v2576_v24 = vpop.xlane.xlu1 %2575 }
 0xc85   :  { %v2577_v26 = vsub.f32 %v2573_v43, %v2576_v24 }
 0xc87   :  { %v2578_v25 = vmul.f32 1.442695, %v2577_v26 }
 0xc89   :  { %4046 = vpow2.f32 %v2578_v25 }
 0xc8f   :  { %v4047_v27 = vpop.eup %4046 }
 0xc90   :  { %v2580_v22 = vsel %vm420_vm1, %v4047_v27, 0.0 }
 0xc91   :  { %2581 = vadd.xlane.f32.xlu0 %v2580_v22 }
 0xc9c   :  { %v2753_v23 = vpop.permute.xlu1 %2752 }
 0xc9d   :  { %v2756_v29 = vsel %vm420_vm1, %v2753_v23, 0 }
 0xc9e   :  { %v2773_v28 = vand.u32 4294901760, %v2756_v29 }
 0xca0   :  { %v2800_v30 = vsub.f32 %v2756_v29, %v2773_v28  ;;  %2774 = vmatpush.xpose.msra.mxu0 %v2773_v28 }
 0xca2   :  { %v2801_v31 = vand.u32 4294901760, %v2800_v30 }
 0xca4   :  { %v2802_v32 = vsub.f32 %v2800_v30, %v2801_v31 }
 0xca6   :  { %v2803_v33 = vand.u32 4294901760, %v2802_v32 }
 0xca8   :  { %2804 = vmatpush.xpose.msra.mxu1 %v2803_v33 }
 0xd04   :  { %v2582_v56 = vpop.xlane.xlu0 %2581 }
 0xd05   :  { %4048 = vrcp.f32 %v2582_v56  ;;  %v2594_v38 = vand.u32 2147483648, %v2582_v56  ;;  %v2592_v45 = vand.u32 2147483647, %v2582_v56  ;;  %vm2588_vm13 = vweird.f32 %v2582_v56 }
 0xd07   :  { %v2595_v48 = vor.u32 1.1754944e-38, %v2594_v38  ;;  %vm2593_vm15 = vcmp.eq.f32.partialorder %v2592_v45, 8.507059e+37 }
 0xd0b   :  { %v4049_v34 = vpop.eup %4048 }
 0xd0c   :  { %v2584_v35 = vmul.f32 %v4049_v34, %v2582_v56  ;;  %vm2589_vm12 = vweird.f32 %v4049_v34  ;;  %v3099_v56 = vld [vmem:[#allocation4 + $0x18] sm:$0xff] }
 0xd0d   :  { %vm2590_vm14 = vmor %vm2588_vm13, %vm2589_vm12 }
 0xd0e   :  { %v2585_v37 = vsub.f32 1.0, %v2584_v35  ;;  %v4647_v35 = vand.u32 4294901760, %v3099_v56 }
 0xd10   :  { %v2586_v44 = vmul.f32 %v4049_v34, %v2585_v37  ;;  %v3097_v37 = vld [vmem:[#allocation4 + $0x8] sm:$0xff] }
 0xd11   :  { %v4656_v45 = vand.u32 4294901760, %v3097_v37 }
 0xd12   :  { %v2587_v46 = vadd.f32 %v4049_v34, %v2586_v44  ;;  %v3096_v44 = vld [vmem:[#allocation4] sm:$0xff] }
 0xd13   :  { %v4666_v15 = vsub.f32 %v3097_v37, %v4656_v45 }
 0xd14   :  { %v2591_v49 = vsel %vm2590_vm14, %v4049_v34, %v2587_v46  ;;  %v3098_v34 = vld [vmem:[#allocation4 + $0x10] sm:$0xff]  ;;  %vm3635_vm14 = vcmask 523264  }
 0xd15   :  { %v2596_v50 = vsel %vm2593_vm15, %v2595_v48, %v2591_v49  ;;  %v4649_v36 = vand.u32 4294901760, %v3098_v34  ;;  %v4661_v48 = vand.u32 4294901760, %v3096_v44  ;;  %v676_v49 = vadd.f32 %v4532_v13, %v652_v41 }
 0xd16   :  { %v2597_v51 = vmul.f32 %v4047_v27, %v2596_v50 }
 0xd17   :  { %v4659_v46 = vsub.f32 %v3098_v34, %v4649_v36  ;;  %v700_v60 = vadd.f32 %v4534_v14, %v676_v49 }
 0xd18   :  { %v2602_v54 = vsel %vm420_vm1, %v2597_v51, 0 }
 0xd19   :  { %v2621_v55 = vand.u32 4294901760, %v2602_v54 }
 0xd1b   :  { %2652 = vmatmul.f32.vlgmr.msra.gmra.mxu3 %v2621_v55  ;;  %v2622_v58 = vsub.f32 %v2602_v54, %v2621_v55  ;;  %v3167_v54 = vand.u32 4294901760, %v4659_v46 }
 0xd1c   :  { %2850 = vmatpush.xpose.msra.mxu3 %v2773_v28 }
 0xd1d   :  { %2676 = vmatmul.f32.vlgmr.msrb.gmra.mxu0 %v2622_v58  ;;  %v2623_v59 = vand.u32 4294901760, %v2622_v58 }
 0xd1e   :  { %2876 = vmatpush.xpose.msrb.mxu0 %v2801_v31 }
 0xd1f   :  { %2700 = vmatmul.f32.vlgmr.msrb.gmra.mxu1 %v2623_v59  ;;  %v2624_v61 = vsub.f32 %v2622_v58, %v2623_v59  ;;  %v4670_v58 = vsub.f32 %v3096_v44, %v4661_v48 }
 0xd20   :  { %2898 = vmatpush.xpose.msrb.mxu1 %v2773_v28 }
 0xd21   :  { %v2625_v62 = vand.u32 4294901760, %v2624_v61 }
 0xd23   :  { %2626 = vmatmul.f32.vlgmr.msra.gmra.mxu2 %v2625_v62  ;;  %2746 = vmatmul.f32.vlgmr.msrb.gmra.mxu3 %v2621_v55  ;;  %v3173_v62 = vand.u32 4294901760, %v4666_v15 }
 0xd24   :  { %2827 = vmatpush.xpose.msra.mxu2 %v2800_v30 }
 0xd25   :  { %2780 = vmatmul.f32.vlgmr.msra.gmra.mxu0 %v2779_v63  ;;  %v3174_v14 = vsub.f32 %v4666_v15, %v3173_v62 }
 0xd27   :  { %2806 = vmatmul.f32.vlgmr.msra.gmra.mxu1 %v2775_v47 }
 0xd2b   :  { %2724 = vmatmul.f32.vlgmr.msrb.gmra.mxu2 %v2621_v55  ;;  %2854 = vmatmul.f32.vlgmr.msra.gmra.mxu3 %v2777_v57  ;;  %v1743_v55 = vpop.permute.xlu1 %1742 }
 0xd2d   :  { %2878 = vmatmul.f32.vlgmr.msrb.gmra.mxu0 %v2775_v47 }
 0xd2f   :  { %2900 = vmatmul.f32.vlgmr.msrb.gmra.mxu1 %v2775_v47 }
 0xd33   :  { %2830 = vmatmul.f32.vlgmr.msra.gmra.mxu2 %v2776_v53 }
 0xd9a   :  { %v2677_v1 = vpop.f32.mrf.mxu0 }
 0xd9c   :  { %v2701_v7 = vpop.f32.mrf.mxu1 }
 0xd9e   :  { %v2653_v0 = vpop.f32.mrf.mxu3 }
 0xda2   :  { %v2781_v40 = vpop.f32.mrf.mxu0 }
 0xda4   :  { %v2807_v2 = vpop.f32.mrf.mxu1 }
 0xda5   :  { %v2808_v3 = vadd.f32 %v2807_v2, %v2781_v40 }
 0xda6   :  { %v2627_v4 = vpop.f32.mrf.mxu2  ;;  %v2747_v11 = vpop.f32.mrf.mxu3 }
 0xda7   :  { %v2654_v5 = vadd.f32 %v2653_v0, %v2627_v4  ;;  %v3168_v0 = vsub.f32 %v4659_v46, %v3167_v54  ;;  %v3179_v4 = vand.u32 4294901760, %v4670_v58 }
 0xda9   :  { %v2678_v9 = vadd.f32 %v2677_v1, %v2654_v5 }
 0xdaa   :  { %v2879_v24 = vpop.f32.mrf.mxu0 }
 0xdab   :  { %v2702_v10 = vadd.f32 %v2701_v7, %v2678_v9  ;;  %v724_v9 = vadd.f32 %v4538_v16, %v700_v60 }
 0xdac   :  { %v2901_v25 = vpop.f32.mrf.mxu1 }
 0xdad   :  { %v746_v16 = vadd.f32 %v4540_v18, %v724_v9 }
 0xdae   :  { %v2725_v17 = vpop.f32.mrf.mxu2  ;;  %v2855_v8 = vpop.f32.mrf.mxu3 }
 0xdaf   :  { %v2726_v39 = vadd.f32 %v2725_v17, %v2702_v10 }
 0xdb1   :  { %v2748_v43 = vadd.f32 %v2747_v11, %v2726_v39  ;;  %v3169_v39 = vand.u32 4294901760, %v3168_v0 }
 0xdb6   :  { %v2831_v6 = vpop.f32.mrf.mxu2 }
 0xdb7   :  { %v2832_v20 = vadd.f32 %v2831_v6, %v2808_v3  ;;  %v1747_v3 = vpop.permute.xlu1 %1746 }
 0xdb9   :  { %v2856_v21 = vadd.f32 %v2855_v8, %v2832_v20  ;;  %v3175_v20 = vand.u32 4294901760, %v3174_v14 }
 0xdbb   :  { %v2880_v26 = vadd.f32 %v2879_v24, %v2856_v21  ;;  %v1753_v21 = vsel %vm420_vm1, %v746_v16, %v1743_v55 }
 0xdbd   :  { %v2902_v27 = vadd.f32 %v2901_v25, %v2880_v26  ;;  %v1755_v25 = vsel %vm1754_vm6, %v1753_v21, %v1747_v3 }
 0xdbf   :  { %v2904_v22 = vmul.f32 0.35355338, %v2902_v27 }
 0xdc1   :  { %v2905_v23 = vsel %vm420_vm1, %v2904_v22, -inf }
 0xdc2   :  { %2906 = vmax.xlane.f32.xlu2 %v2905_v23 }
 0xe35   :  { %v2907_v29 = vpop.xlane.xlu2 %2906 }
 0xe36   :  { %v2908_v28 = vsub.f32 %v2904_v22, %v2907_v29 }
 0xe38   :  { %v2909_v30 = vmul.f32 1.442695, %v2908_v28 }
 0xe3a   :  { %4050 = vpow2.f32 %v2909_v30 }
 0xe40   :  { %v4051_v31 = vpop.eup %4050 }
 0xe41   :  { %v2911_v32 = vsel %vm420_vm1, %v4051_v31, 0.0 }
 0xe42   :  { %2912 = vadd.xlane.f32.xlu0 %v2911_v32 }
 0xe56   :  { %2929 = vrot.lane.b32.xlu0 %v4584_v19, %s4340_s30  ;;  %v4654_v19 = vsub.f32 %v3099_v56, %v4647_v35 }
 0xe58   :  { %v3161_v51 = vand.u32 4294901760, %v4654_v19 }
 0xe5a   :  { %v3162_v13 = vsub.f32 %v4654_v19, %v3161_v51 }
 0xe5c   :  { %v3163_v7 = vand.u32 4294901760, %v3162_v13  ;;  %v4015_v13 = vld [vmem:[#allocation6] ss:$0 sm:$0xff] }
 0xe5e   :  { %1750 = vrot.lane.b32.xlu0 %v4597_v52, %s4342_s17 }
 0xe66   :  { %3086 = vrot.lane.b32.xlu0 %v2748_v43, %s4341_s7  ;;  %v3180_v43 = vsub.f32 %v4670_v58, %v3179_v4 }
 0xe68   :  { %v3181_v26 = vand.u32 4294901760, %v3180_v43  ;;  %v4064_v43 = vld [vmem:[%s4851_s0] sm:$0xff] }
 0xeb5   :  { %v2913_v33 = vpop.xlane.xlu0 %2912 }
 0xeb6   :  { %4052 = vrcp.f32 %v2913_v33  ;;  %v2925_v50 = vand.u32 2147483648, %v2913_v33  ;;  %v2923_v12 = vand.u32 2147483647, %v2913_v33  ;;  %vm2919_vm3 = vweird.f32 %v2913_v33 }
 0xeb8   :  { %v2926_v59 = vor.u32 1.1754944e-38, %v2925_v50  ;;  %vm2924_vm5 = vcmp.eq.f32.partialorder %v2923_v12, 8.507059e+37 }
 0xebc   :  { %v4053_v38 = vpop.eup %4052 }
 0xebd   :  { %v2915_v52 = vmul.f32 %v4053_v38, %v2913_v33  ;;  %vm2920_vm2 = vweird.f32 %v4053_v38 }
 0xebe   :  { %vm2921_vm4 = vmor %vm2919_vm3, %vm2920_vm2 }
 0xebf   :  { %v2916_v47 = vsub.f32 1.0, %v2915_v52 }
 0xec1   :  { %v2917_v53 = vmul.f32 %v4053_v38, %v2916_v47  ;;  %v3083_v47 = vpop.permute.xlu1 %3082 }
 0xec2   :  { %v3093_v49 = vsel %vm420_vm1, %v4610_v42, %v3083_v47 }
 0xec3   :  { %v2918_v57 = vadd.f32 %v4053_v38, %v2917_v53 }
 0xec5   :  { %v2922_v61 = vsel %vm2921_vm4, %v4053_v38, %v2918_v57 }
 0xec6   :  { %v2927_v63 = vsel %vm2924_vm5, %v2926_v59, %v2922_v61 }
 0xec7   :  { %v2928_v1 = vmul.f32 %v4051_v31, %v2927_v63 }
 0xec8   :  { %v2930_v5 = vpop.permute.xlu0 %2929 }
 0xec9   :  { %v2950_v10 = vand.u32 4294901760, %v2930_v5  ;;  %v2933_v11 = vsel %vm420_vm1, %v2928_v1, 0 }
 0xeca   :  { %v2952_v17 = vand.u32 4294901760, %v2933_v11 }
 0xecb   :  { %v2977_v40 = vsub.f32 %v2930_v5, %v2950_v10  ;;  %2951 = vmatpush.msrb.mxu2 %v2950_v10  ;;  %3027 = vmatpush.msra.mxu1 %v2950_v10 }
 0xecc   :  { %v2953_v2 = vsub.f32 %v2933_v11, %v2952_v17 }
 0xecd   :  { %3164 = vmatpush.msrb.mxu1 %v3163_v7  ;;  %v2978_v6 = vand.u32 4294901760, %v2977_v40  ;;  %3004 = vmatpush.msra.mxu0 %v2977_v40 }
 0xece   :  { %3007 = vmatmul.f32.vlgmr.msra.gmra.mxu0 %v2953_v2  ;;  %v2954_v8 = vand.u32 4294901760, %v2953_v2 }
 0xecf   :  { %3170 = vmatpush.msrb.mxu1 %v3169_v39  ;;  %v2979_v24 = vsub.f32 %v2977_v40, %v2978_v6  ;;  %3053 = vmatpush.msra.mxu2 %v2978_v6 }
 0xed0   :  { %3123 = vmatpush.msrb.mxu0 %v4647_v35  ;;  %3031 = vmatmul.f32.vlgmr.msra.gmra.mxu1 %v2954_v8  ;;  %v1751_v18 = vpop.permute.xlu0 %1750  ;;  %v2955_v27 = vsub.f32 %v2953_v2, %v2954_v8 }
 0xed1   :  { %v2980_v22 = vand.u32 4294901760, %v2979_v24  ;;  %v1757_v23 = vsel %vm1756_vm7, %v1755_v25, %v1751_v18  ;;  %3176 = vmatpush.msrb.mxu1 %v3175_v20 }
 0xed2   :  { %3125 = vmatpush.msrb.mxu0 %v4649_v36  ;;  %v3105_v29 = vsel %vm194_vm0, %v1757_v23, 0  ;;  %v2956_v28 = vand.u32 4294901760, %v2955_v27  ;;  %v4343_v27 = vmov 32.0  }
 0xed3   :  { %v3130_v30 = vand.u32 4294901760, %v3105_v29  ;;  %2981 = vmatpush.msrb.mxu3 %v2980_v22  ;;  %3182 = vmatpush.msrb.mxu1 %v3181_v26  ;;  %v4065_v26 = vld [vmem:[%s4851_s0 + $0x8] sm:$0xff]  ;;  %4054 = vrcp.f32 %v4343_v27 }
 0xed4   :  { %2957 = vmatmul.f32.vlgmr.msrb.gmra.mxu2 %v2956_v28  ;;  %2983 = vmatmul.f32.vlgmr.msrb.gmra.mxu3 %v2952_v17 }
 0xed5   :  { %v3131_v31 = vsub.f32 %v3105_v29, %v3130_v30  ;;  %3075 = vmatpush.msra.mxu3 %v2950_v10  ;;  %3127 = vmatpush.msrb.mxu0 %v4656_v45 }
 0xed6   :  { %3206 = vmatpush.msrb.mxu2 %v4654_v19  ;;  %3310 = vmatpush.msra.mxu1 %v4647_v35 }
 0xed7   :  { %3240 = vmatpush.msrb.mxu3 %v4647_v35  ;;  %v3132_v32 = vand.u32 4294901760, %v3131_v31  ;;  %3129 = vmatpush.msrb.mxu0 %v4661_v48 }
 0xed8   :  { %3184 = vmatmul.f32.vlgmr.msrb.gmra.mxu1 %v3130_v30  ;;  %3209 = vmatpush.msrb.mxu2 %v4659_v46 }
 0xed9   :  { %v3133_v33 = vsub.f32 %v3131_v31, %v3132_v32  ;;  %3242 = vmatpush.msrb.mxu3 %v4649_v36  ;;  %3312 = vmatpush.msra.mxu1 %v4649_v36  ;;  %v4055_v22 = vpop.eup %4054 }
 0xeda   :  { %3212 = vmatpush.msrb.mxu2 %v4666_v15  ;;  %3275 = vmatpush.msra.mxu0 %v3161_v51  ;;  %v3337_v23 = vmul.f32 32.0, %v4055_v22  ;;  %vm3341_vm1 = vweird.f32 %v4055_v22 }
 0xedb   :  { %v3134_v56 = vand.u32 4294901760, %v3133_v33  ;;  %3244 = vmatpush.msrb.mxu3 %v4656_v45  ;;  %3314 = vmatpush.msra.mxu1 %v4656_v45 }
 0xedc   :  { %3055 = vmatmul.f32.vlgmr.msra.gmra.mxu2 %v2952_v17  ;;  %3077 = vmatmul.f32.vlgmr.msra.gmra.mxu3 %v2952_v17  ;;  %v3338_v29 = vsub.f32 1.0, %v3337_v23 }
 0xedd   :  { %3135 = vmatmul.f32.vlgmr.msrb.gmra.mxu0 %v3134_v56  ;;  %3215 = vmatpush.msrb.mxu2 %v4670_v58 }
 0xede   :  { %3246 = vmatpush.msrb.mxu3 %v4661_v48  ;;  %3316 = vmatpush.msra.mxu1 %v4661_v48  ;;  %v3087_v48 = vpop.permute.xlu0 %3086  ;;  %v3339_v28 = vmul.f32 %v4055_v22, %v3338_v29 }
 0xedf   :  { %3279 = vmatpush.msra.mxu0 %v3167_v54  ;;  %v3094_v50 = vsel %vm1754_vm6, %v3093_v49, %v3087_v48  ;;  %v3392_v48 = vld [vmem:[#allocation10 + $0x8] sm:$0xff] }
 0xee1   :  { %3283 = vmatpush.msra.mxu0 %v3173_v62 }
 0xee3   :  { %3287 = vmatpush.msra.mxu0 %v3179_v4 }
 0xee4   :  { %3218 = vmatmul.f32.vlgmr.msrb.gmra.mxu2 %v3131_v31  ;;  %3250 = vmatmul.f32.vlgmr.msrb.gmra.mxu3 %v3132_v32 }
 0xf4b   :  { %v3008_v37 = vpop.f32.mrf.mxu0 }
 0xf4d   :  { %v3032_v41 = vpop.f32.mrf.mxu1 }
 0xf55   :  { %v3185_v42 = vpop.f32.mrf.mxu1 }
 0xf57   :  { %v2958_v34 = vpop.f32.mrf.mxu2  ;;  %v2984_v35 = vpop.f32.mrf.mxu3 }
 0xf58   :  { %v2985_v36 = vadd.f32 %v2984_v35, %v2958_v34 }
 0xf5a   :  { %v3009_v38 = vadd.f32 %v3008_v37, %v2985_v36  ;;  %v3136_v59 = vpop.f32.mrf.mxu0 }
 0xf5b   :  { %v3137_v60 = vadd.f32 %v4015_v13, %v3136_v59 }
 0xf5c   :  { %v3033_v19 = vadd.f32 %v3032_v41, %v3009_v38 }
 0xf5d   :  { %v3186_v0 = vadd.f32 %v3185_v42, %v3137_v60 }
 0xf5f   :  { %v3056_v44 = vpop.f32.mrf.mxu2  ;;  %v3078_v45 = vpop.f32.mrf.mxu3 }
 0xf60   :  { %v3057_v52 = vadd.f32 %v3056_v44, %v3033_v19  ;;  %v3394_v44 = vld [vmem:[#allocation10 + $0x18] sm:$0xff] }
 0xf62   :  { %v3079_v46 = vadd.f32 %v3078_v45, %v3057_v52  ;;  %v3417_v52 = vand.u32 4294901760, %v3394_v44  ;;  %v3393_v45 = vld [vmem:[#allocation10 + $0x10] sm:$0xff] }
 0xf63   :  { %v3419_v47 = vand.u32 4294901760, %v3393_v45 }
 0xf64   :  { %3090 = vrot.lane.b32.xlu1 %v3079_v46, %s4342_s17  ;;  %v3455_v46 = vsub.f32 %v3394_v44, %v3417_v52  ;;  %3535 = vmatpush.msrb.mxu1 %v3417_v52 }
 0xf65   :  { %3418 = vmatpush.msra.mxu2 %v3417_v52 }
 0xf66   :  { %v3456_v49 = vand.u32 4294901760, %v3455_v46  ;;  %3501 = vmatpush.msrb.mxu0 %v3455_v46  ;;  %3537 = vmatpush.msrb.mxu1 %v3419_v47 }
 0xf67   :  { %v3219_v62 = vpop.f32.mrf.mxu2  ;;  %v3251_v5 = vpop.f32.mrf.mxu3  ;;  %3420 = vmatpush.msra.mxu2 %v3419_v47 }
 0xf68   :  { %v3220_v1 = vadd.f32 %v3219_v62, %v3186_v0 }
 0xf6a   :  { %v3252_v7 = vadd.f32 %v3251_v5, %v3220_v1 }
 0xfd6   :  { %v3091_v51 = vpop.permute.xlu1 %3090 }
 0xfd7   :  { %v3095_v53 = vsel %vm1756_vm7, %v3094_v50, %v3091_v51  ;;  %v3461_v50 = vsub.f32 %v3393_v45, %v3419_v47  ;;  %v3421_v51 = vand.u32 4294901760, %v3392_v48 }
 0xfd8   :  { %v3108_v12 = vsel %vm194_vm0, %v3095_v53, 0  ;;  %v3391_v53 = vld [vmem:[#allocation10] sm:$0xff] }
 0xfd9   :  { %v3138_v15 = vand.u32 4294901760, %v3108_v12  ;;  %3504 = vmatpush.msrb.mxu0 %v3461_v50  ;;  %3539 = vmatpush.msrb.mxu1 %v3421_v51 }
 0xfda   :  { %3422 = vmatpush.msra.mxu2 %v3421_v51 }
 0xfdb   :  { %v3139_v54 = vsub.f32 %v3108_v12, %v3138_v15  ;;  %3188 = vmatmul.f32.gmra.mxu1 %v3138_v15  ;;  %v3457_v12 = vsub.f32 %v3455_v46, %v3456_v49  ;;  %v3629_v46 = vld [vmem:[%s4860_s9 + $0x30] sm:$0xff] }
 0xfdd   :  { %3223 = vmatmul.f32.gmra.mxu2 %v3139_v54  ;;  %v3140_v55 = vand.u32 4294901760, %v3139_v54 }
 0xfdf   :  { %3256 = vmatmul.f32.gmra.mxu3 %v3140_v55  ;;  %v3141_v57 = vsub.f32 %v3139_v54, %v3140_v55  ;;  %v3467_v54 = vsub.f32 %v3392_v48, %v3421_v51  ;;  %v3423_v55 = vand.u32 4294901760, %v3391_v53  ;;  %v4769_v48 = vand.u32 4294901760, %v3629_v46 }
 0xfe1   :  { %v3142_v58 = vand.u32 4294901760, %v3141_v57  ;;  %v3458_v57 = vand.u32 4294901760, %v3457_v12  ;;  %v3468_v42 = vand.u32 4294901760, %v3467_v54  ;;  %v3473_v59 = vsub.f32 %v3391_v53, %v3423_v55  ;;  %3507 = vmatpush.msrb.mxu0 %v3467_v54  ;;  %3541 = vmatpush.msrb.mxu1 %v3423_v55  ;;  %v3627_v12 = vld [vmem:[%s4860_s9 + $0x20] sm:$0xff] }
 0xfe2   :  { %3424 = vmatpush.msra.mxu2 %v3423_v55 }
 0xfe3   :  { %3143 = vmatmul.f32.gmra.mxu0 %v3142_v58  ;;  %3318 = vmatmul.f32.vlgmr.msra.gmra.mxu1 %v3130_v30  ;;  %v3469_v60 = vsub.f32 %v3467_v54, %v3468_v42 }
 0xfe4   :  { %3459 = vmatpush.msra.mxu3 %v3458_v57  ;;  %3510 = vmatpush.msrb.mxu0 %v3473_v59  ;;  %v4796_v57 = vand.u32 4294901760, %v3627_v12 }
 0xfe5   :  { %3570 = vmatpush.msrb.mxu2 %v3456_v49  ;;  %v3470_v62 = vand.u32 4294901760, %v3469_v60  ;;  %v3628_v49 = vld [vmem:[%s4860_s9 + $0x28] sm:$0xff] }
 0xfe6   :  { %v4781_v53 = vand.u32 4294901760, %v3628_v49  ;;  %v3710_v60 = vsub.f32 %v3627_v12, %v4796_v57 }
 0xfeb   :  { %3289 = vmatmul.f32.vlgmr.msra.gmra.mxu0 %v3130_v30  ;;  %3322 = vmatmul.f32.gmra.mxu1 %v3138_v15  ;;  %v3340_v30 = vadd.f32 %v4055_v22, %v3339_v28 }
 0xfed   :  { %v4732_v31 = vsel %vm3341_vm1, %v4055_v22, %v3340_v30 }
 0xff3   :  { %3293 = vmatmul.f32.gmra.mxu0 %v3138_v15  ;;  %v3462_v15 = vand.u32 4294901760, %v3461_v50 }
 0xff5   :  { %v3463_v58 = vsub.f32 %v3461_v50, %v3462_v15  ;;  %3574 = vmatpush.msrb.mxu2 %v3462_v15 }
 0xff7   :  { %3578 = vmatpush.msrb.mxu2 %v3468_v42 }
0x1058   :  { %v3189_v61 = vpop.f32.mrf.mxu1 }
0x1060   :  { %v3144_v63 = vpop.f32.mrf.mxu0  ;;  %v3319_v10 = vpop.f32.mrf.mxu1 }
0x1061   :  { %v3145_v4 = vadd.f32 %v4015_v13, %v3144_v63  ;;  %v3224_v17 = vpop.f32.mrf.mxu2  ;;  %v3464_v13 = vand.u32 4294901760, %v3463_v58  ;;  %v3626_v58 = vld [vmem:[%s4860_s9 + $0x18] sm:$0xff] }
0x1062   :  { %v3257_v16 = vpop.f32.mrf.mxu3 }
0x1063   :  { %v3190_v9 = vadd.f32 %v3189_v61, %v3145_v4  ;;  %v3474_v61 = vand.u32 4294901760, %v3473_v59  ;;  %3465 = vmatpush.msra.mxu3 %v3464_v13 }
0x1065   :  { %v3225_v39 = vadd.f32 %v3224_v17, %v3190_v9  ;;  %v3475_v63 = vsub.f32 %v3473_v59, %v3474_v61  ;;  %3471 = vmatpush.msra.mxu3 %v3470_v62  ;;  %3582 = vmatpush.msrb.mxu2 %v3474_v61  ;;  %v4808_v61 = vand.u32 4294901760, %v3626_v58  ;;  %v3625_v62 = vld [vmem:[%s4860_s9 + $0x10] sm:$0xff] }
0x1067   :  { %v3258_v3 = vadd.f32 %v3257_v16, %v3225_v39  ;;  %v3476_v0 = vand.u32 4294901760, %v3475_v63 }
0x1068   :  { %v3290_v11 = vpop.f32.mrf.mxu0  ;;  %v3323_v21 = vpop.f32.mrf.mxu1 }
0x1069   :  { %v3291_v14 = vadd.f32 %v3290_v11, %v3252_v7  ;;  %3477 = vmatpush.msra.mxu3 %v3476_v0 }
0x106b   :  { %v3320_v40 = vadd.f32 %v3319_v10, %v3291_v14  ;;  %3605 = vmatpush.msrb.mxu3 %v3417_v52  ;;  %v3630_v52 = vld [vmem:[%s4860_s9 + $0x38] sm:$0xff] }
0x106c   :  { %v4761_v45 = vand.u32 4294901760, %v3630_v52 }
0x106d   :  { %v3326_v2 = vadd.f32 %v4064_v43, %v3320_v40  ;;  %3607 = vmatpush.msrb.mxu3 %v3419_v47 }
0x106e   :  { %v4767_v47 = vsub.f32 %v3630_v52, %v4761_v45  ;;  %3651 = vmatpush.msra.mxu0 %v4761_v45 }
0x106f   :  { %v3330_v6 = vsel %vm194_vm0, %v3326_v2, 0.0  ;;  %3609 = vmatpush.msrb.mxu3 %v3421_v51  ;;  %v4778_v51 = vsub.f32 %v3629_v46, %v4769_v48 }
0x1070   :  { %v3294_v20 = vpop.f32.mrf.mxu0  ;;  %3331 = vadd.xlane.f32.xlu2 %v3330_v6  ;;  %v3693_v50 = vand.u32 4294901760, %v4767_v47  ;;  %3653 = vmatpush.msra.mxu0 %v4769_v48 }
0x1071   :  { %v3295_v8 = vadd.f32 %v3294_v20, %v3258_v3  ;;  %3611 = vmatpush.msrb.mxu3 %v3423_v55  ;;  %v4016_v3 = vld [vmem:[#allocation7] ss:$0 sm:$0xff]  ;;  %v3699_v54 = vand.u32 4294901760, %v4778_v51  ;;  %v4793_v55 = vsub.f32 %v3628_v49, %v4781_v53 }
0x1072   :  { %v3694_v15 = vsub.f32 %v4767_v47, %v3693_v50  ;;  %3655 = vmatpush.msra.mxu0 %v4781_v53 }
0x1073   :  { %v3324_v24 = vadd.f32 %v3323_v21, %v3295_v8  ;;  %v4017_v8 = vld [vmem:[#allocation9] ss:$0 sm:$0xff]  ;;  %v3700_v59 = vsub.f32 %v4778_v51, %v3699_v54  ;;  %v3705_v13 = vand.u32 4294901760, %v4793_v55 }
0x1074   :  { %v3695_v42 = vand.u32 4294901760, %v3694_v15  ;;  %3657 = vmatpush.msra.mxu0 %v4796_v57 }
0x1075   :  { %v3327_v25 = vadd.f32 %v4065_v26, %v3324_v24  ;;  %v3701_v63 = vand.u32 4294901760, %v3700_v59  ;;  %v3706_v0 = vsub.f32 %v4793_v55, %v3705_v13 }
0x1076   :  { %3696 = vmatpush.msra.mxu1 %v3695_v42  ;;  %3659 = vmatpush.msra.mxu0 %v4808_v61 }
0x1077   :  { %v3333_v18 = vsel %vm194_vm0, %v3327_v25, 0.0 }
0x1078   :  { %3334 = vadd.xlane.f32.xlu0 %v3333_v18  ;;  %3702 = vmatpush.msra.mxu1 %v3701_v63 }
0x10e3   :  { %v3332_v32 = vpop.xlane.xlu2 %3331 }
0x10e4   :  { %v3343_v33 = vmul.f32 %v4732_v31, %v3332_v32 }
0x10e6   :  { %v4735_v56 = vsub.f32 %v3326_v2, %v3343_v33 }
0x10e8   :  { %v3347_v34 = vmul.f32 %v4735_v56, %v4735_v56 }
0x10ea   :  { %v3349_v35 = vsel %vm194_vm0, %v3347_v34, 0.0 }
0x10eb   :  { %3350 = vadd.xlane.f32.xlu1 %v3349_v35  ;;  %v3335_v36 = vpop.xlane.xlu0 %3334 }
0x10ec   :  { %v3344_v37 = vmul.f32 %v4732_v31, %v3335_v36 }
0x10ee   :  { %v4741_v38 = vsub.f32 %v3327_v25, %v3344_v37 }
0x10f0   :  { %v3348_v41 = vmul.f32 %v4741_v38, %v4741_v38 }
0x10f2   :  { %v3352_v19 = vsel %vm194_vm0, %v3348_v41, 0.0 }
0x10f3   :  { %3353 = vadd.xlane.f32.xlu2 %v3352_v19 }
0x115e   :  { %v3351_v1 = vpop.xlane.xlu1 %3350 }
0x115f   :  { %v3355_v4 = vmul.f32 %v3351_v1, %v4732_v31  ;;  %v3711_v1 = vand.u32 4294901760, %v3710_v60 }
0x1161   :  { %v3357_v5 = vadd.f32 1e-05, %v3355_v4  ;;  %v3660_v4 = vand.u32 4294901760, %v3625_v62 }
0x1163   :  { %4056 = vrsqrt.f32 %v3357_v5  ;;  %vm3365_vm9 = vweird.f32 %v3357_v5  ;;  %3661 = vmatpush.msra.mxu0 %v3660_v4 }
0x1166   :  { %v3354_v7 = vpop.xlane.xlu2 %3353 }
0x1167   :  { %v3356_v9 = vmul.f32 %v3354_v7, %v4732_v31  ;;  %v3624_v7 = vld [vmem:[%s4860_s9 + $0x8] sm:$0xff] }
0x1169   :  { %v4057_v10 = vpop.eup %4056  ;;  %v3358_v11 = vadd.f32 1e-05, %v3356_v9  ;;  %v3707_v9 = vand.u32 4294901760, %v3706_v0 }
0x116a   :  { %v3360_v14 = vmul.f32 %v4057_v10, %v3357_v5  ;;  %vm3366_vm8 = vweird.f32 %v4057_v10  ;;  %v3716_v5 = vsub.f32 %v3626_v58, %v4808_v61 }
0x116b   :  { %4058 = vrsqrt.f32 %v3358_v11  ;;  %vm3367_vm10 = vmor %vm3365_vm9, %vm3366_vm8  ;;  %vm3375_vm12 = vweird.f32 %v3358_v11  ;;  %3708 = vmatpush.msra.mxu1 %v3707_v9  ;;  %v4019_v9 = vld [vmem:[#allocation13] ss:$0 sm:$0xff] }
0x116c   :  { %v3361_v17 = vmul.f32 %v4057_v10, %v3360_v14  ;;  %v3662_v14 = vand.u32 4294901760, %v3624_v7 }
0x116e   :  { %v3362_v39 = vmul.f32 0.5, %v3361_v17  ;;  %v3717_v17 = vand.u32 4294901760, %v3716_v5  ;;  %3663 = vmatpush.msra.mxu0 %v3662_v14 }
0x1170   :  { %v3363_v40 = vsub.f32 1.5, %v3362_v39  ;;  %v3623_v39 = vld [vmem:[%s4860_s9] sm:$0xff] }
0x1171   :  { %v4059_v43 = vpop.eup %4058 }
0x1172   :  { %v3364_v2 = vmul.f32 %v4057_v10, %v3363_v40  ;;  %v3370_v16 = vmul.f32 %v4059_v43, %v3358_v11  ;;  %vm3376_vm11 = vweird.f32 %v4059_v43  ;;  %v3722_v11 = vsub.f32 %v3625_v62, %v3660_v4 }
0x1173   :  { %vm3377_vm13 = vmor %vm3375_vm12, %vm3376_vm11 }
0x1174   :  { %v3368_v6 = vsel %vm3367_vm10, %v4057_v10, %v3364_v2  ;;  %v3371_v20 = vmul.f32 %v4059_v43, %v3370_v16  ;;  %v3712_v10 = vsub.f32 %v3710_v60, %v3711_v1  ;;  %v3728_v2 = vsub.f32 %v3624_v7, %v3662_v14 }
0x1175   :  { %v3379_v21 = vmul.f32 %v3368_v6, %v4735_v56  ;;  %v3664_v16 = vand.u32 4294901760, %v3623_v39 }
0x1176   :  { %v3372_v24 = vmul.f32 0.5, %v3371_v20  ;;  %v3713_v40 = vand.u32 4294901760, %v3712_v10  ;;  %v3729_v20 = vand.u32 4294901760, %v3728_v2 }
0x1177   :  { %v3384_v26 = vmul.f32 %v4016_v3, %v3379_v21  ;;  %3665 = vmatpush.msra.mxu0 %v3664_v16 }
0x1178   :  { %v3373_v25 = vsub.f32 1.5, %v3372_v24  ;;  %3714 = vmatpush.msra.mxu1 %v3713_v40 }
0x1179   :  { %v4749_v18 = vadd.f32 %v4017_v8, %v3384_v26  ;;  %v3730_v26 = vsub.f32 %v3728_v2, %v3729_v20 }
0x117a   :  { %v3374_v27 = vmul.f32 %v4059_v43, %v3373_v25 }
0x117b   :  { %v3400_v22 = vsel %vm194_vm0, %v4749_v18, 0 }
0x117c   :  { %v3378_v23 = vsel %vm3377_vm13, %v4059_v43, %v3374_v27  ;;  %v3425_v29 = vand.u32 4294901760, %v3400_v22  ;;  %v3723_v43 = vand.u32 4294901760, %v3722_v11  ;;  %v3731_v27 = vand.u32 4294901760, %v3730_v26 }
0x117d   :  { %v3380_v28 = vmul.f32 %v3378_v23, %v4741_v38 }
0x117e   :  { %3479 = vmatmul.f32.vlgmr.msra.gmra.mxu3 %v3425_v29  ;;  %v3426_v30 = vsub.f32 %v3400_v22, %v3425_v29  ;;  %v3724_v6 = vsub.f32 %v3722_v11, %v3723_v43 }
0x117f   :  { %v3385_v32 = vmul.f32 %v4016_v3, %v3380_v28  ;;  %3800 = vmatpush.msra.mxu3 %v4761_v45  ;;  %v3718_v3 = vsub.f32 %v3716_v5, %v3717_v17  ;;  %v4018_v28 = vld [vmem:[#allocation12] ss:$0 sm:$0xff] }
0x1180   :  { %3513 = vmatmul.f32.vlgmr.msrb.gmra.mxu0 %v3426_v30  ;;  %v3427_v33 = vand.u32 4294901760, %v3426_v30  ;;  %v3725_v24 = vand.u32 4294901760, %v3724_v6 }
0x1181   :  { %v4754_v56 = vadd.f32 %v4017_v8, %v3385_v32  ;;  %3802 = vmatpush.msra.mxu3 %v4769_v48  ;;  %v3734_v8 = vsub.f32 %v3623_v39, %v3664_v16  ;;  %v3719_v21 = vand.u32 4294901760, %v3718_v3  ;;  %3839 = vmatpush.msrb.mxu0 %v3693_v50 }
0x1182   :  { %3545 = vmatmul.f32.vlgmr.msrb.gmra.mxu1 %v3427_v33  ;;  %v3428_v34 = vsub.f32 %v3426_v30, %v3427_v33 }
0x1183   :  { %v3403_v35 = vsel %vm194_vm0, %v4754_v56, 0  ;;  %3804 = vmatpush.msra.mxu3 %v4781_v53  ;;  %v3735_v25 = vand.u32 4294901760, %v3734_v8  ;;  %3720 = vmatpush.msra.mxu1 %v3719_v21 }
0x1184   :  { %v3429_v36 = vand.u32 4294901760, %v3428_v34  ;;  %v3433_v37 = vand.u32 4294901760, %v3403_v35  ;;  %3843 = vmatpush.msrb.mxu0 %v3699_v54 }
0x1185   :  { %3806 = vmatpush.msra.mxu3 %v4796_v57  ;;  %v3736_v22 = vsub.f32 %v3734_v8, %v3735_v25  ;;  %3726 = vmatpush.msra.mxu1 %v3725_v24 }
0x1186   :  { %3430 = vmatmul.f32.vlgmr.msra.gmra.mxu2 %v3429_v36  ;;  %3483 = vmatmul.f32.gmra.mxu3 %v3433_v37  ;;  %v3434_v41 = vsub.f32 %v3403_v35, %v3433_v37 }
0x1187   :  { %3758 = vmatpush.msra.mxu2 %v4767_v47  ;;  %3808 = vmatpush.msra.mxu3 %v4808_v61  ;;  %v3737_v23 = vand.u32 4294901760, %v3736_v22 }
0x1188   :  { %3518 = vmatmul.f32.gmra.mxu0 %v3434_v41  ;;  %v3435_v19 = vand.u32 4294901760, %v3434_v41  ;;  %3732 = vmatpush.msra.mxu1 %v3731_v27 }
0x1189   :  { %3761 = vmatpush.msra.mxu2 %v4778_v51  ;;  %3810 = vmatpush.msra.mxu3 %v3660_v4 }
0x118a   :  { %3551 = vmatmul.f32.gmra.mxu1 %v3435_v19  ;;  %v3436_v38 = vsub.f32 %v3434_v41, %v3435_v19  ;;  %3847 = vmatpush.msrb.mxu0 %v3705_v13 }
0x118b   :  { %3764 = vmatpush.msra.mxu2 %v4793_v55  ;;  %3812 = vmatpush.msra.mxu3 %v3662_v14 }
0x118c   :  { %v3437_v44 = vand.u32 4294901760, %v3436_v38  ;;  %3738 = vmatpush.msra.mxu1 %v3737_v23  ;;  %3851 = vmatpush.msrb.mxu0 %v3711_v1 }
0x118d   :  { %3767 = vmatpush.msra.mxu2 %v3710_v60  ;;  %3814 = vmatpush.msra.mxu3 %v3664_v16 }
0x118e   :  { %3438 = vmatmul.f32.gmra.mxu2 %v3437_v44  ;;  %3613 = vmatmul.f32.vlgmr.msrb.gmra.mxu3 %v3425_v29 }
0x118f   :  { %3770 = vmatpush.msra.mxu2 %v3716_v5  ;;  %3886 = vmatpush.msrb.mxu1 %v4761_v45 }
0x1190   :  { %3855 = vmatpush.msrb.mxu0 %v3717_v17 }
0x1191   :  { %3773 = vmatpush.msra.mxu2 %v3722_v11  ;;  %3888 = vmatpush.msrb.mxu1 %v4769_v48 }
0x1192   :  { %3859 = vmatpush.msrb.mxu0 %v3723_v43 }
0x1193   :  { %3776 = vmatpush.msra.mxu2 %v3728_v2  ;;  %3890 = vmatpush.msrb.mxu1 %v4781_v53 }
0x1194   :  { %3863 = vmatpush.msrb.mxu0 %v3729_v20 }
0x1195   :  { %3779 = vmatpush.msra.mxu2 %v3734_v8  ;;  %3892 = vmatpush.msrb.mxu1 %v4796_v57 }
0x1196   :  { %3584 = vmatmul.f32.vlgmr.msrb.gmra.mxu2 %v3425_v29  ;;  %3617 = vmatmul.f32.gmra.mxu3 %v3433_v37 }
0x1197   :  { %3894 = vmatpush.msrb.mxu1 %v4808_v61  ;;  %3867 = vmatpush.msrb.mxu0 %v3735_v25 }
0x1199   :  { %3896 = vmatpush.msrb.mxu1 %v3660_v4 }
0x119b   :  { %3898 = vmatpush.msrb.mxu1 %v3662_v14 }
0x119d   :  { %3900 = vmatpush.msrb.mxu1 %v3664_v16 }
0x119e   :  { %3588 = vmatmul.f32.gmra.mxu2 %v3433_v37 }
0x11fd   :  { %v3514_v35 = vpop.f32.mrf.mxu0 }
0x11ff   :  { %v3546_v19 = vpop.f32.mrf.mxu1 }
0x1201   :  { %v3480_v29 = vpop.f32.mrf.mxu3 }
0x1205   :  { %v3519_v47 = vpop.f32.mrf.mxu0 }
0x1207   :  { %v3552_v51 = vpop.f32.mrf.mxu1 }
0x1209   :  { %v3431_v30 = vpop.f32.mrf.mxu2  ;;  %v3484_v33 = vpop.f32.mrf.mxu3 }
0x120a   :  { %v3432_v32 = vadd.f32 %v4018_v28, %v3431_v30 }
0x120c   :  { %v3481_v34 = vadd.f32 %v3480_v29, %v3432_v32 }
0x120e   :  { %v3515_v41 = vadd.f32 %v3514_v35, %v3481_v34 }
0x1210   :  { %v3547_v44 = vadd.f32 %v3546_v19, %v3515_v41 }
0x1211   :  { %v3439_v36 = vpop.f32.mrf.mxu2  ;;  %v3614_v52 = vpop.f32.mrf.mxu3 }
0x1212   :  { %v3440_v37 = vadd.f32 %v4018_v28, %v3439_v36 }
0x1214   :  { %v3485_v38 = vadd.f32 %v3484_v33, %v3440_v37 }
0x1216   :  { %v3520_v49 = vadd.f32 %v3519_v47, %v3485_v38 }
0x1218   :  { %v3553_v12 = vadd.f32 %v3552_v51, %v3520_v49 }
0x1219   :  { %v3585_v45 = vpop.f32.mrf.mxu2  ;;  %v3618_v58 = vpop.f32.mrf.mxu3 }
0x121a   :  { %v3586_v46 = vadd.f32 %v3585_v45, %v3547_v44 }
0x121c   :  { %v3615_v48 = vadd.f32 %v3614_v52, %v3586_v46 }
0x121e   :  { %v3621_v50 = vmax.f32 %v3615_v48, 0.0 }
0x1220   :  { %v3637_v53 = vsel %vm3635_vm14, %v3621_v50, 0 }
0x1221   :  { %v3666_v15 = vand.u32 4294901760, %v3637_v53  ;;  %v3589_v54 = vpop.f32.mrf.mxu2 }
0x1222   :  { %v3590_v55 = vadd.f32 %v3589_v54, %v3553_v12 }
0x1223   :  { %v3667_v57 = vsub.f32 %v3637_v53, %v3666_v15  ;;  %3740 = vmatmul.f32.vlgmr.msra.gmra.mxu1 %v3666_v15 }
0x1224   :  { %v3619_v42 = vadd.f32 %v3618_v58, %v3590_v55 }
0x1225   :  { %v3668_v59 = vand.u32 4294901760, %v3667_v57  ;;  %3782 = vmatmul.f32.vlgmr.msra.gmra.mxu2 %v3667_v57 }
0x1226   :  { %v3622_v13 = vmax.f32 %v3619_v42, 0.0 }
0x1227   :  { %v3669_v60 = vsub.f32 %v3667_v57, %v3668_v59  ;;  %3818 = vmatmul.f32.vlgmr.msra.gmra.mxu3 %v3668_v59  ;;  %v4020_v59 = vld [vmem:[#allocation15] ss:$0 sm:$0xff] }
0x1228   :  { %v3640_v61 = vsel %vm3635_vm14, %v3622_v13, 0 }
0x1229   :  { %v3670_v62 = vand.u32 4294901760, %v3669_v60  ;;  %v3674_v63 = vand.u32 4294901760, %v3640_v61 }
0x122b   :  { %3671 = vmatmul.f32.vlgmr.msra.gmra.mxu0 %v3670_v62  ;;  %3744 = vmatmul.f32.gmra.mxu1 %v3674_v63  ;;  %v3675_v0 = vsub.f32 %v3640_v61, %v3674_v63  ;;  %v4021_v61 = vld [vmem:[#allocation16] ss:$0 sm:$0xff] }
0x122d   :  { %3787 = vmatmul.f32.gmra.mxu2 %v3675_v0  ;;  %v3676_v1 = vand.u32 4294901760, %v3675_v0 }
0x122f   :  { %3824 = vmatmul.f32.gmra.mxu3 %v3676_v1  ;;  %v3677_v4 = vsub.f32 %v3675_v0, %v3676_v1 }
0x1231   :  { %v3678_v5 = vand.u32 4294901760, %v3677_v4 }
0x1233   :  { %3679 = vmatmul.f32.gmra.mxu0 %v3678_v5  ;;  %3902 = vmatmul.f32.vlgmr.msrb.gmra.mxu1 %v3666_v15 }
0x123b   :  { %3869 = vmatmul.f32.vlgmr.msrb.gmra.mxu0 %v3666_v15  ;;  %3906 = vmatmul.f32.gmra.mxu1 %v3674_v63 }
0x1243   :  { %3873 = vmatmul.f32.gmra.mxu0 %v3674_v63 }
0x12a0   :  { %v3741_v7 = vpop.f32.mrf.mxu1 }
0x12a8   :  { %v3672_v10 = vpop.f32.mrf.mxu0  ;;  %v3745_v14 = vpop.f32.mrf.mxu1 }
0x12a9   :  { %v3673_v11 = vadd.f32 %v4019_v9, %v3672_v10  ;;  %v3783_v39 = vpop.f32.mrf.mxu2 }
0x12aa   :  { %v3819_v16 = vpop.f32.mrf.mxu3 }
0x12ab   :  { %v3742_v17 = vadd.f32 %v3741_v7, %v3673_v11 }
0x12ad   :  { %v3784_v43 = vadd.f32 %v3783_v39, %v3742_v17 }
0x12af   :  { %v3820_v3 = vadd.f32 %v3819_v16, %v3784_v43 }
0x12b0   :  { %v3680_v40 = vpop.f32.mrf.mxu0  ;;  %v3903_v20 = vpop.f32.mrf.mxu1 }
0x12b1   :  { %v3681_v2 = vadd.f32 %v4019_v9, %v3680_v40  ;;  %v3788_v24 = vpop.f32.mrf.mxu2 }
0x12b2   :  { %v3825_v22 = vpop.f32.mrf.mxu3 }
0x12b3   :  { %v3746_v6 = vadd.f32 %v3745_v14, %v3681_v2 }
0x12b5   :  { %v3789_v26 = vadd.f32 %v3788_v24, %v3746_v6 }
0x12b7   :  { %v3826_v23 = vadd.f32 %v3825_v22, %v3789_v26 }
0x12b8   :  { %v3870_v8 = vpop.f32.mrf.mxu0  ;;  %v3907_v32 = vpop.f32.mrf.mxu1 }
0x12b9   :  { %v3871_v21 = vadd.f32 %v3870_v8, %v3820_v3 }
0x12bb   :  { %v3904_v25 = vadd.f32 %v3903_v20, %v3871_v21 }
0x12bd   :  { %v3910_v27 = vadd.f32 %v3904_v25, %v4749_v18 }
0x12bf   :  { %v3914_v29 = vsel %vm194_vm0, %v3910_v27, 0.0 }
0x12c0   :  { %v3874_v28 = vpop.f32.mrf.mxu0  ;;  %3915 = vadd.xlane.f32.xlu2 %v3914_v29 }
0x12c1   :  { %v3875_v30 = vadd.f32 %v3874_v28, %v3826_v23 }
0x12c3   :  { %v3908_v33 = vadd.f32 %v3907_v32, %v3875_v30 }
0x12c5   :  { %v3911_v34 = vadd.f32 %v3908_v33, %v4754_v56 }
0x12c7   :  { %v3917_v35 = vsel %vm194_vm0, %v3911_v34, 0.0 }
0x12c8   :  { %3918 = vadd.xlane.f32.xlu2 %v3917_v35 }
0x1333   :  { %v3916_v36 = vpop.xlane.xlu2 %3915 }
0x1334   :  { %v3920_v37 = vmul.f32 %v3916_v36, %v4732_v31 }
0x1336   :  { %v3922_v41 = vsub.f32 %v3910_v27, %v3920_v37 }
0x1338   :  { %v3924_v19 = vmul.f32 %v3922_v41, %v3922_v41 }
0x133a   :  { %v3926_v18 = vsel %vm194_vm0, %v3924_v19, 0.0 }
0x133b   :  { %3927 = vadd.xlane.f32.xlu2 %v3926_v18  ;;  %v3919_v38 = vpop.xlane.xlu2 %3918 }
0x133c   :  { %v3921_v44 = vmul.f32 %v3919_v38, %v4732_v31 }
0x133e   :  { %v3923_v52 = vsub.f32 %v3911_v34, %v3921_v44 }
0x1340   :  { %v3925_v45 = vmul.f32 %v3923_v52, %v3923_v52 }
0x1342   :  { %v3929_v46 = vsel %vm194_vm0, %v3925_v45, 0.0 }
0x1343   :  { %3930 = vadd.xlane.f32.xlu2 %v3929_v46 }
0x13ae   :  { %v3928_v56 = vpop.xlane.xlu2 %3927 }
0x13af   :  { %v3932_v47 = vmul.f32 %v3928_v56, %v4732_v31 }
0x13b1   :  { %v3934_v48 = vadd.f32 1e-05, %v3932_v47 }
0x13b3   :  { %4060 = vrsqrt.f32 %v3934_v48  ;;  %vm3942_vm2 = vweird.f32 %v3934_v48 }
0x13b6   :  { %v3931_v49 = vpop.xlane.xlu2 %3930 }
0x13b7   :  { %v3933_v50 = vmul.f32 %v3931_v49, %v4732_v31 }
0x13b9   :  { %v4061_v51 = vpop.eup %4060  ;;  %v3935_v53 = vadd.f32 1e-05, %v3933_v50 }
0x13ba   :  { %v3937_v12 = vmul.f32 %v4061_v51, %v3934_v48  ;;  %vm3943_vm15 = vweird.f32 %v4061_v51 }
0x13bb   :  { %4062 = vrsqrt.f32 %v3935_v53  ;;  %vm3944_vm3 = vmor %vm3942_vm2, %vm3943_vm15  ;;  %vm3952_vm5 = vweird.f32 %v3935_v53 }
0x13bc   :  { %v3938_v15 = vmul.f32 %v4061_v51, %v3937_v12 }
0x13be   :  { %v3939_v54 = vmul.f32 0.5, %v3938_v15 }
0x13c0   :  { %v3940_v55 = vsub.f32 1.5, %v3939_v54 }
0x13c1   :  { %v4063_v57 = vpop.eup %4062 }
0x13c2   :  { %v3941_v58 = vmul.f32 %v4061_v51, %v3940_v55  ;;  %v3947_v42 = vmul.f32 %v4063_v57, %v3935_v53  ;;  %vm3953_vm4 = vweird.f32 %v4063_v57 }
0x13c3   :  { %vm3954_vm6 = vmor %vm3952_vm5, %vm3953_vm4 }
0x13c4   :  { %v3945_v13 = vsel %vm3944_vm3, %v4061_v51, %v3941_v58  ;;  %v3948_v60 = vmul.f32 %v4063_v57, %v3947_v42 }
0x13c5   :  { %v3956_v62 = vmul.f32 %v3945_v13, %v3922_v41 }
0x13c6   :  { %v3949_v63 = vmul.f32 0.5, %v3948_v60 }
0x13c7   :  { %v3961_v31 = vmul.f32 %v4020_v59, %v3956_v62 }
0x13c8   :  { %v3950_v0 = vsub.f32 1.5, %v3949_v63 }
0x13c9   :  { %v3966_v1 = vadd.f32 %v4021_v61, %v3961_v31 }
0x13ca   :  { %v3951_v4 = vmul.f32 %v4063_v57, %v3950_v0 }
0x13cb   :  { %3968 = vst.msk [vmem:[%s4864_s13] sm:$0xff] %vm194_vm0, %v3966_v1 }
0x13cc   :  { %v3955_v5 = vsel %vm3954_vm6, %v4063_v57, %v3951_v4 }
0x13cd   :  { %v3957_v7 = vmul.f32 %v3955_v5, %v3923_v52 }
0x13cf   :  { %v3962_v9 = vmul.f32 %v4020_v59, %v3957_v7 }
0x13d1   :  { %v3967_v10 = vadd.f32 %v4021_v61, %v3962_v9 }
0x13d3   :  { %3969 = vst.msk [vmem:[%s4864_s13 + $0x8] sm:$0xff] %vm194_vm0, %v3967_v10 }
0x13d4   :  { %3974 = vsyncpa [#allocation3], 1 }
0x13d5   :  { %3975 = vsyncpa [#allocation5], 1 }
0x13d6   :  { %3976 = vsyncpa [#allocation8], 1 }
0x13d7   :  { %3977 = vsyncpa [#allocation11], 1 }
0x13d8   :  { %3978 = vsyncpa [#allocation14], 1 }
0x13d9   :  { %3979 = vsyncpa [#allocation17], 1 }

// kernel: vanilla_transformer_forward.6
= control target key start
LH: loop header
LB: loop body
LE: loop exit
PB: predicated region body
PF: predicated region fallthrough
CT: control target
= control target key end

     0   :  { %18 = vsyncpa [#allocation3], 0  ;;  %s3954_s28 = smov [#allocation2]   ;;  %s3955_s30 = smov 128   ;;  %s4486_s0 = inlined_call_operand.vmem [shape: f32[16,32], index: 0, kind: input, shape index: {}]   ;;  %s4487_s1 = inlined_call_operand.vmem [shape: f32[32,96], index: 1, kind: input, shape index: {}]   ;;  %s4488_s2 = inlined_call_operand.vmem [shape: f32[1,96], index: 2, kind: input, shape index: {}]   ;;  %s4489_s3 = inlined_call_operand.vmem [shape: f32[32,32], index: 3, kind: input, shape index: {}]   ;;  %s4490_s4 = inlined_call_operand.vmem [shape: f32[1,32], index: 4, kind: input, shape index: {}]   ;;  %s4491_s5 = inlined_call_operand.vmem [shape: f32[1,32], index: 5, kind: input, shape index: {}]   ;;  %s4492_s6 = inlined_call_operand.vmem [shape: f32[1,32], index: 6, kind: input, shape index: {}]   ;;  %s4493_s7 = inlined_call_operand.hbm [shape: f32[32,64], index: 7, kind: input, shape index: {}]   ;;  %s4494_s8 = inlined_call_operand.vmem [shape: f32[1,64], index: 8, kind: input, shape index: {}]   ;;  %s4495_s9 = inlined_call_operand.vmem [shape: f32[64,32], index: 9, kind: input, shape index: {}]   ;;  %s4496_s10 = inlined_call_operand.vmem [shape: f32[1,32], index: 10, kind: input, shape index: {}]   ;;  %s4497_s11 = inlined_call_operand.vmem [shape: f32[1,32], index: 11, kind: input, shape index: {}]   ;;  %s4498_s12 = inlined_call_operand.vmem [shape: f32[1,32], index: 12, kind: input, shape index: {}]   ;;  %s4499_s13 = inlined_call_operand.vmem [shape: f32[16,32], index: 13, kind: output, shape index: {}]  }
   0x1   :  { %s37_s27 = sshll.u32 %s4493_s7, 4  ;;  %s39_s29 = sshll.u32 %s3954_s28, 4  ;;  %s38_s27 = int_to_ptr.hbm [resolvable:$true] %s37_s27  ;;  %s40_s29 = int_to_ptr.vmem [resolvable:$true] %s39_s29 }
   0x2   :  { %s3956_s14 = smov 8  }
   0x3   :  { %45 = dma.hbm_to_vmem [thread:$0]  %s38_s27, 512, %s40_s29, [#allocation3], %s3955_s30, %s3955_s30, %s3956_s14  }
   0x4   :  { %3952 = dma.done.wait [#allocation3], 512  }
   0x5   :  { %3953 = vsyncadd [#allocation3], 4294966784  ;;  %vm70_vm0 = vcmask 261120   ;;  %v65_v0 = vld [vmem:[%s4487_s1 + $0x18] sm:$0xff]  ;;  %v64_v1 = vld [vmem:[%s4487_s1 + $0x10] sm:$0xff]  ;;  %s3957_s27 = smov 88  }
   0x6   :  { %v63_v2 = vld [vmem:[%s4487_s1 + $0x8] sm:$0xff]  ;;  %v89_v3 = vand.u32 4294901760, %v65_v0  ;;  %v4054_v4 = vand.u32 4294901760, %v64_v1  ;;  %v62_v6 = vld [vmem:[%s4487_s1] sm:$0xff]  ;;  %s3959_s28 = smov 120   ;;  %vm296_vm1 = vcmask 64512  }
   0x7   :  { %v4056_v5 = vand.u32 4294901760, %v63_v2  ;;  %v61_v7 = vld [vmem:[%s4486_s0 + $0x8] sm:$0xff]  ;;  %v60_v8 = vld [vmem:[%s4486_s0] sm:$0xff]  ;;  %v4067_v9 = vand.u32 4294901760, %v62_v6  ;;  %s3960_s29 = smov 56   ;;  %s3961_s30 = smov 112  }
   0x8   :  { %v75_v10 = vsel %vm70_vm0, %v61_v7, 0  ;;  %v72_v11 = vsel %vm70_vm0, %v60_v8, 0  ;;  %3851 = vmatpush.msra.mxu2 %v89_v3  ;;  %v127_v12 = vsub.f32 %v65_v0, %v89_v3  ;;  %v133_v14 = vsub.f32 %v64_v1, %v4054_v4  ;;  %90 = vmatpush.msra.mxu0 %v89_v3  ;;  %v4095_v39 = vld [vmem:[%s4488_s2] ss:$0 sm:$0xff]  ;;  %s3958_s2 = smov 96   ;;  %s3962_s15 = smov 64  }
   0x9   :  { %v4071_v13 = vand.u32 4294901760, %v75_v10  ;;  %v139_v15 = vsub.f32 %v63_v2, %v4056_v5  ;;  %v145_v16 = vsub.f32 %v62_v6, %v4067_v9  ;;  %v97_v17 = vand.u32 4294901760, %v72_v11  ;;  %s3963_s16 = smov 80   ;;  %s3964_s17 = smov 48  }
   0xa   :  { %3852 = vmatpush.msra.mxu2 %v4054_v4  ;;  %v128_v18 = vand.u32 4294901760, %v127_v12  ;;  %v134_v20 = vand.u32 4294901760, %v133_v14  ;;  %92 = vmatpush.msra.mxu0 %v4054_v4  ;;  %s3965_s18 = smov 104   ;;  %s3966_s7 = smov 72  }
   0xb   :  { %v106_v19 = vsub.f32 %v75_v10, %v4071_v13  ;;  %v140_v21 = vand.u32 4294901760, %v139_v15  ;;  %v146_v22 = vand.u32 4294901760, %v145_v16  ;;  %v98_v23 = vsub.f32 %v72_v11, %v97_v17  ;;  %s3967_s19 = smov 40   ;;  %s3968_s20 = smov 16  }
   0xc   :  { %3853 = vmatpush.msra.mxu2 %v4056_v5  ;;  %v129_v24 = vsub.f32 %v127_v12, %v128_v18  ;;  %v135_v26 = vsub.f32 %v133_v14, %v134_v20  ;;  %94 = vmatpush.msra.mxu0 %v4056_v5 }
   0xd   :  { %v107_v25 = vand.u32 4294901760, %v106_v19  ;;  %v141_v27 = vsub.f32 %v139_v15, %v140_v21  ;;  %v99_v28 = vand.u32 4294901760, %v98_v23  ;;  %v147_v32 = vsub.f32 %v145_v16, %v146_v22 }
   0xe   :  { %3854 = vmatpush.msra.mxu2 %v4067_v9  ;;  %v130_v29 = vand.u32 4294901760, %v129_v24  ;;  %v136_v31 = vand.u32 4294901760, %v135_v26  ;;  %96 = vmatpush.msra.mxu0 %v4067_v9 }
   0xf   :  { %v108_v30 = vsub.f32 %v106_v19, %v107_v25  ;;  %v100_v33 = vsub.f32 %v98_v23, %v99_v28  ;;  %v142_v35 = vand.u32 4294901760, %v141_v27  ;;  %v148_v37 = vand.u32 4294901760, %v147_v32 }
  0x10   :  { %173 = vmatpush.msrb.mxu2 %v127_v12  ;;  %242 = vmatpush.msrb.mxu0 %v128_v18 }
  0x11   :  { %3855 = vmatpush.msra.mxu3 %v130_v29  ;;  %v109_v34 = vand.u32 4294901760, %v108_v30  ;;  %131 = vmatpush.msra.mxu1 %v130_v29  ;;  %v101_v36 = vand.u32 4294901760, %v100_v33 }
  0x12   :  { %176 = vmatpush.msrb.mxu2 %v133_v14  ;;  %246 = vmatpush.msrb.mxu0 %v134_v20 }
  0x13   :  { %110 = vmatmul.f32.vlgmr.msra.gmra.mxu2 %v109_v34  ;;  %3856 = vmatpush.msra.mxu3 %v136_v31 }
  0x14   :  { %179 = vmatpush.msrb.mxu2 %v139_v15  ;;  %137 = vmatpush.msra.mxu1 %v136_v31 }
  0x15   :  { %3857 = vmatpush.msra.mxu3 %v142_v35  ;;  %102 = vmatmul.f32.vlgmr.msra.gmra.mxu0 %v101_v36 }
  0x16   :  { %182 = vmatpush.msrb.mxu2 %v145_v16  ;;  %143 = vmatpush.msra.mxu1 %v142_v35 }
  0x17   :  { %3858 = vmatpush.msra.mxu3 %v148_v37  ;;  %250 = vmatpush.msrb.mxu0 %v140_v21 }
  0x18   :  { %155 = vmatmul.f32.vlgmr.msra.gmra.mxu3 %v4071_v13  ;;  %149 = vmatpush.msra.mxu1 %v148_v37 }
  0x19   :  { %207 = vmatpush.msrb.mxu3 %v89_v3  ;;  %151 = vmatmul.f32.vlgmr.msra.gmra.mxu1 %v97_v17 }
  0x1a   :  { %277 = vmatpush.msrb.mxu1 %v89_v3  ;;  %254 = vmatpush.msrb.mxu0 %v146_v22 }
  0x1b   :  { %185 = vmatmul.f32.vlgmr.msrb.gmra.mxu2 %v98_v23  ;;  %209 = vmatpush.msrb.mxu3 %v4054_v4 }
  0x1c   :  { %279 = vmatpush.msrb.mxu1 %v4054_v4 }
  0x1d   :  { %211 = vmatpush.msrb.mxu3 %v4056_v5  ;;  %256 = vmatmul.f32.vlgmr.msrb.gmra.mxu0 %v97_v17 }
  0x1e   :  { %281 = vmatpush.msrb.mxu1 %v4056_v5 }
  0x1f   :  { %213 = vmatpush.msrb.mxu3 %v4067_v9 }
  0x20   :  { %217 = vmatmul.f32.vlgmr.msrb.gmra.mxu3 %v99_v28  ;;  %283 = vmatpush.msrb.mxu1 %v4067_v9 }
  0x21   :  { %285 = vmatmul.f32.vlgmr.msrb.gmra.mxu1 %v97_v17 }
  0x23   :  { %190 = vmatmul.f32.gmra.mxu2 %v106_v19 }
  0x25   :  { %260 = vmatmul.f32.gmra.mxu0 %v4071_v13 }
  0x28   :  { %223 = vmatmul.f32.gmra.mxu3 %v107_v25 }
  0x29   :  { %289 = vmatmul.f32.gmra.mxu1 %v4071_v13 }
  0x92   :  { %v103_v38 = vpop.f32.mrf.mxu0 }
  0x93   :  { %v104_v41 = vadd.f32 %v4095_v39, %v103_v38 }
  0x96   :  { %v4097_v40 = vpop.f32.mrf.mxu2  ;;  %v152_v42 = vpop.f32.mrf.mxu1 }
  0x97   :  { %v153_v44 = vadd.f32 %v152_v42, %v104_v41 }
  0x9a   :  { %v257_v48 = vpop.f32.mrf.mxu0 }
  0x9b   :  { %v4100_v43 = vpop.f32.mrf.mxu3 }
  0x9e   :  { %v186_v45 = vpop.f32.mrf.mxu2  ;;  %v286_v50 = vpop.f32.mrf.mxu1 }
  0x9f   :  { %v187_v46 = vadd.f32 %v186_v45, %v153_v44 }
  0xa2   :  { %v4117_v6 = vpop.f32.mrf.mxu0 }
  0xa3   :  { %v218_v47 = vpop.f32.mrf.mxu3 }
  0xa4   :  { %v219_v49 = vadd.f32 %v218_v47, %v187_v46 }
  0xa6   :  { %v258_v51 = vadd.f32 %v257_v48, %v219_v49  ;;  %v4113_v2 = vpop.f32.mrf.mxu2  ;;  %v4119_v8 = vpop.f32.mrf.mxu1 }
  0xa8   :  { %v4102_v52 = vadd.f32 %v286_v50, %v258_v51 }
  0xaa   :  { %626 = vrot.lane.b32.xlu2 %v4102_v52, %s3957_s27  ;;  %294 = vrot.lane.b32.xlu0 %v4102_v52, %s3958_s2  ;;  %v297_v53 = vsel %vm296_vm1, %v4102_v52, 0 }
  0xab   :  { %v318_v54 = vand.u32 4294901760, %v297_v53  ;;  %v4115_v3 = vpop.f32.mrf.mxu3 }
  0xad   :  { %v319_v55 = vsub.f32 %v297_v53, %v318_v54 }
  0xaf   :  { %v320_v56 = vand.u32 4294901760, %v319_v55 }
  0xb1   :  { %v321_v59 = vsub.f32 %v319_v55, %v320_v56 }
  0xb2   :  { %624 = vrot.lane.b32.xlu2 %v4102_v52, %s3959_s28 }
  0xb3   :  { %v322_v62 = vand.u32 4294901760, %v321_v59 }
 0x104   :  { %v627_v25 = vpop.permute.xlu2 %626 }
 0x105   :  { %v630_v27 = vsel %vm296_vm1, %v627_v25, 0 }
 0x106   :  { %v647_v30 = vand.u32 4294901760, %v630_v27 }
 0x108   :  { %v674_v36 = vsub.f32 %v630_v27, %v647_v30 }
 0x10a   :  { %v675_v45 = vand.u32 4294901760, %v674_v36 }
 0x10c   :  { %v625_v34 = vpop.permute.xlu2 %624  ;;  %v676_v49 = vsub.f32 %v674_v36, %v675_v45 }
 0x10d   :  { %v628_v41 = vsel %vm296_vm1, %v625_v34, 0 }
 0x10e   :  { %v649_v46 = vand.u32 4294901760, %v628_v41 }
 0x110   :  { %v650_v51 = vsub.f32 %v628_v41, %v649_v46 }
 0x11c   :  { %v295_v57 = vpop.permute.xlu0 %294 }
 0x11d   :  { %v299_v58 = vsel %vm296_vm1, %v295_v57, 0  ;;  %v677_v57 = vand.u32 4294901760, %v676_v49 }
 0x11e   :  { %v316_v60 = vand.u32 4294901760, %v299_v58 }
 0x120   :  { %v343_v61 = vsub.f32 %v299_v58, %v316_v60  ;;  %317 = vmatpush.xpose.msra.mxu2 %v316_v60  ;;  %441 = vmatpush.xpose.msra.mxu1 %v316_v60 }
 0x122   :  { %v344_v63 = vand.u32 4294901760, %v343_v61 }
 0x123   :  { %323 = vmatmul.f32.vlgmr.msra.gmra.mxu2 %v322_v62  ;;  %443 = vmatmul.f32.vlgmr.msra.gmra.mxu1 %v318_v54 }
 0x124   :  { %370 = vmatpush.xpose.msrb.mxu2 %v343_v61  ;;  %v345_v0 = vsub.f32 %v343_v61, %v344_v63  ;;  %419 = vmatpush.xpose.msra.mxu0 %v344_v63  ;;  %v651_v61 = vand.u32 4294901760, %v650_v51 }
 0x126   :  { %v346_v1 = vand.u32 4294901760, %v345_v0 }
 0x127   :  { %421 = vmatmul.f32.vlgmr.msra.gmra.mxu0 %v318_v54 }
 0x128   :  { %347 = vmatpush.xpose.msra.mxu3 %v346_v1 }
 0x12b   :  { %349 = vmatmul.f32.vlgmr.msra.gmra.mxu3 %v318_v54  ;;  %373 = vmatmul.f32.vlgmr.msrb.gmra.mxu2 %v319_v55 }
 0x12c   :  { %393 = vmatpush.xpose.msrb.mxu3 %v316_v60 }
 0x133   :  { %397 = vmatmul.f32.vlgmr.msrb.gmra.mxu3 %v320_v56 }
 0x1a0   :  { %v444_v15 = vpop.f32.mrf.mxu1 }
 0x1a4   :  { %v422_v13 = vpop.f32.mrf.mxu0 }
 0x1a6   :  { %v324_v4 = vpop.f32.mrf.mxu2 }
 0x1ae   :  { %v350_v5 = vpop.f32.mrf.mxu3  ;;  %v374_v9 = vpop.f32.mrf.mxu2 }
 0x1af   :  { %v351_v7 = vadd.f32 %v350_v5, %v324_v4  ;;  %v652_v4 = vsub.f32 %v650_v51, %v651_v61 }
 0x1b1   :  { %v375_v10 = vadd.f32 %v374_v9, %v351_v7  ;;  %v653_v9 = vand.u32 4294901760, %v652_v4 }
 0x1b6   :  { %v398_v11 = vpop.f32.mrf.mxu3 }
 0x1b7   :  { %v399_v12 = vadd.f32 %v398_v11, %v375_v10 }
 0x1b9   :  { %v423_v14 = vadd.f32 %v422_v13, %v399_v12 }
 0x1bb   :  { %v445_v16 = vadd.f32 %v444_v15, %v423_v14 }
 0x1bd   :  { %v447_v17 = vmul.f32 0.35355338, %v445_v16 }
 0x1bf   :  { %v448_v18 = vsel %vm296_vm1, %v447_v17, -inf }
 0x1c0   :  { %449 = vmax.xlane.f32.xlu0 %v448_v18 }
 0x1d4   :  { %803 = vrot.lane.b32.xlu0 %v4102_v52, %s3960_s29 }
 0x1dc   :  { %955 = vrot.lane.b32.xlu0 %v4102_v52, %s3961_s30 }
 0x233   :  { %v450_v19 = vpop.xlane.xlu0 %449 }
 0x234   :  { %v451_v20 = vsub.f32 %v447_v17, %v450_v19 }
 0x236   :  { %v452_v21 = vmul.f32 1.442695, %v451_v20 }
 0x238   :  { %3884 = vpow2.f32 %v452_v21 }
 0x23e   :  { %v3885_v22 = vpop.eup %3884 }
 0x23f   :  { %v454_v23 = vsel %vm296_vm1, %v3885_v22, 0.0 }
 0x240   :  { %455 = vadd.xlane.f32.xlu1 %v454_v23 }
 0x246   :  { %v804_v53 = vpop.permute.xlu0 %803 }
 0x247   :  { %v824_v58 = vand.u32 4294901760, %v804_v53 }
 0x249   :  { %v851_v0 = vsub.f32 %v804_v53, %v824_v58 }
 0x24b   :  { %v852_v7 = vand.u32 4294901760, %v851_v0 }
 0x24d   :  { %v853_v10 = vsub.f32 %v851_v0, %v852_v7 }
 0x24e   :  { %v956_v49 = vpop.permute.xlu0 %955 }
 0x24f   :  { %v854_v11 = vand.u32 4294901760, %v853_v10 }
 0x259   :  { %472 = vrot.lane.b32.xlu1 %v4102_v52, %s3962_s15 }
 0x2b3   :  { %v456_v24 = vpop.xlane.xlu1 %455 }
 0x2b4   :  { %3886 = vrcp.f32 %v456_v24  ;;  %v468_v31 = vand.u32 2147483648, %v456_v24  ;;  %v466_v33 = vand.u32 2147483647, %v456_v24  ;;  %vm462_vm3 = vweird.f32 %v456_v24 }
 0x2b6   :  { %v469_v37 = vor.u32 1.1754944e-38, %v468_v31  ;;  %vm467_vm5 = vcmp.eq.f32.partialorder %v466_v33, 8.507059e+37 }
 0x2ba   :  { %v3887_v26 = vpop.eup %3886 }
 0x2bb   :  { %v458_v28 = vmul.f32 %v3887_v26, %v456_v24  ;;  %vm463_vm2 = vweird.f32 %v3887_v26 }
 0x2bc   :  { %vm464_vm4 = vmor %vm462_vm3, %vm463_vm2 }
 0x2bd   :  { %v459_v29 = vsub.f32 1.0, %v458_v28 }
 0x2bf   :  { %v460_v32 = vmul.f32 %v3887_v26, %v459_v29 }
 0x2c1   :  { %v461_v35 = vadd.f32 %v3887_v26, %v460_v32 }
 0x2c3   :  { %v465_v38 = vsel %vm464_vm4, %v3887_v26, %v461_v35 }
 0x2c4   :  { %v470_v42 = vsel %vm467_vm5, %v469_v37, %v465_v38 }
 0x2c5   :  { %v471_v44 = vmul.f32 %v3885_v22, %v470_v42 }
 0x2c7   :  { %v476_v47 = vsel %vm296_vm1, %v471_v44, 0 }
 0x2c8   :  { %v495_v48 = vand.u32 4294901760, %v476_v47 }
 0x2ca   :  { %v496_v50 = vsub.f32 %v476_v47, %v495_v48 }
 0x2cb   :  { %v473_v54 = vpop.permute.xlu1 %472 }
 0x2cc   :  { %v493_v55 = vand.u32 4294901760, %v473_v54  ;;  %v497_v56 = vand.u32 4294901760, %v496_v50 }
 0x2ce   :  { %v520_v59 = vsub.f32 %v473_v54, %v493_v55  ;;  %494 = vmatpush.msra.mxu2 %v493_v55  ;;  %570 = vmatpush.msrb.mxu1 %v493_v55  ;;  %v498_v60 = vsub.f32 %v496_v50, %v497_v56  ;;  %v959_v54 = vsel %vm296_vm1, %v956_v49, 0 }
 0x2cf   :  { %574 = vmatmul.f32.vlgmr.msrb.gmra.mxu1 %v497_v56 }
 0x2d0   :  { %v521_v62 = vand.u32 4294901760, %v520_v59  ;;  %678 = vmatpush.xpose.msra.mxu1 %v677_v57  ;;  %547 = vmatpush.msrb.mxu0 %v520_v59  ;;  %v499_v63 = vand.u32 4294901760, %v498_v60 }
 0x2d1   :  { %550 = vmatmul.f32.vlgmr.msrb.gmra.mxu0 %v496_v50 }
 0x2d2   :  { %v522_v1 = vsub.f32 %v520_v59, %v521_v62  ;;  %648 = vmatpush.xpose.msra.mxu0 %v647_v30  ;;  %500 = vmatmul.f32.vlgmr.msra.gmra.mxu2 %v499_v63  ;;  %v980_v59 = vand.u32 4294901760, %v959_v54 }
 0x2d3   :  { %596 = vmatpush.msrb.mxu2 %v521_v62 }
 0x2d4   :  { %772 = vmatpush.xpose.msrb.mxu1 %v647_v30  ;;  %v523_v5 = vand.u32 4294901760, %v522_v1  ;;  %v981_v1 = vsub.f32 %v959_v54, %v980_v59 }
 0x2d5   :  { %701 = vmatpush.xpose.msra.mxu2 %v674_v36 }
 0x2d6   :  { %750 = vmatpush.xpose.msrb.mxu0 %v675_v45  ;;  %524 = vmatpush.msra.mxu3 %v523_v5 }
 0x2d7   :  { %526 = vmatmul.f32.vlgmr.msra.gmra.mxu3 %v495_v48  ;;  %680 = vmatmul.f32.vlgmr.msra.gmra.mxu1 %v649_v46 }
 0x2d8   :  { %618 = vmatpush.msrb.mxu3 %v493_v55  ;;  %901 = vmatpush.msra.mxu1 %v824_v58 }
 0x2d9   :  { %654 = vmatmul.f32.vlgmr.msra.gmra.mxu0 %v653_v9  ;;  %v982_v9 = vand.u32 4294901760, %v981_v1 }
 0x2da   :  { %724 = vmatpush.xpose.msra.mxu3 %v647_v30  ;;  %878 = vmatpush.msra.mxu0 %v851_v0 }
 0x2db   :  { %598 = vmatmul.f32.vlgmr.msrb.gmra.mxu2 %v495_v48 }
 0x2dc   :  { %825 = vmatpush.msrb.mxu2 %v824_v58 }
 0x2df   :  { %620 = vmatmul.f32.vlgmr.msrb.gmra.mxu3 %v495_v48  ;;  %774 = vmatmul.f32.vlgmr.msrb.gmra.mxu1 %v649_v46 }
 0x2e0   :  { %855 = vmatpush.msrb.mxu3 %v854_v11 }
 0x2e1   :  { %752 = vmatmul.f32.vlgmr.msrb.gmra.mxu0 %v649_v46 }
 0x2e3   :  { %704 = vmatmul.f32.vlgmr.msra.gmra.mxu2 %v650_v51 }
 0x2e4   :  { %927 = vmatpush.msra.mxu2 %v852_v7 }
 0x2e7   :  { %728 = vmatmul.f32.vlgmr.msra.gmra.mxu3 %v651_v61 }
 0x2e8   :  { %949 = vmatpush.msra.mxu3 %v824_v58 }
 0x34c   :  { %v4136_v14 = vpop.f32.mrf.mxu1 }
 0x34e   :  { %v4134_v13 = vpop.f32.mrf.mxu0 }
 0x354   :  { %v681_v19 = vpop.f32.mrf.mxu1 }
 0x355   :  { %v4132_v12 = vpop.f32.mrf.mxu2 }
 0x356   :  { %v655_v17 = vpop.f32.mrf.mxu0 }
 0x357   :  { %v682_v21 = vadd.f32 %v681_v19, %v655_v17  ;;  %v983_v19 = vsub.f32 %v981_v1, %v982_v9 }
 0x35a   :  { %v4138_v15 = vpop.f32.mrf.mxu3 }
 0x35c   :  { %v775_v27 = vpop.f32.mrf.mxu1 }
 0x35e   :  { %v4140_v16 = vpop.f32.mrf.mxu2  ;;  %v753_v25 = vpop.f32.mrf.mxu0 }
 0x362   :  { %v4142_v18 = vpop.f32.mrf.mxu3 }
 0x366   :  { %v705_v20 = vpop.f32.mrf.mxu2 }
 0x367   :  { %v706_v22 = vadd.f32 %v705_v20, %v682_v21 }
 0x36a   :  { %v729_v23 = vpop.f32.mrf.mxu3 }
 0x36b   :  { %v730_v24 = vadd.f32 %v729_v23, %v706_v22  ;;  %v984_v23 = vand.u32 4294901760, %v983_v19 }
 0x36d   :  { %v754_v26 = vadd.f32 %v753_v25, %v730_v24 }
 0x36f   :  { %v776_v28 = vadd.f32 %v775_v27, %v754_v26 }
 0x371   :  { %v778_v29 = vmul.f32 0.35355338, %v776_v28 }
 0x373   :  { %v779_v30 = vsel %vm296_vm1, %v778_v29, -inf }
 0x374   :  { %780 = vmax.xlane.f32.xlu2 %v779_v30 }
 0x38c   :  { %957 = vrot.lane.b32.xlu2 %v4102_v52, %s3963_s16 }
 0x394   :  { %1134 = vrot.lane.b32.xlu2 %v4102_v52, %s3964_s17 }
 0x39c   :  { %1286 = vrot.lane.b32.xlu2 %v4102_v52, %s3965_s18 }
 0x3e7   :  { %v781_v31 = vpop.xlane.xlu2 %780 }
 0x3e8   :  { %v782_v32 = vsub.f32 %v778_v29, %v781_v31 }
 0x3ea   :  { %v783_v33 = vmul.f32 1.442695, %v782_v32 }
 0x3ec   :  { %3888 = vpow2.f32 %v783_v33 }
 0x3ef   :  { %v958_v34 = vpop.permute.xlu2 %957 }
 0x3f0   :  { %v961_v35 = vsel %vm296_vm1, %v958_v34, 0 }
 0x3f1   :  { %v978_v36 = vand.u32 4294901760, %v961_v35 }
 0x3f2   :  { %v3889_v37 = vpop.eup %3888 }
 0x3f3   :  { %v1005_v38 = vsub.f32 %v961_v35, %v978_v36  ;;  %979 = vmatpush.xpose.msrb.mxu0 %v978_v36  ;;  %v785_v41 = vsel %vm296_vm1, %v3889_v37, 0.0 }
 0x3f4   :  { %786 = vadd.xlane.f32.xlu1 %v785_v41 }
 0x3f5   :  { %v1006_v42 = vand.u32 4294901760, %v1005_v38 }
 0x3f7   :  { %v1007_v44 = vsub.f32 %v1005_v38, %v1006_v42  ;;  %v1135_v51 = vpop.permute.xlu2 %1134 }
 0x3f8   :  { %v1155_v57 = vand.u32 4294901760, %v1135_v51 }
 0x3f9   :  { %v1008_v45 = vand.u32 4294901760, %v1007_v44 }
 0x3fa   :  { %v1182_v63 = vsub.f32 %v1135_v51, %v1155_v57 }
 0x3fb   :  { %1009 = vmatpush.xpose.msrb.mxu1 %v1008_v45 }
 0x3fc   :  { %v1183_v7 = vand.u32 4294901760, %v1182_v63 }
 0x3fe   :  { %v1184_v17 = vsub.f32 %v1182_v63, %v1183_v7 }
 0x400   :  { %v1185_v22 = vand.u32 4294901760, %v1184_v17 }
 0x467   :  { %v787_v46 = vpop.xlane.xlu1 %786 }
 0x468   :  { %3890 = vrcp.f32 %v787_v46  ;;  %v799_v53 = vand.u32 2147483648, %v787_v46  ;;  %v797_v56 = vand.u32 2147483647, %v787_v46  ;;  %vm793_vm7 = vweird.f32 %v787_v46 }
 0x46a   :  { %v800_v60 = vor.u32 1.1754944e-38, %v799_v53  ;;  %vm798_vm9 = vcmp.eq.f32.partialorder %v797_v56, 8.507059e+37 }
 0x46e   :  { %v3891_v47 = vpop.eup %3890 }
 0x46f   :  { %v789_v48 = vmul.f32 %v3891_v47, %v787_v46  ;;  %vm794_vm6 = vweird.f32 %v3891_v47 }
 0x470   :  { %vm795_vm8 = vmor %vm793_vm7, %vm794_vm6 }
 0x471   :  { %v790_v50 = vsub.f32 1.0, %v789_v48 }
 0x473   :  { %v791_v55 = vmul.f32 %v3891_v47, %v790_v50 }
 0x475   :  { %v792_v58 = vadd.f32 %v3891_v47, %v791_v55 }
 0x477   :  { %v796_v61 = vsel %vm795_vm8, %v3891_v47, %v792_v58 }
 0x478   :  { %v801_v62 = vsel %vm798_vm9, %v800_v60, %v796_v61 }
 0x479   :  { %v802_v0 = vmul.f32 %v3889_v37, %v801_v62  ;;  %v1287_v62 = vpop.permute.xlu2 %1286 }
 0x47b   :  { %v807_v4 = vsel %vm296_vm1, %v802_v0, 0 }
 0x47c   :  { %v826_v5 = vand.u32 4294901760, %v807_v4 }
 0x47e   :  { %857 = vmatmul.f32.vlgmr.msrb.gmra.mxu3 %v826_v5  ;;  %v827_v10 = vsub.f32 %v807_v4, %v826_v5 }
 0x47f   :  { %1055 = vmatpush.xpose.msrb.mxu3 %v978_v36 }
 0x480   :  { %881 = vmatmul.f32.vlgmr.msra.gmra.mxu0 %v827_v10  ;;  %v828_v11 = vand.u32 4294901760, %v827_v10 }
 0x481   :  { %1081 = vmatpush.xpose.msra.mxu0 %v1006_v42 }
 0x482   :  { %905 = vmatmul.f32.vlgmr.msra.gmra.mxu1 %v828_v11  ;;  %v829_v20 = vsub.f32 %v827_v10, %v828_v11 }
 0x483   :  { %1103 = vmatpush.xpose.msra.mxu1 %v978_v36 }
 0x484   :  { %v830_v21 = vand.u32 4294901760, %v829_v20 }
 0x486   :  { %831 = vmatmul.f32.vlgmr.msrb.gmra.mxu2 %v830_v21  ;;  %951 = vmatmul.f32.vlgmr.msra.gmra.mxu3 %v826_v5 }
 0x487   :  { %1032 = vmatpush.xpose.msrb.mxu2 %v1005_v38  ;;  %1186 = vmatpush.msra.mxu3 %v1185_v22 }
 0x488   :  { %985 = vmatmul.f32.vlgmr.msrb.gmra.mxu0 %v984_v23 }
 0x489   :  { %1209 = vmatpush.msrb.mxu0 %v1182_v63 }
 0x48a   :  { %1011 = vmatmul.f32.vlgmr.msrb.gmra.mxu1 %v980_v59 }
 0x48b   :  { %1232 = vmatpush.msrb.mxu1 %v1155_v57 }
 0x48e   :  { %929 = vmatmul.f32.vlgmr.msra.gmra.mxu2 %v826_v5  ;;  %1059 = vmatmul.f32.vlgmr.msrb.gmra.mxu3 %v982_v9 }
 0x48f   :  { %1156 = vmatpush.msra.mxu2 %v1155_v57  ;;  %1280 = vmatpush.msrb.mxu3 %v1155_v57 }
 0x490   :  { %1083 = vmatmul.f32.vlgmr.msra.gmra.mxu0 %v980_v59 }
 0x492   :  { %1105 = vmatmul.f32.vlgmr.msra.gmra.mxu1 %v980_v59 }
 0x496   :  { %1035 = vmatmul.f32.vlgmr.msrb.gmra.mxu2 %v981_v1  ;;  %v1290_v1 = vsel %vm296_vm1, %v1287_v62, 0 }
 0x497   :  { %1258 = vmatpush.msrb.mxu2 %v1183_v7  ;;  %v1311_v9 = vand.u32 4294901760, %v1290_v1 }
 0x499   :  { %v1312_v19 = vsub.f32 %v1290_v1, %v1311_v9 }
 0x4fd   :  { %v4157_v25 = vpop.f32.mrf.mxu0 }
 0x4ff   :  { %v4161_v27 = vpop.f32.mrf.mxu1 }
 0x501   :  { %v4155_v24 = vpop.f32.mrf.mxu3 }
 0x505   :  { %v986_v30 = vpop.f32.mrf.mxu0 }
 0x507   :  { %v1012_v31 = vpop.f32.mrf.mxu1 }
 0x508   :  { %v1013_v32 = vadd.f32 %v1012_v31, %v986_v30  ;;  %v1313_v31 = vand.u32 4294901760, %v1312_v19 }
 0x509   :  { %v4159_v26 = vpop.f32.mrf.mxu2  ;;  %v4163_v28 = vpop.f32.mrf.mxu3 }
 0x50d   :  { %v1084_v37 = vpop.f32.mrf.mxu0 }
 0x50f   :  { %v1106_v41 = vpop.f32.mrf.mxu1 }
 0x511   :  { %v4165_v29 = vpop.f32.mrf.mxu2  ;;  %v1060_v35 = vpop.f32.mrf.mxu3 }
 0x519   :  { %v1036_v33 = vpop.f32.mrf.mxu2 }
 0x51a   :  { %v1037_v34 = vadd.f32 %v1036_v33, %v1013_v32 }
 0x51c   :  { %v1061_v36 = vadd.f32 %v1060_v35, %v1037_v34 }
 0x51e   :  { %v1085_v38 = vadd.f32 %v1084_v37, %v1061_v36  ;;  %v1314_v36 = vsub.f32 %v1312_v19, %v1313_v31 }
 0x520   :  { %v1107_v42 = vadd.f32 %v1106_v41, %v1085_v38 }
 0x522   :  { %v1109_v44 = vmul.f32 0.35355338, %v1107_v42  ;;  %v1315_v42 = vand.u32 4294901760, %v1314_v36 }
 0x524   :  { %v1110_v45 = vsel %vm296_vm1, %v1109_v44, -inf }
 0x525   :  { %1111 = vmax.xlane.f32.xlu1 %v1110_v45 }
 0x53e   :  { %1288 = vrot.lane.b32.xlu1 %v4102_v52, %s3966_s7 }
 0x598   :  { %v1112_v46 = vpop.xlane.xlu1 %1111 }
 0x599   :  { %v1113_v47 = vsub.f32 %v1109_v44, %v1112_v46 }
 0x59b   :  { %v1114_v48 = vmul.f32 1.442695, %v1113_v47 }
 0x59d   :  { %3892 = vpow2.f32 %v1114_v48 }
 0x5a3   :  { %v3893_v49 = vpop.eup %3892 }
 0x5a4   :  { %v1116_v50 = vsel %vm296_vm1, %v3893_v49, 0.0 }
 0x5a5   :  { %1117 = vadd.xlane.f32.xlu0 %v1116_v50 }
 0x5b0   :  { %v1289_v51 = vpop.permute.xlu1 %1288 }
 0x5b1   :  { %v1292_v53 = vsel %vm296_vm1, %v1289_v51, 0 }
 0x5b2   :  { %v1309_v54 = vand.u32 4294901760, %v1292_v53 }
 0x5b4   :  { %v1336_v55 = vsub.f32 %v1292_v53, %v1309_v54  ;;  %1310 = vmatpush.xpose.msra.mxu0 %v1309_v54 }
 0x5b6   :  { %v1337_v56 = vand.u32 4294901760, %v1336_v55 }
 0x5b8   :  { %v1338_v57 = vsub.f32 %v1336_v55, %v1337_v56 }
 0x5b9   :  { %1465 = vrot.lane.b32.xlu0 %v4102_v52, %s3967_s19 }
 0x5ba   :  { %v1339_v58 = vand.u32 4294901760, %v1338_v57 }
 0x5bc   :  { %1340 = vmatpush.xpose.msra.mxu1 %v1339_v58 }
 0x618   :  { %v1118_v59 = vpop.xlane.xlu0 %1117 }
 0x619   :  { %3894 = vrcp.f32 %v1118_v59  ;;  %v1130_v0 = vand.u32 2147483648, %v1118_v59  ;;  %v1128_v5 = vand.u32 2147483647, %v1118_v59  ;;  %vm1124_vm11 = vweird.f32 %v1118_v59 }
 0x61b   :  { %v1131_v10 = vor.u32 1.1754944e-38, %v1130_v0  ;;  %vm1129_vm13 = vcmp.eq.f32.partialorder %v1128_v5, 8.507059e+37 }
 0x61f   :  { %v3895_v60 = vpop.eup %3894 }
 0x620   :  { %v1120_v61 = vmul.f32 %v3895_v60, %v1118_v59  ;;  %vm1125_vm10 = vweird.f32 %v3895_v60 }
 0x621   :  { %vm1126_vm12 = vmor %vm1124_vm11, %vm1125_vm10 }
 0x622   :  { %v1121_v63 = vsub.f32 1.0, %v1120_v61 }
 0x624   :  { %v1122_v4 = vmul.f32 %v3895_v60, %v1121_v63 }
 0x626   :  { %v1123_v7 = vadd.f32 %v3895_v60, %v1122_v4 }
 0x628   :  { %v1127_v52 = vsel %vm1126_vm12, %v3895_v60, %v1123_v7 }
 0x629   :  { %v1132_v11 = vsel %vm1129_vm13, %v1131_v10, %v1127_v52 }
 0x62a   :  { %v1133_v17 = vmul.f32 %v3893_v49, %v1132_v11 }
 0x62b   :  { %v1466_v20 = vpop.permute.xlu0 %1465 }
 0x62c   :  { %v1486_v21 = vand.u32 4294901760, %v1466_v20  ;;  %v1138_v22 = vsel %vm296_vm1, %v1133_v17, 0 }
 0x62d   :  { %v1157_v23 = vand.u32 4294901760, %v1138_v22 }
 0x62e   :  { %v1513_v30 = vsub.f32 %v1466_v20, %v1486_v21 }
 0x62f   :  { %1188 = vmatmul.f32.vlgmr.msra.gmra.mxu3 %v1157_v23  ;;  %v1158_v32 = vsub.f32 %v1138_v22, %v1157_v23 }
 0x630   :  { %v1514_v33 = vand.u32 4294901760, %v1513_v30  ;;  %1386 = vmatpush.xpose.msra.mxu3 %v1309_v54 }
 0x631   :  { %1212 = vmatmul.f32.vlgmr.msrb.gmra.mxu0 %v1158_v32  ;;  %v1159_v34 = vand.u32 4294901760, %v1158_v32 }
 0x632   :  { %v1515_v35 = vsub.f32 %v1513_v30, %v1514_v33  ;;  %1412 = vmatpush.xpose.msrb.mxu0 %v1337_v56 }
 0x633   :  { %1236 = vmatmul.f32.vlgmr.msrb.gmra.mxu1 %v1159_v34  ;;  %v1160_v37 = vsub.f32 %v1158_v32, %v1159_v34 }
 0x634   :  { %v1516_v38 = vand.u32 4294901760, %v1515_v35  ;;  %1434 = vmatpush.xpose.msrb.mxu1 %v1309_v54 }
 0x635   :  { %v1161_v41 = vand.u32 4294901760, %v1160_v37 }
 0x637   :  { %1162 = vmatmul.f32.vlgmr.msra.gmra.mxu2 %v1161_v41  ;;  %1282 = vmatmul.f32.vlgmr.msrb.gmra.mxu3 %v1157_v23 }
 0x638   :  { %1363 = vmatpush.xpose.msra.mxu2 %v1336_v55  ;;  %1517 = vmatpush.msrb.mxu3 %v1516_v38 }
 0x639   :  { %1316 = vmatmul.f32.vlgmr.msra.gmra.mxu0 %v1315_v42 }
 0x63a   :  { %1540 = vmatpush.msra.mxu0 %v1513_v30 }
 0x63b   :  { %1342 = vmatmul.f32.vlgmr.msra.gmra.mxu1 %v1311_v9 }
 0x63c   :  { %1563 = vmatpush.msra.mxu1 %v1486_v21 }
 0x63f   :  { %1260 = vmatmul.f32.vlgmr.msrb.gmra.mxu2 %v1157_v23  ;;  %1390 = vmatmul.f32.vlgmr.msra.gmra.mxu3 %v1313_v31 }
 0x640   :  { %1487 = vmatpush.msrb.mxu2 %v1486_v21  ;;  %1611 = vmatpush.msra.mxu3 %v1486_v21 }
 0x641   :  { %1414 = vmatmul.f32.vlgmr.msrb.gmra.mxu0 %v1311_v9 }
 0x643   :  { %1436 = vmatmul.f32.vlgmr.msrb.gmra.mxu1 %v1311_v9  ;;  %v112_v9 = vadd.f32 %v4095_v39, %v4097_v40 }
 0x645   :  { %v157_v10 = vadd.f32 %v4100_v43, %v112_v9 }
 0x647   :  { %1366 = vmatmul.f32.vlgmr.msra.gmra.mxu2 %v1312_v19  ;;  %v192_v52 = vadd.f32 %v4113_v2, %v157_v10 }
 0x648   :  { %1589 = vmatpush.msra.mxu2 %v1514_v33 }
 0x649   :  { %v225_v11 = vadd.f32 %v4115_v3, %v192_v52 }
 0x64b   :  { %v262_v17 = vadd.f32 %v4117_v6, %v225_v11 }
 0x64d   :  { %v4186_v19 = vadd.f32 %v4119_v8, %v262_v17 }
 0x64f   :  { %v1637_v38 = vsel %vm296_vm1, %v4186_v19, 0 }
 0x6ae   :  { %v1213_v45 = vpop.f32.mrf.mxu0 }
 0x6b0   :  { %v1237_v48 = vpop.f32.mrf.mxu1 }
 0x6b2   :  { %v1189_v44 = vpop.f32.mrf.mxu3 }
 0x6b6   :  { %v1317_v55 = vpop.f32.mrf.mxu0 }
 0x6b8   :  { %v1343_v57 = vpop.f32.mrf.mxu1 }
 0x6b9   :  { %v1344_v58 = vadd.f32 %v1343_v57, %v1317_v55 }
 0x6ba   :  { %v1163_v46 = vpop.f32.mrf.mxu2  ;;  %v1283_v51 = vpop.f32.mrf.mxu3 }
 0x6bb   :  { %v1190_v47 = vadd.f32 %v1189_v44, %v1163_v46  ;;  %v1658_v44 = vand.u32 4294901760, %v1637_v38 }
 0x6bd   :  { %v1214_v49 = vadd.f32 %v1213_v45, %v1190_v47 }
 0x6be   :  { %v1415_v63 = vpop.f32.mrf.mxu0 }
 0x6bf   :  { %v1238_v50 = vadd.f32 %v1237_v48, %v1214_v49  ;;  %v1659_v48 = vsub.f32 %v1637_v38, %v1658_v44 }
 0x6c0   :  { %v1437_v1 = vpop.f32.mrf.mxu1 }
 0x6c2   :  { %v1261_v53 = vpop.f32.mrf.mxu2  ;;  %v1391_v61 = vpop.f32.mrf.mxu3 }
 0x6c3   :  { %v1262_v54 = vadd.f32 %v1261_v53, %v1238_v50  ;;  %v1660_v53 = vand.u32 4294901760, %v1659_v48 }
 0x6c5   :  { %v4176_v56 = vadd.f32 %v1283_v51, %v1262_v54  ;;  %v1661_v57 = vsub.f32 %v1659_v48, %v1660_v53 }
 0x6ca   :  { %v1367_v59 = vpop.f32.mrf.mxu2 }
 0x6cb   :  { %v1368_v60 = vadd.f32 %v1367_v59, %v1344_v58  ;;  %v1662_v59 = vand.u32 4294901760, %v1661_v57 }
 0x6cd   :  { %v1392_v62 = vadd.f32 %v1391_v61, %v1368_v60 }
 0x6cf   :  { %v1416_v0 = vadd.f32 %v1415_v63, %v1392_v62 }
 0x6d1   :  { %v1438_v4 = vadd.f32 %v1437_v1, %v1416_v0 }
 0x6d3   :  { %v1440_v5 = vmul.f32 0.35355338, %v1438_v4 }
 0x6d5   :  { %v1441_v7 = vsel %vm296_vm1, %v1440_v5, -inf }
 0x6d6   :  { %1442 = vmax.xlane.f32.xlu2 %v1441_v7 }
 0x6ee   :  { %1635 = vrot.lane.b32.xlu2 %v4186_v19, %s3958_s2 }
 0x6f6   :  { %1966 = vrot.lane.b32.xlu2 %v4186_v19, %s3957_s27 }
 0x6fe   :  { %1964 = vrot.lane.b32.xlu2 %v4186_v19, %s3959_s28 }
 0x749   :  { %v1443_v39 = vpop.xlane.xlu2 %1442 }
 0x74a   :  { %v1444_v40 = vsub.f32 %v1440_v5, %v1443_v39 }
 0x74c   :  { %v1445_v43 = vmul.f32 1.442695, %v1444_v40 }
 0x74e   :  { %3896 = vpow2.f32 %v1445_v43 }
 0x751   :  { %v1636_v2 = vpop.permute.xlu2 %1635 }
 0x752   :  { %v1639_v3 = vsel %vm296_vm1, %v1636_v2, 0 }
 0x753   :  { %v1656_v6 = vand.u32 4294901760, %v1639_v3 }
 0x754   :  { %v3897_v20 = vpop.eup %3896 }
 0x755   :  { %v1683_v8 = vsub.f32 %v1639_v3, %v1656_v6  ;;  %1657 = vmatpush.xpose.msrb.mxu0 %v1656_v6  ;;  %v1447_v21 = vsel %vm296_vm1, %v3897_v20, 0.0 }
 0x756   :  { %1448 = vadd.xlane.f32.xlu1 %v1447_v21 }
 0x757   :  { %v1684_v22 = vand.u32 4294901760, %v1683_v8 }
 0x759   :  { %v1685_v23 = vsub.f32 %v1683_v8, %v1684_v22 }
 0x75b   :  { %v1686_v30 = vand.u32 4294901760, %v1685_v23 }
 0x75d   :  { %1687 = vmatpush.xpose.msrb.mxu1 %v1686_v30 }
 0x7c9   :  { %v1449_v31 = vpop.xlane.xlu1 %1448 }
 0x7ca   :  { %3898 = vrcp.f32 %v1449_v31  ;;  %v1461_v35 = vand.u32 2147483648, %v1449_v31  ;;  %v1459_v37 = vand.u32 2147483647, %v1449_v31  ;;  %vm1455_vm15 = vweird.f32 %v1449_v31 }
 0x7cc   :  { %v1462_v42 = vor.u32 1.1754944e-38, %v1461_v35  ;;  %vm1460_vm3 = vcmp.eq.f32.partialorder %v1459_v37, 8.507059e+37  ;;  %v1967_v35 = vpop.permute.xlu2 %1966 }
 0x7cd   :  { %v1970_v37 = vsel %vm296_vm1, %v1967_v35, 0 }
 0x7d0   :  { %v3899_v32 = vpop.eup %3898 }
 0x7d1   :  { %v1451_v33 = vmul.f32 %v3899_v32, %v1449_v31  ;;  %vm1456_vm14 = vweird.f32 %v3899_v32 }
 0x7d2   :  { %vm1457_vm2 = vmor %vm1455_vm15, %vm1456_vm14 }
 0x7d3   :  { %v1452_v34 = vsub.f32 1.0, %v1451_v33 }
 0x7d5   :  { %v1453_v36 = vmul.f32 %v3899_v32, %v1452_v34 }
 0x7d7   :  { %v1454_v41 = vadd.f32 %v3899_v32, %v1453_v36 }
 0x7d9   :  { %v1458_v45 = vsel %vm1457_vm2, %v3899_v32, %v1454_v41 }
 0x7da   :  { %v1463_v46 = vsel %vm1460_vm3, %v1462_v42, %v1458_v45  ;;  %v1987_v42 = vand.u32 4294901760, %v1970_v37 }
 0x7db   :  { %v1464_v47 = vmul.f32 %v3897_v20, %v1463_v46 }
 0x7dd   :  { %v1469_v49 = vsel %vm296_vm1, %v1464_v47, 0  ;;  %v1965_v47 = vpop.permute.xlu2 %1964 }
 0x7de   :  { %v1488_v50 = vand.u32 4294901760, %v1469_v49 }
 0x7e0   :  { %1519 = vmatmul.f32.vlgmr.msrb.gmra.mxu3 %v1488_v50  ;;  %v1489_v51 = vsub.f32 %v1469_v49, %v1488_v50  ;;  %v2014_v49 = vsub.f32 %v1970_v37, %v1987_v42 }
 0x7e1   :  { %1733 = vmatpush.xpose.msrb.mxu3 %v1656_v6 }
 0x7e2   :  { %1543 = vmatmul.f32.vlgmr.msra.gmra.mxu0 %v1489_v51  ;;  %v1490_v54 = vand.u32 4294901760, %v1489_v51  ;;  %v2015_v57 = vand.u32 4294901760, %v2014_v49 }
 0x7e3   :  { %1759 = vmatpush.xpose.msra.mxu0 %v1684_v22 }
 0x7e4   :  { %1567 = vmatmul.f32.vlgmr.msra.gmra.mxu1 %v1490_v54  ;;  %v1491_v55 = vsub.f32 %v1489_v51, %v1490_v54 }
 0x7e5   :  { %1781 = vmatpush.xpose.msra.mxu1 %v1656_v6 }
 0x7e6   :  { %v1492_v58 = vand.u32 4294901760, %v1491_v55 }
 0x7e8   :  { %1493 = vmatmul.f32.vlgmr.msrb.gmra.mxu2 %v1492_v58  ;;  %1613 = vmatmul.f32.vlgmr.msra.gmra.mxu3 %v1488_v50 }
 0x7e9   :  { %1710 = vmatpush.xpose.msrb.mxu2 %v1683_v8 }
 0x7ea   :  { %1663 = vmatmul.f32.vlgmr.msrb.gmra.mxu0 %v1662_v59 }
 0x7ec   :  { %1689 = vmatmul.f32.vlgmr.msrb.gmra.mxu1 %v1658_v44 }
 0x7f0   :  { %1591 = vmatmul.f32.vlgmr.msra.gmra.mxu2 %v1488_v50  ;;  %1737 = vmatmul.f32.vlgmr.msrb.gmra.mxu3 %v1660_v53  ;;  %v1968_v53 = vsel %vm296_vm1, %v1965_v47, 0 }
 0x7f1   :  { %v1989_v58 = vand.u32 4294901760, %v1968_v53 }
 0x7f2   :  { %1761 = vmatmul.f32.vlgmr.msra.gmra.mxu0 %v1658_v44 }
 0x7f4   :  { %1783 = vmatmul.f32.vlgmr.msra.gmra.mxu1 %v1658_v44 }
 0x7f8   :  { %1713 = vmatmul.f32.vlgmr.msrb.gmra.mxu2 %v1659_v48 }
 0x85f   :  { %v1544_v61 = vpop.f32.mrf.mxu0 }
 0x861   :  { %v1568_v0 = vpop.f32.mrf.mxu1 }
 0x863   :  { %v1520_v60 = vpop.f32.mrf.mxu3 }
 0x867   :  { %v1664_v10 = vpop.f32.mrf.mxu0 }
 0x869   :  { %v1690_v11 = vpop.f32.mrf.mxu1 }
 0x86a   :  { %v1691_v17 = vadd.f32 %v1690_v11, %v1664_v10 }
 0x86b   :  { %v1494_v62 = vpop.f32.mrf.mxu2  ;;  %v1614_v5 = vpop.f32.mrf.mxu3 }
 0x86c   :  { %v1521_v63 = vadd.f32 %v1520_v60, %v1494_v62 }
 0x86e   :  { %v1545_v1 = vadd.f32 %v1544_v61, %v1521_v63  ;;  %v2016_v61 = vsub.f32 %v2014_v49, %v2015_v57  ;;  %v1990_v63 = vsub.f32 %v1968_v53, %v1989_v58 }
 0x86f   :  { %v1762_v3 = vpop.f32.mrf.mxu0 }
 0x870   :  { %v1569_v4 = vadd.f32 %v1568_v0, %v1545_v1  ;;  %v1991_v10 = vand.u32 4294901760, %v1990_v63 }
 0x871   :  { %v1784_v20 = vpop.f32.mrf.mxu1 }
 0x873   :  { %v1592_v7 = vpop.f32.mrf.mxu2  ;;  %v1738_v43 = vpop.f32.mrf.mxu3 }
 0x874   :  { %v1593_v9 = vadd.f32 %v1592_v7, %v1569_v4 }
 0x876   :  { %v4199_v52 = vadd.f32 %v1614_v5, %v1593_v9  ;;  %v2017_v5 = vand.u32 4294901760, %v2016_v61 }
 0x87b   :  { %v1714_v39 = vpop.f32.mrf.mxu2 }
 0x87c   :  { %v1715_v40 = vadd.f32 %v1714_v39, %v1691_v17 }
 0x87e   :  { %v1739_v2 = vadd.f32 %v1738_v43, %v1715_v40  ;;  %v1992_v40 = vsub.f32 %v1990_v63, %v1991_v10 }
 0x880   :  { %v1763_v6 = vadd.f32 %v1762_v3, %v1739_v2 }
 0x882   :  { %v1785_v8 = vadd.f32 %v1784_v20, %v1763_v6  ;;  %v1993_v20 = vand.u32 4294901760, %v1992_v40 }
 0x884   :  { %v1787_v21 = vmul.f32 0.35355338, %v1785_v8 }
 0x886   :  { %v1788_v22 = vsel %vm296_vm1, %v1787_v21, -inf }
 0x887   :  { %1789 = vmax.xlane.f32.xlu0 %v1788_v22 }
 0x8fa   :  { %v1790_v23 = vpop.xlane.xlu0 %1789 }
 0x8fb   :  { %v1791_v30 = vsub.f32 %v1787_v21, %v1790_v23 }
 0x8fd   :  { %v1792_v31 = vmul.f32 1.442695, %v1791_v30 }
 0x8ff   :  { %3900 = vpow2.f32 %v1792_v31 }
 0x905   :  { %v3901_v32 = vpop.eup %3900 }
 0x906   :  { %v1794_v33 = vsel %vm296_vm1, %v3901_v32, 0.0 }
 0x907   :  { %1795 = vadd.xlane.f32.xlu1 %v1794_v33 }
 0x920   :  { %1812 = vrot.lane.b32.xlu1 %v4186_v19, %s3962_s15 }
 0x928   :  { %2143 = vrot.lane.b32.xlu1 %v4186_v19, %s3960_s29 }
 0x930   :  { %2295 = vrot.lane.b32.xlu1 %v4186_v19, %s3961_s30 }
 0x97a   :  { %v1796_v34 = vpop.xlane.xlu1 %1795 }
 0x97b   :  { %3902 = vrcp.f32 %v1796_v34  ;;  %v1808_v44 = vand.u32 2147483648, %v1796_v34  ;;  %v1806_v46 = vand.u32 2147483647, %v1796_v34  ;;  %vm1802_vm5 = vweird.f32 %v1796_v34 }
 0x97d   :  { %v1809_v50 = vor.u32 1.1754944e-38, %v1808_v44  ;;  %vm1807_vm7 = vcmp.eq.f32.partialorder %v1806_v46, 8.507059e+37 }
 0x981   :  { %v3903_v36 = vpop.eup %3902 }
 0x982   :  { %v1798_v38 = vmul.f32 %v3903_v36, %v1796_v34  ;;  %vm1803_vm4 = vweird.f32 %v3903_v36 }
 0x983   :  { %vm1804_vm6 = vmor %vm1802_vm5, %vm1803_vm4 }
 0x984   :  { %v1799_v41 = vsub.f32 1.0, %v1798_v38 }
 0x986   :  { %v1800_v45 = vmul.f32 %v3903_v36, %v1799_v41 }
 0x988   :  { %v1801_v48 = vadd.f32 %v3903_v36, %v1800_v45 }
 0x98a   :  { %v1805_v51 = vsel %vm1804_vm6, %v3903_v36, %v1801_v48  ;;  %vm1630_vm6 = vcmask 130048  }
 0x98b   :  { %v1810_v54 = vsel %vm1807_vm7, %v1809_v50, %v1805_v51  ;;  %vm1632_vm7 = vcmask 195584  }
 0x98c   :  { %v1811_v55 = vmul.f32 %v3901_v32, %v1810_v54 }
 0x98e   :  { %v1816_v59 = vsel %vm296_vm1, %v1811_v55, 0 }
 0x98f   :  { %v1835_v60 = vand.u32 4294901760, %v1816_v59 }
 0x991   :  { %v1836_v62 = vsub.f32 %v1816_v59, %v1835_v60 }
 0x992   :  { %v1813_v0 = vpop.permute.xlu1 %1812 }
 0x993   :  { %v1833_v1 = vand.u32 4294901760, %v1813_v0  ;;  %v1837_v4 = vand.u32 4294901760, %v1836_v62 }
 0x995   :  { %v1860_v7 = vsub.f32 %v1813_v0, %v1833_v1  ;;  %1834 = vmatpush.msra.mxu2 %v1833_v1  ;;  %1910 = vmatpush.msrb.mxu1 %v1833_v1  ;;  %v1838_v9 = vsub.f32 %v1836_v62, %v1837_v4 }
 0x996   :  { %1914 = vmatmul.f32.vlgmr.msrb.gmra.mxu1 %v1837_v4 }
 0x997   :  { %v1861_v11 = vand.u32 4294901760, %v1860_v7  ;;  %2018 = vmatpush.xpose.msra.mxu1 %v2017_v5  ;;  %1887 = vmatpush.msrb.mxu0 %v1860_v7  ;;  %v1839_v17 = vand.u32 4294901760, %v1838_v9 }
 0x998   :  { %1890 = vmatmul.f32.vlgmr.msrb.gmra.mxu0 %v1836_v62 }
 0x999   :  { %v1862_v39 = vsub.f32 %v1860_v7, %v1861_v11  ;;  %1988 = vmatpush.xpose.msra.mxu0 %v1987_v42  ;;  %1840 = vmatmul.f32.vlgmr.msra.gmra.mxu2 %v1839_v17 }
 0x99a   :  { %1936 = vmatpush.msrb.mxu2 %v1861_v11  ;;  %v2144_v43 = vpop.permute.xlu1 %2143 }
 0x99b   :  { %2112 = vmatpush.xpose.msrb.mxu1 %v1987_v42  ;;  %v1863_v2 = vand.u32 4294901760, %v1862_v39  ;;  %v2164_v3 = vand.u32 4294901760, %v2144_v43 }
 0x99c   :  { %2041 = vmatpush.xpose.msra.mxu2 %v2014_v49 }
 0x99d   :  { %2090 = vmatpush.xpose.msrb.mxu0 %v2015_v57  ;;  %v2191_v6 = vsub.f32 %v2144_v43, %v2164_v3  ;;  %1864 = vmatpush.msra.mxu3 %v1863_v2 }
 0x99e   :  { %1866 = vmatmul.f32.vlgmr.msra.gmra.mxu3 %v1835_v60  ;;  %2020 = vmatmul.f32.vlgmr.msra.gmra.mxu1 %v1989_v58 }
 0x99f   :  { %v2192_v8 = vand.u32 4294901760, %v2191_v6  ;;  %1958 = vmatpush.msrb.mxu3 %v1833_v1  ;;  %2241 = vmatpush.msra.mxu1 %v2164_v3 }
 0x9a0   :  { %1994 = vmatmul.f32.vlgmr.msra.gmra.mxu0 %v1993_v20 }
 0x9a1   :  { %2064 = vmatpush.xpose.msra.mxu3 %v1987_v42  ;;  %v2193_v21 = vsub.f32 %v2191_v6, %v2192_v8  ;;  %2218 = vmatpush.msra.mxu0 %v2191_v6 }
 0x9a2   :  { %1938 = vmatmul.f32.vlgmr.msrb.gmra.mxu2 %v1835_v60  ;;  %v2296_v4 = vpop.permute.xlu1 %2295 }
 0x9a3   :  { %2165 = vmatpush.msrb.mxu2 %v2164_v3  ;;  %v2194_v22 = vand.u32 4294901760, %v2193_v21  ;;  %v2299_v17 = vsel %vm296_vm1, %v2296_v4, 0 }
 0x9a4   :  { %v2320_v2 = vand.u32 4294901760, %v2299_v17 }
 0x9a6   :  { %1960 = vmatmul.f32.vlgmr.msrb.gmra.mxu3 %v1835_v60  ;;  %2114 = vmatmul.f32.vlgmr.msrb.gmra.mxu1 %v1989_v58 }
 0x9a7   :  { %2195 = vmatpush.msrb.mxu3 %v2194_v22  ;;  %v2321_v22 = vsub.f32 %v2299_v17, %v2320_v2 }
 0x9a8   :  { %2092 = vmatmul.f32.vlgmr.msrb.gmra.mxu0 %v1989_v58 }
 0x9aa   :  { %2044 = vmatmul.f32.vlgmr.msra.gmra.mxu2 %v1990_v63 }
 0x9ab   :  { %2267 = vmatpush.msra.mxu2 %v2192_v8 }
 0x9ae   :  { %2068 = vmatmul.f32.vlgmr.msra.gmra.mxu3 %v1991_v10 }
 0x9af   :  { %2289 = vmatpush.msra.mxu3 %v2164_v3 }
 0xa13   :  { %v1915_v31 = vpop.f32.mrf.mxu1 }
 0xa15   :  { %v1891_v30 = vpop.f32.mrf.mxu0 }
 0xa1b   :  { %v2021_v44 = vpop.f32.mrf.mxu1 }
 0xa1c   :  { %v1841_v23 = vpop.f32.mrf.mxu2 }
 0xa1d   :  { %v1995_v38 = vpop.f32.mrf.mxu0 }
 0xa1e   :  { %v2022_v46 = vadd.f32 %v2021_v44, %v1995_v38 }
 0xa21   :  { %v1867_v32 = vpop.f32.mrf.mxu3 }
 0xa22   :  { %v1868_v33 = vadd.f32 %v1867_v32, %v1841_v23 }
 0xa23   :  { %v2115_v53 = vpop.f32.mrf.mxu1 }
 0xa24   :  { %v1892_v34 = vadd.f32 %v1891_v30, %v1868_v33 }
 0xa25   :  { %v1939_v35 = vpop.f32.mrf.mxu2  ;;  %v2093_v50 = vpop.f32.mrf.mxu0 }
 0xa26   :  { %v1916_v36 = vadd.f32 %v1915_v31, %v1892_v34 }
 0xa28   :  { %v1940_v37 = vadd.f32 %v1939_v35, %v1916_v36  ;;  %v2322_v36 = vand.u32 4294901760, %v2321_v22 }
 0xa29   :  { %v1961_v41 = vpop.f32.mrf.mxu3 }
 0xa2a   :  { %v4212_v42 = vadd.f32 %v1961_v41, %v1940_v37 }
 0xa2d   :  { %v2045_v45 = vpop.f32.mrf.mxu2 }
 0xa2e   :  { %v2046_v47 = vadd.f32 %v2045_v45, %v2022_v46  ;;  %v2323_v46 = vsub.f32 %v2321_v22, %v2322_v36 }
 0xa31   :  { %v2069_v48 = vpop.f32.mrf.mxu3 }
 0xa32   :  { %v2070_v49 = vadd.f32 %v2069_v48, %v2046_v47 }
 0xa34   :  { %v2094_v51 = vadd.f32 %v2093_v50, %v2070_v49  ;;  %v2324_v50 = vand.u32 4294901760, %v2323_v46 }
 0xa36   :  { %v2116_v54 = vadd.f32 %v2115_v53, %v2094_v51 }
 0xa38   :  { %v2118_v55 = vmul.f32 0.35355338, %v2116_v54 }
 0xa3a   :  { %v2119_v57 = vsel %vm296_vm1, %v2118_v55, -inf }
 0xa3b   :  { %2120 = vmax.xlane.f32.xlu2 %v2119_v57 }
 0xa53   :  { %2474 = vrot.lane.b32.xlu2 %v4186_v19, %s3964_s17 }
 0xa5b   :  { %2626 = vrot.lane.b32.xlu2 %v4186_v19, %s3965_s18 }
 0xaae   :  { %v2121_v58 = vpop.xlane.xlu2 %2120 }
 0xaaf   :  { %v2122_v59 = vsub.f32 %v2118_v55, %v2121_v58 }
 0xab1   :  { %v2123_v60 = vmul.f32 1.442695, %v2122_v59 }
 0xab3   :  { %3904 = vpow2.f32 %v2123_v60 }
 0xab6   :  { %v2475_v9 = vpop.permute.xlu2 %2474 }
 0xab7   :  { %v2495_v40 = vand.u32 4294901760, %v2475_v9 }
 0xab9   :  { %v3905_v61 = vpop.eup %3904  ;;  %v2522_v8 = vsub.f32 %v2475_v9, %v2495_v40 }
 0xaba   :  { %v2125_v62 = vsel %vm296_vm1, %v3905_v61, 0.0 }
 0xabb   :  { %2126 = vadd.xlane.f32.xlu0 %v2125_v62  ;;  %v2523_v33 = vand.u32 4294901760, %v2522_v8 }
 0xabd   :  { %v2524_v41 = vsub.f32 %v2522_v8, %v2523_v33 }
 0xabf   :  { %v2525_v49 = vand.u32 4294901760, %v2524_v41 }
 0xacf   :  { %2297 = vrot.lane.b32.xlu0 %v4186_v19, %s3963_s16 }
 0xb2e   :  { %v2127_v63 = vpop.xlane.xlu0 %2126 }
 0xb2f   :  { %3906 = vrcp.f32 %v2127_v63  ;;  %v2139_v7 = vand.u32 2147483648, %v2127_v63  ;;  %v2137_v11 = vand.u32 2147483647, %v2127_v63  ;;  %vm2133_vm9 = vweird.f32 %v2127_v63 }
 0xb31   :  { %v2140_v43 = vor.u32 1.1754944e-38, %v2139_v7  ;;  %vm2138_vm11 = vcmp.eq.f32.partialorder %v2137_v11, 8.507059e+37 }
 0xb35   :  { %v3907_v0 = vpop.eup %3906 }
 0xb36   :  { %v2129_v1 = vmul.f32 %v3907_v0, %v2127_v63  ;;  %vm2134_vm8 = vweird.f32 %v3907_v0 }
 0xb37   :  { %vm2135_vm10 = vmor %vm2133_vm9, %vm2134_vm8 }
 0xb38   :  { %v2130_v5 = vsub.f32 1.0, %v2129_v1 }
 0xb3a   :  { %v2131_v10 = vmul.f32 %v3907_v0, %v2130_v5 }
 0xb3c   :  { %v2132_v39 = vadd.f32 %v3907_v0, %v2131_v10 }
 0xb3e   :  { %v2136_v3 = vsel %vm2135_vm10, %v3907_v0, %v2132_v39 }
 0xb3f   :  { %v2141_v6 = vsel %vm2138_vm11, %v2140_v43, %v2136_v3  ;;  %v859_v3 = vadd.f32 %v4155_v24, %v4159_v26 }
 0xb40   :  { %v2142_v20 = vmul.f32 %v3905_v61, %v2141_v6 }
 0xb41   :  { %v2298_v21 = vpop.permute.xlu0 %2297  ;;  %v883_v6 = vadd.f32 %v4157_v25, %v859_v3 }
 0xb42   :  { %v2301_v23 = vsel %vm296_vm1, %v2298_v21, 0  ;;  %v2147_v30 = vsel %vm296_vm1, %v2142_v20, 0 }
 0xb43   :  { %v2318_v31 = vand.u32 4294901760, %v2301_v23  ;;  %v2166_v32 = vand.u32 4294901760, %v2147_v30  ;;  %v907_v20 = vadd.f32 %v4161_v27, %v883_v6 }
 0xb45   :  { %v2345_v34 = vsub.f32 %v2301_v23, %v2318_v31  ;;  %2197 = vmatmul.f32.vlgmr.msrb.gmra.mxu3 %v2166_v32  ;;  %2319 = vmatpush.xpose.msrb.mxu0 %v2318_v31  ;;  %v2167_v35 = vsub.f32 %v2147_v30, %v2166_v32 }
 0xb46   :  { %2395 = vmatpush.xpose.msrb.mxu3 %v2318_v31 }
 0xb47   :  { %v2346_v37 = vand.u32 4294901760, %v2345_v34  ;;  %2221 = vmatmul.f32.vlgmr.msra.gmra.mxu0 %v2167_v35  ;;  %v2168_v38 = vand.u32 4294901760, %v2167_v35 }
 0xb49   :  { %v2347_v44 = vsub.f32 %v2345_v34, %v2346_v37  ;;  %2245 = vmatmul.f32.vlgmr.msra.gmra.mxu1 %v2168_v38  ;;  %2421 = vmatpush.xpose.msra.mxu0 %v2346_v37  ;;  %v2169_v45 = vsub.f32 %v2167_v35, %v2168_v38 }
 0xb4b   :  { %v2348_v47 = vand.u32 4294901760, %v2347_v44  ;;  %v2170_v48 = vand.u32 4294901760, %v2169_v45 }
 0xb4d   :  { %2171 = vmatmul.f32.vlgmr.msrb.gmra.mxu2 %v2170_v48  ;;  %2291 = vmatmul.f32.vlgmr.msra.gmra.mxu3 %v2166_v32 }
 0xb4e   :  { %2349 = vmatpush.xpose.msrb.mxu1 %v2348_v47  ;;  %2372 = vmatpush.xpose.msrb.mxu2 %v2345_v34 }
 0xb4f   :  { %2526 = vmatpush.msra.mxu3 %v2525_v49  ;;  %2325 = vmatmul.f32.vlgmr.msrb.gmra.mxu0 %v2324_v50 }
 0xb50   :  { %2549 = vmatpush.msrb.mxu0 %v2522_v8  ;;  %v931_v8 = vadd.f32 %v4165_v29, %v907_v20 }
 0xb51   :  { %2351 = vmatmul.f32.vlgmr.msrb.gmra.mxu1 %v2320_v2 }
 0xb52   :  { %2443 = vmatpush.xpose.msra.mxu1 %v2318_v31  ;;  %v953_v21 = vadd.f32 %v4163_v28, %v931_v8 }
 0xb55   :  { %2269 = vmatmul.f32.vlgmr.msra.gmra.mxu2 %v2166_v32  ;;  %2399 = vmatmul.f32.vlgmr.msrb.gmra.mxu3 %v2322_v36  ;;  %v2627_v36 = vpop.permute.xlu2 %2626 }
 0xb56   :  { %2572 = vmatpush.msrb.mxu1 %v2495_v40  ;;  %2496 = vmatpush.msra.mxu2 %v2495_v40  ;;  %v2630_v41 = vsel %vm296_vm1, %v2627_v36, 0 }
 0xb57   :  { %2620 = vmatpush.msrb.mxu3 %v2495_v40  ;;  %2423 = vmatmul.f32.vlgmr.msra.gmra.mxu0 %v2320_v2  ;;  %v2651_v47 = vand.u32 4294901760, %v2630_v41 }
 0xb59   :  { %2445 = vmatmul.f32.vlgmr.msra.gmra.mxu1 %v2320_v2 }
 0xb5d   :  { %2375 = vmatmul.f32.vlgmr.msrb.gmra.mxu2 %v2321_v22 }
 0xb5e   :  { %2598 = vmatpush.msrb.mxu2 %v2523_v33 }
 0xbc4   :  { %v2222_v53 = vpop.f32.mrf.mxu0 }
 0xbc6   :  { %v2246_v57 = vpop.f32.mrf.mxu1 }
 0xbc8   :  { %v2198_v51 = vpop.f32.mrf.mxu3 }
 0xbcc   :  { %v2326_v63 = vpop.f32.mrf.mxu0 }
 0xbce   :  { %v2352_v1 = vpop.f32.mrf.mxu1 }
 0xbcf   :  { %v2353_v4 = vadd.f32 %v2352_v1, %v2326_v63 }
 0xbd0   :  { %v2172_v54 = vpop.f32.mrf.mxu2  ;;  %v2292_v60 = vpop.f32.mrf.mxu3 }
 0xbd1   :  { %v2199_v55 = vadd.f32 %v2198_v51, %v2172_v54 }
 0xbd3   :  { %v2223_v58 = vadd.f32 %v2222_v53, %v2199_v55  ;;  %v2652_v53 = vsub.f32 %v2630_v41, %v2651_v47  ;;  %v2972_v41 = vld [vmem:[%s4489_s3] sm:$0xff] }
 0xbd4   :  { %v2424_v11 = vpop.f32.mrf.mxu0 }
 0xbd5   :  { %v2247_v59 = vadd.f32 %v2246_v57, %v2223_v58  ;;  %v2653_v57 = vand.u32 4294901760, %v2652_v53 }
 0xbd6   :  { %v2446_v39 = vpop.f32.mrf.mxu1 }
 0xbd8   :  { %v2270_v61 = vpop.f32.mrf.mxu2  ;;  %v2400_v9 = vpop.f32.mrf.mxu3 }
 0xbd9   :  { %v2271_v62 = vadd.f32 %v2270_v61, %v2247_v59 }
 0xbdb   :  { %v2293_v0 = vadd.f32 %v2292_v60, %v2271_v62  ;;  %v2654_v60 = vsub.f32 %v2652_v53, %v2653_v57 }
 0xbdd   :  { %v2655_v63 = vand.u32 4294901760, %v2654_v60 }
 0xbe0   :  { %v2376_v5 = vpop.f32.mrf.mxu2 }
 0xbe1   :  { %v2377_v7 = vadd.f32 %v2376_v5, %v2353_v4 }
 0xbe3   :  { %v2401_v10 = vadd.f32 %v2400_v9, %v2377_v7 }
 0xbe5   :  { %v2425_v17 = vadd.f32 %v2424_v11, %v2401_v10 }
 0xbe7   :  { %v2447_v40 = vadd.f32 %v2446_v39, %v2425_v17 }
 0xbe9   :  { %v2449_v43 = vmul.f32 0.35355338, %v2447_v40 }
 0xbeb   :  { %v2450_v2 = vsel %vm296_vm1, %v2449_v43, -inf }
 0xbec   :  { %2451 = vmax.xlane.f32.xlu1 %v2450_v2 }
 0xc05   :  { %2628 = vrot.lane.b32.xlu1 %v4186_v19, %s3966_s7 }
 0xc0d   :  { %1618 = vrot.lane.b32.xlu1 %v953_v21, %s3956_s14 }
 0xc15   :  { %1622 = vrot.lane.b32.xlu1 %v4176_v56, %s3968_s20 }
 0xc1d   :  { %2958 = vrot.lane.b32.xlu1 %v2293_v0, %s3956_s14  ;;  %s3969_s14 = smov 24  }
 0xc5f   :  { %v2452_v24 = vpop.xlane.xlu1 %2451 }
 0xc60   :  { %v2453_v26 = vsub.f32 %v2449_v43, %v2452_v24 }
 0xc62   :  { %v2454_v25 = vmul.f32 1.442695, %v2453_v26 }
 0xc64   :  { %3908 = vpow2.f32 %v2454_v25 }
 0xc6a   :  { %v3909_v27 = vpop.eup %3908 }
 0xc6b   :  { %v2456_v22 = vsel %vm296_vm1, %v3909_v27, 0.0 }
 0xc6c   :  { %2457 = vadd.xlane.f32.xlu0 %v2456_v22 }
 0xc77   :  { %v2629_v23 = vpop.permute.xlu1 %2628 }
 0xc78   :  { %v2632_v29 = vsel %vm296_vm1, %v2629_v23, 0 }
 0xc79   :  { %v2649_v28 = vand.u32 4294901760, %v2632_v29 }
 0xc7b   :  { %v2676_v30 = vsub.f32 %v2632_v29, %v2649_v28  ;;  %2650 = vmatpush.xpose.msra.mxu0 %v2649_v28 }
 0xc7d   :  { %v2677_v31 = vand.u32 4294901760, %v2676_v30 }
 0xc7f   :  { %v2678_v32 = vsub.f32 %v2676_v30, %v2677_v31 }
 0xc81   :  { %v2679_v33 = vand.u32 4294901760, %v2678_v32 }
 0xc83   :  { %2680 = vmatpush.xpose.msra.mxu1 %v2679_v33 }
 0xcdf   :  { %v2458_v56 = vpop.xlane.xlu0 %2457 }
 0xce0   :  { %3910 = vrcp.f32 %v2458_v56  ;;  %v2470_v38 = vand.u32 2147483648, %v2458_v56  ;;  %v2468_v45 = vand.u32 2147483647, %v2458_v56  ;;  %vm2464_vm13 = vweird.f32 %v2458_v56 }
 0xce2   :  { %v2471_v48 = vor.u32 1.1754944e-38, %v2470_v38  ;;  %vm2469_vm15 = vcmp.eq.f32.partialorder %v2468_v45, 8.507059e+37 }
 0xce6   :  { %v3911_v34 = vpop.eup %3910 }
 0xce7   :  { %v2460_v35 = vmul.f32 %v3911_v34, %v2458_v56  ;;  %vm2465_vm12 = vweird.f32 %v3911_v34  ;;  %v2975_v56 = vld [vmem:[%s4489_s3 + $0x18] sm:$0xff] }
 0xce8   :  { %vm2466_vm14 = vmor %vm2464_vm13, %vm2465_vm12 }
 0xce9   :  { %v2461_v37 = vsub.f32 1.0, %v2460_v35  ;;  %v4255_v35 = vand.u32 4294901760, %v2975_v56 }
 0xceb   :  { %v2462_v44 = vmul.f32 %v3911_v34, %v2461_v37  ;;  %v528_v37 = vadd.f32 %v4138_v15, %v4132_v12  ;;  %v4265_v38 = vsub.f32 %v2975_v56, %v4255_v35 }
 0xced   :  { %v2463_v46 = vadd.f32 %v3911_v34, %v2462_v44  ;;  %v3037_v12 = vand.u32 4294901760, %v4265_v38 }
 0xcef   :  { %v2467_v49 = vsel %vm2466_vm14, %v3911_v34, %v2463_v46  ;;  %v2974_v34 = vld [vmem:[%s4489_s3 + $0x10] sm:$0xff]  ;;  %vm3511_vm14 = vcmask 523264  }
 0xcf0   :  { %v2472_v50 = vsel %vm2469_vm15, %v2471_v48, %v2467_v49  ;;  %v4257_v36 = vand.u32 4294901760, %v2974_v34  ;;  %v4275_v48 = vand.u32 4294901760, %v2972_v41  ;;  %v552_v49 = vadd.f32 %v4134_v13, %v528_v37 }
 0xcf1   :  { %v2473_v51 = vmul.f32 %v3909_v27, %v2472_v50  ;;  %v3038_v13 = vsub.f32 %v4265_v38, %v3037_v12 }
 0xcf2   :  { %v4273_v46 = vsub.f32 %v2974_v34, %v4257_v36  ;;  %v576_v60 = vadd.f32 %v4136_v14, %v552_v49 }
 0xcf3   :  { %v2478_v54 = vsel %vm296_vm1, %v2473_v51, 0 }
 0xcf4   :  { %v2497_v55 = vand.u32 4294901760, %v2478_v54 }
 0xcf6   :  { %2528 = vmatmul.f32.vlgmr.msra.gmra.mxu3 %v2497_v55  ;;  %v2498_v58 = vsub.f32 %v2478_v54, %v2497_v55  ;;  %v3043_v54 = vand.u32 4294901760, %v4273_v46 }
 0xcf7   :  { %2726 = vmatpush.xpose.msra.mxu3 %v2649_v28 }
 0xcf8   :  { %2552 = vmatmul.f32.vlgmr.msrb.gmra.mxu0 %v2498_v58  ;;  %v2499_v59 = vand.u32 4294901760, %v2498_v58 }
 0xcf9   :  { %2752 = vmatpush.xpose.msrb.mxu0 %v2677_v31 }
 0xcfa   :  { %2576 = vmatmul.f32.vlgmr.msrb.gmra.mxu1 %v2499_v59  ;;  %v2500_v61 = vsub.f32 %v2498_v58, %v2499_v59  ;;  %v4284_v58 = vsub.f32 %v2972_v41, %v4275_v48 }
 0xcfb   :  { %2774 = vmatpush.xpose.msrb.mxu1 %v2649_v28 }
 0xcfc   :  { %v2501_v62 = vand.u32 4294901760, %v2500_v61 }
 0xcfe   :  { %2502 = vmatmul.f32.vlgmr.msra.gmra.mxu2 %v2501_v62  ;;  %2622 = vmatmul.f32.vlgmr.msrb.gmra.mxu3 %v2497_v55 }
 0xcff   :  { %2703 = vmatpush.xpose.msra.mxu2 %v2676_v30 }
 0xd00   :  { %2656 = vmatmul.f32.vlgmr.msra.gmra.mxu0 %v2655_v63 }
 0xd02   :  { %2682 = vmatmul.f32.vlgmr.msra.gmra.mxu1 %v2651_v47 }
 0xd06   :  { %2600 = vmatmul.f32.vlgmr.msrb.gmra.mxu2 %v2497_v55  ;;  %2730 = vmatmul.f32.vlgmr.msra.gmra.mxu3 %v2653_v57  ;;  %v1619_v55 = vpop.permute.xlu1 %1618 }
 0xd08   :  { %2754 = vmatmul.f32.vlgmr.msrb.gmra.mxu0 %v2651_v47 }
 0xd0a   :  { %2776 = vmatmul.f32.vlgmr.msrb.gmra.mxu1 %v2651_v47 }
 0xd0e   :  { %2706 = vmatmul.f32.vlgmr.msra.gmra.mxu2 %v2652_v53 }
 0xd75   :  { %v2553_v1 = vpop.f32.mrf.mxu0 }
 0xd77   :  { %v2577_v7 = vpop.f32.mrf.mxu1 }
 0xd79   :  { %v2529_v0 = vpop.f32.mrf.mxu3 }
 0xd7d   :  { %v2657_v40 = vpop.f32.mrf.mxu0 }
 0xd7f   :  { %v2683_v2 = vpop.f32.mrf.mxu1 }
 0xd80   :  { %v2684_v3 = vadd.f32 %v2683_v2, %v2657_v40 }
 0xd81   :  { %v2503_v4 = vpop.f32.mrf.mxu2  ;;  %v2623_v11 = vpop.f32.mrf.mxu3 }
 0xd82   :  { %v2530_v5 = vadd.f32 %v2529_v0, %v2503_v4  ;;  %v3044_v0 = vsub.f32 %v4273_v46, %v3043_v54  ;;  %v3055_v4 = vand.u32 4294901760, %v4284_v58 }
 0xd84   :  { %v2554_v9 = vadd.f32 %v2553_v1, %v2530_v5 }
 0xd85   :  { %v2755_v24 = vpop.f32.mrf.mxu0 }
 0xd86   :  { %v2578_v10 = vadd.f32 %v2577_v7, %v2554_v9  ;;  %v3039_v7 = vand.u32 4294901760, %v3038_v13  ;;  %v600_v9 = vadd.f32 %v4140_v16, %v576_v60  ;;  %v3877_v13 = vld [vmem:[%s4490_s4] ss:$0 sm:$0xff] }
 0xd87   :  { %v2777_v25 = vpop.f32.mrf.mxu1 }
 0xd88   :  { %v622_v16 = vadd.f32 %v4142_v18, %v600_v9 }
 0xd89   :  { %v2601_v17 = vpop.f32.mrf.mxu2  ;;  %v2731_v8 = vpop.f32.mrf.mxu3 }
 0xd8a   :  { %v2602_v39 = vadd.f32 %v2601_v17, %v2578_v10 }
 0xd8c   :  { %v2624_v43 = vadd.f32 %v2623_v11, %v2602_v39  ;;  %v3045_v39 = vand.u32 4294901760, %v3044_v0 }
 0xd91   :  { %v2707_v6 = vpop.f32.mrf.mxu2 }
 0xd92   :  { %v2708_v20 = vadd.f32 %v2707_v6, %v2684_v3  ;;  %v1623_v3 = vpop.permute.xlu1 %1622 }
 0xd94   :  { %v2732_v21 = vadd.f32 %v2731_v8, %v2708_v20 }
 0xd96   :  { %v2756_v26 = vadd.f32 %v2755_v24, %v2732_v21  ;;  %v1629_v21 = vsel %vm296_vm1, %v622_v16, %v1619_v55 }
 0xd98   :  { %v2778_v27 = vadd.f32 %v2777_v25, %v2756_v26  ;;  %v1631_v25 = vsel %vm1630_vm6, %v1629_v21, %v1623_v3 }
 0xd9a   :  { %v2780_v22 = vmul.f32 0.35355338, %v2778_v27 }
 0xd9c   :  { %v2781_v23 = vsel %vm296_vm1, %v2780_v22, -inf }
 0xd9d   :  { %2782 = vmax.xlane.f32.xlu2 %v2781_v23 }
 0xe10   :  { %v2783_v29 = vpop.xlane.xlu2 %2782 }
 0xe11   :  { %v2784_v28 = vsub.f32 %v2780_v22, %v2783_v29 }
 0xe13   :  { %v2785_v30 = vmul.f32 1.442695, %v2784_v28 }
 0xe15   :  { %3912 = vpow2.f32 %v2785_v30 }
 0xe1b   :  { %v3913_v31 = vpop.eup %3912 }
 0xe1c   :  { %v2787_v32 = vsel %vm296_vm1, %v3913_v31, 0.0 }
 0xe1d   :  { %2788 = vadd.xlane.f32.xlu0 %v2787_v32 }
 0xe31   :  { %2805 = vrot.lane.b32.xlu0 %v4186_v19, %s3967_s19  ;;  %v2973_v19 = vld [vmem:[%s4489_s3 + $0x8] sm:$0xff] }
 0xe32   :  { %v4270_v45 = vand.u32 4294901760, %v2973_v19 }
 0xe34   :  { %v4280_v53 = vsub.f32 %v2973_v19, %v4270_v45 }
 0xe36   :  { %v3049_v62 = vand.u32 4294901760, %v4280_v53 }
 0xe38   :  { %v3050_v14 = vsub.f32 %v4280_v53, %v3049_v62 }
 0xe39   :  { %1626 = vrot.lane.b32.xlu0 %v4199_v52, %s3969_s14 }
 0xe3a   :  { %v3051_v20 = vand.u32 4294901760, %v3050_v14 }
 0xe41   :  { %2962 = vrot.lane.b32.xlu0 %v2624_v43, %s3968_s20  ;;  %v3056_v43 = vsub.f32 %v4284_v58, %v3055_v4 }
 0xe43   :  { %v3057_v26 = vand.u32 4294901760, %v3056_v43  ;;  %v3926_v43 = vld [vmem:[%s4486_s0] sm:$0xff] }
 0xe90   :  { %v2789_v33 = vpop.xlane.xlu0 %2788 }
 0xe91   :  { %3914 = vrcp.f32 %v2789_v33  ;;  %v2801_v50 = vand.u32 2147483648, %v2789_v33  ;;  %v2799_v51 = vand.u32 2147483647, %v2789_v33  ;;  %vm2795_vm3 = vweird.f32 %v2789_v33 }
 0xe93   :  { %v2802_v59 = vor.u32 1.1754944e-38, %v2801_v50  ;;  %vm2800_vm5 = vcmp.eq.f32.partialorder %v2799_v51, 8.507059e+37 }
 0xe97   :  { %v3915_v52 = vpop.eup %3914 }
 0xe98   :  { %v2791_v44 = vmul.f32 %v3915_v52, %v2789_v33  ;;  %vm2796_vm2 = vweird.f32 %v3915_v52 }
 0xe99   :  { %vm2797_vm4 = vmor %vm2795_vm3, %vm2796_vm2 }
 0xe9a   :  { %v2792_v47 = vsub.f32 1.0, %v2791_v44 }
 0xe9c   :  { %v2793_v15 = vmul.f32 %v3915_v52, %v2792_v47  ;;  %v2959_v47 = vpop.permute.xlu1 %2958 }
 0xe9d   :  { %v2969_v49 = vsel %vm296_vm1, %v4212_v42, %v2959_v47 }
 0xe9e   :  { %v2794_v57 = vadd.f32 %v3915_v52, %v2793_v15 }
 0xea0   :  { %v2798_v61 = vsel %vm2797_vm4, %v3915_v52, %v2794_v57 }
 0xea1   :  { %v2803_v63 = vsel %vm2800_vm5, %v2802_v59, %v2798_v61 }
 0xea2   :  { %v2804_v1 = vmul.f32 %v3913_v31, %v2803_v63 }
 0xea3   :  { %v2806_v5 = vpop.permute.xlu0 %2805 }
 0xea4   :  { %v2826_v10 = vand.u32 4294901760, %v2806_v5  ;;  %v2809_v11 = vsel %vm296_vm1, %v2804_v1, 0 }
 0xea5   :  { %v2828_v17 = vand.u32 4294901760, %v2809_v11 }
 0xea6   :  { %v2853_v40 = vsub.f32 %v2806_v5, %v2826_v10  ;;  %2827 = vmatpush.msrb.mxu2 %v2826_v10  ;;  %2903 = vmatpush.msra.mxu1 %v2826_v10 }
 0xea7   :  { %v2829_v2 = vsub.f32 %v2809_v11, %v2828_v17 }
 0xea8   :  { %3040 = vmatpush.msrb.mxu1 %v3039_v7  ;;  %v2854_v6 = vand.u32 4294901760, %v2853_v40  ;;  %2880 = vmatpush.msra.mxu0 %v2853_v40 }
 0xea9   :  { %2883 = vmatmul.f32.vlgmr.msra.gmra.mxu0 %v2829_v2  ;;  %v2830_v8 = vand.u32 4294901760, %v2829_v2 }
 0xeaa   :  { %3046 = vmatpush.msrb.mxu1 %v3045_v39  ;;  %v2855_v24 = vsub.f32 %v2853_v40, %v2854_v6  ;;  %2929 = vmatpush.msra.mxu2 %v2854_v6 }
 0xeab   :  { %2999 = vmatpush.msrb.mxu0 %v4255_v35  ;;  %2907 = vmatmul.f32.vlgmr.msra.gmra.mxu1 %v2830_v8  ;;  %v1627_v18 = vpop.permute.xlu0 %1626  ;;  %v2831_v27 = vsub.f32 %v2829_v2, %v2830_v8 }
 0xeac   :  { %v2856_v22 = vand.u32 4294901760, %v2855_v24  ;;  %v1633_v23 = vsel %vm1632_vm7, %v1631_v25, %v1627_v18  ;;  %3052 = vmatpush.msrb.mxu1 %v3051_v20 }
 0xead   :  { %3001 = vmatpush.msrb.mxu0 %v4257_v36  ;;  %v2981_v29 = vsel %vm70_vm0, %v1633_v23, 0  ;;  %v2832_v28 = vand.u32 4294901760, %v2831_v27  ;;  %v3970_v27 = vmov 32.0  }
 0xeae   :  { %v3006_v30 = vand.u32 4294901760, %v2981_v29  ;;  %2857 = vmatpush.msrb.mxu3 %v2856_v22  ;;  %3058 = vmatpush.msrb.mxu1 %v3057_v26  ;;  %v3927_v26 = vld [vmem:[%s4486_s0 + $0x8] sm:$0xff]  ;;  %3916 = vrcp.f32 %v3970_v27 }
 0xeaf   :  { %2833 = vmatmul.f32.vlgmr.msrb.gmra.mxu2 %v2832_v28  ;;  %2859 = vmatmul.f32.vlgmr.msrb.gmra.mxu3 %v2828_v17 }
 0xeb0   :  { %v3007_v31 = vsub.f32 %v2981_v29, %v3006_v30  ;;  %2951 = vmatpush.msra.mxu3 %v2826_v10  ;;  %3003 = vmatpush.msrb.mxu0 %v4270_v45 }
 0xeb1   :  { %3082 = vmatpush.msrb.mxu2 %v4265_v38  ;;  %3186 = vmatpush.msra.mxu1 %v4255_v35 }
 0xeb2   :  { %3116 = vmatpush.msrb.mxu3 %v4255_v35  ;;  %v3008_v32 = vand.u32 4294901760, %v3007_v31  ;;  %3005 = vmatpush.msrb.mxu0 %v4275_v48 }
 0xeb3   :  { %3060 = vmatmul.f32.vlgmr.msrb.gmra.mxu1 %v3006_v30  ;;  %3085 = vmatpush.msrb.mxu2 %v4273_v46 }
 0xeb4   :  { %v3009_v33 = vsub.f32 %v3007_v31, %v3008_v32  ;;  %3118 = vmatpush.msrb.mxu3 %v4257_v36  ;;  %3188 = vmatpush.msra.mxu1 %v4257_v36  ;;  %v3917_v22 = vpop.eup %3916 }
 0xeb5   :  { %3088 = vmatpush.msrb.mxu2 %v4280_v53  ;;  %3151 = vmatpush.msra.mxu0 %v3037_v12  ;;  %v3213_v23 = vmul.f32 32.0, %v3917_v22  ;;  %vm3217_vm1 = vweird.f32 %v3917_v22 }
 0xeb6   :  { %v3010_v56 = vand.u32 4294901760, %v3009_v33  ;;  %3120 = vmatpush.msrb.mxu3 %v4270_v45  ;;  %3190 = vmatpush.msra.mxu1 %v4270_v45 }
 0xeb7   :  { %2931 = vmatmul.f32.vlgmr.msra.gmra.mxu2 %v2828_v17  ;;  %2953 = vmatmul.f32.vlgmr.msra.gmra.mxu3 %v2828_v17  ;;  %v3214_v29 = vsub.f32 1.0, %v3213_v23 }
 0xeb8   :  { %3011 = vmatmul.f32.vlgmr.msrb.gmra.mxu0 %v3010_v56  ;;  %3091 = vmatpush.msrb.mxu2 %v4284_v58 }
 0xeb9   :  { %3122 = vmatpush.msrb.mxu3 %v4275_v48  ;;  %3192 = vmatpush.msra.mxu1 %v4275_v48  ;;  %v2963_v48 = vpop.permute.xlu0 %2962  ;;  %v3215_v28 = vmul.f32 %v3917_v22, %v3214_v29 }
 0xeba   :  { %3155 = vmatpush.msra.mxu0 %v3043_v54  ;;  %v2970_v50 = vsel %vm1630_vm6, %v2969_v49, %v2963_v48  ;;  %v3268_v48 = vld [vmem:[#allocation2 + $0x8] sm:$0xff] }
 0xebc   :  { %3159 = vmatpush.msra.mxu0 %v3049_v62 }
 0xebe   :  { %3163 = vmatpush.msra.mxu0 %v3055_v4 }
 0xebf   :  { %3094 = vmatmul.f32.vlgmr.msrb.gmra.mxu2 %v3007_v31  ;;  %3126 = vmatmul.f32.vlgmr.msrb.gmra.mxu3 %v3008_v32 }
 0xf26   :  { %v2884_v19 = vpop.f32.mrf.mxu0 }
 0xf28   :  { %v2908_v37 = vpop.f32.mrf.mxu1 }
 0xf30   :  { %v3061_v42 = vpop.f32.mrf.mxu1 }
 0xf32   :  { %v2834_v34 = vpop.f32.mrf.mxu2  ;;  %v2860_v35 = vpop.f32.mrf.mxu3 }
 0xf33   :  { %v2861_v36 = vadd.f32 %v2860_v35, %v2834_v34 }
 0xf35   :  { %v2885_v52 = vadd.f32 %v2884_v19, %v2861_v36  ;;  %v3012_v59 = vpop.f32.mrf.mxu0 }
 0xf36   :  { %v3013_v60 = vadd.f32 %v3877_v13, %v3012_v59 }
 0xf37   :  { %v2909_v38 = vadd.f32 %v2908_v37, %v2885_v52 }
 0xf38   :  { %v3062_v0 = vadd.f32 %v3061_v42, %v3013_v60 }
 0xf3a   :  { %v2932_v41 = vpop.f32.mrf.mxu2  ;;  %v2954_v45 = vpop.f32.mrf.mxu3 }
 0xf3b   :  { %v2933_v44 = vadd.f32 %v2932_v41, %v2909_v38  ;;  %v3270_v41 = vld [vmem:[#allocation2 + $0x18] sm:$0xff] }
 0xf3d   :  { %v2955_v46 = vadd.f32 %v2954_v45, %v2933_v44  ;;  %v3293_v44 = vand.u32 4294901760, %v3270_v41  ;;  %v3269_v45 = vld [vmem:[#allocation2 + $0x10] sm:$0xff] }
 0xf3e   :  { %v3295_v47 = vand.u32 4294901760, %v3269_v45 }
 0xf3f   :  { %2966 = vrot.lane.b32.xlu1 %v2955_v46, %s3969_s14  ;;  %v3331_v46 = vsub.f32 %v3270_v41, %v3293_v44  ;;  %3411 = vmatpush.msrb.mxu1 %v3293_v44 }
 0xf40   :  { %3294 = vmatpush.msra.mxu2 %v3293_v44 }
 0xf41   :  { %v3332_v49 = vand.u32 4294901760, %v3331_v46  ;;  %3377 = vmatpush.msrb.mxu0 %v3331_v46  ;;  %3413 = vmatpush.msrb.mxu1 %v3295_v47 }
 0xf42   :  { %v3095_v62 = vpop.f32.mrf.mxu2  ;;  %v3127_v5 = vpop.f32.mrf.mxu3  ;;  %3296 = vmatpush.msra.mxu2 %v3295_v47 }
 0xf43   :  { %v3096_v1 = vadd.f32 %v3095_v62, %v3062_v0 }
 0xf45   :  { %v3128_v7 = vadd.f32 %v3127_v5, %v3096_v1 }
 0xfb1   :  { %v2967_v12 = vpop.permute.xlu1 %2966 }
 0xfb2   :  { %v2971_v15 = vsel %vm1632_vm7, %v2970_v50, %v2967_v12  ;;  %v3337_v50 = vsub.f32 %v3269_v45, %v3295_v47  ;;  %v3297_v12 = vand.u32 4294901760, %v3268_v48 }
 0xfb3   :  { %v2984_v51 = vsel %vm70_vm0, %v2971_v15, 0  ;;  %v3267_v15 = vld [vmem:[#allocation2] sm:$0xff] }
 0xfb4   :  { %v3014_v53 = vand.u32 4294901760, %v2984_v51  ;;  %3380 = vmatpush.msrb.mxu0 %v3337_v50  ;;  %3415 = vmatpush.msrb.mxu1 %v3297_v12 }
 0xfb5   :  { %3298 = vmatpush.msra.mxu2 %v3297_v12 }
 0xfb6   :  { %v3015_v54 = vsub.f32 %v2984_v51, %v3014_v53  ;;  %3064 = vmatmul.f32.gmra.mxu1 %v3014_v53  ;;  %v3333_v51 = vsub.f32 %v3331_v46, %v3332_v49  ;;  %v3505_v46 = vld [vmem:[%s4495_s9 + $0x30] sm:$0xff] }
 0xfb8   :  { %3099 = vmatmul.f32.gmra.mxu2 %v3015_v54  ;;  %v3016_v55 = vand.u32 4294901760, %v3015_v54 }
 0xfba   :  { %3132 = vmatmul.f32.gmra.mxu3 %v3016_v55  ;;  %v3017_v57 = vsub.f32 %v3015_v54, %v3016_v55  ;;  %v3343_v54 = vsub.f32 %v3268_v48, %v3297_v12  ;;  %v3299_v55 = vand.u32 4294901760, %v3267_v15  ;;  %v4392_v48 = vand.u32 4294901760, %v3505_v46 }
 0xfbc   :  { %v3018_v58 = vand.u32 4294901760, %v3017_v57  ;;  %v3334_v57 = vand.u32 4294901760, %v3333_v51  ;;  %v3344_v42 = vand.u32 4294901760, %v3343_v54  ;;  %v3349_v59 = vsub.f32 %v3267_v15, %v3299_v55  ;;  %3383 = vmatpush.msrb.mxu0 %v3343_v54  ;;  %3417 = vmatpush.msrb.mxu1 %v3299_v55  ;;  %v3503_v51 = vld [vmem:[%s4495_s9 + $0x20] sm:$0xff] }
 0xfbd   :  { %3300 = vmatpush.msra.mxu2 %v3299_v55 }
 0xfbe   :  { %3019 = vmatmul.f32.gmra.mxu0 %v3018_v58  ;;  %3194 = vmatmul.f32.vlgmr.msra.gmra.mxu1 %v3006_v30  ;;  %v3345_v60 = vsub.f32 %v3343_v54, %v3344_v42 }
 0xfbf   :  { %3335 = vmatpush.msra.mxu3 %v3334_v57  ;;  %3386 = vmatpush.msrb.mxu0 %v3349_v59  ;;  %v4419_v57 = vand.u32 4294901760, %v3503_v51 }
 0xfc0   :  { %3446 = vmatpush.msrb.mxu2 %v3332_v49  ;;  %v3346_v62 = vand.u32 4294901760, %v3345_v60  ;;  %v3504_v49 = vld [vmem:[%s4495_s9 + $0x28] sm:$0xff] }
 0xfc1   :  { %v4404_v15 = vand.u32 4294901760, %v3504_v49  ;;  %v3586_v60 = vsub.f32 %v3503_v51, %v4419_v57 }
 0xfc6   :  { %3165 = vmatmul.f32.vlgmr.msra.gmra.mxu0 %v3006_v30  ;;  %3198 = vmatmul.f32.gmra.mxu1 %v3014_v53  ;;  %v3216_v30 = vadd.f32 %v3917_v22, %v3215_v28 }
 0xfc8   :  { %v4349_v31 = vsel %vm3217_vm1, %v3917_v22, %v3216_v30 }
 0xfce   :  { %3169 = vmatmul.f32.gmra.mxu0 %v3014_v53  ;;  %v3338_v53 = vand.u32 4294901760, %v3337_v50 }
 0xfd0   :  { %v3339_v58 = vsub.f32 %v3337_v50, %v3338_v53  ;;  %3450 = vmatpush.msrb.mxu2 %v3338_v53 }
 0xfd2   :  { %3454 = vmatpush.msrb.mxu2 %v3344_v42 }
0x1033   :  { %v3065_v61 = vpop.f32.mrf.mxu1 }
0x103b   :  { %v3020_v63 = vpop.f32.mrf.mxu0  ;;  %v3195_v10 = vpop.f32.mrf.mxu1 }
0x103c   :  { %v3021_v4 = vadd.f32 %v3877_v13, %v3020_v63  ;;  %v3100_v17 = vpop.f32.mrf.mxu2  ;;  %v3340_v13 = vand.u32 4294901760, %v3339_v58  ;;  %v3502_v58 = vld [vmem:[%s4495_s9 + $0x18] sm:$0xff] }
0x103d   :  { %v3133_v16 = vpop.f32.mrf.mxu3 }
0x103e   :  { %v3066_v9 = vadd.f32 %v3065_v61, %v3021_v4  ;;  %v3350_v61 = vand.u32 4294901760, %v3349_v59  ;;  %3341 = vmatpush.msra.mxu3 %v3340_v13 }
0x1040   :  { %v3101_v39 = vadd.f32 %v3100_v17, %v3066_v9  ;;  %v3351_v63 = vsub.f32 %v3349_v59, %v3350_v61  ;;  %3347 = vmatpush.msra.mxu3 %v3346_v62  ;;  %3458 = vmatpush.msrb.mxu2 %v3350_v61  ;;  %v4431_v61 = vand.u32 4294901760, %v3502_v58  ;;  %v3501_v62 = vld [vmem:[%s4495_s9 + $0x10] sm:$0xff] }
0x1042   :  { %v3134_v3 = vadd.f32 %v3133_v16, %v3101_v39  ;;  %v3352_v0 = vand.u32 4294901760, %v3351_v63 }
0x1043   :  { %v3166_v11 = vpop.f32.mrf.mxu0  ;;  %v3199_v21 = vpop.f32.mrf.mxu1 }
0x1044   :  { %v3167_v14 = vadd.f32 %v3166_v11, %v3128_v7  ;;  %3353 = vmatpush.msra.mxu3 %v3352_v0 }
0x1046   :  { %v3196_v40 = vadd.f32 %v3195_v10, %v3167_v14  ;;  %3481 = vmatpush.msrb.mxu3 %v3293_v44  ;;  %v3506_v44 = vld [vmem:[%s4495_s9 + $0x38] sm:$0xff] }
0x1047   :  { %v4384_v45 = vand.u32 4294901760, %v3506_v44 }
0x1048   :  { %v3202_v2 = vadd.f32 %v3926_v43, %v3196_v40  ;;  %3483 = vmatpush.msrb.mxu3 %v3295_v47 }
0x1049   :  { %v4390_v47 = vsub.f32 %v3506_v44, %v4384_v45  ;;  %3527 = vmatpush.msra.mxu0 %v4384_v45 }
0x104a   :  { %v3206_v6 = vsel %vm70_vm0, %v3202_v2, 0.0  ;;  %3485 = vmatpush.msrb.mxu3 %v3297_v12  ;;  %v4401_v12 = vsub.f32 %v3505_v46, %v4392_v48 }
0x104b   :  { %v3170_v20 = vpop.f32.mrf.mxu0  ;;  %3207 = vadd.xlane.f32.xlu2 %v3206_v6  ;;  %v3569_v50 = vand.u32 4294901760, %v4390_v47  ;;  %3529 = vmatpush.msra.mxu0 %v4392_v48 }
0x104c   :  { %v3171_v8 = vadd.f32 %v3170_v20, %v3134_v3  ;;  %3487 = vmatpush.msrb.mxu3 %v3299_v55  ;;  %v3878_v3 = vld [vmem:[%s4491_s5] ss:$0 sm:$0xff]  ;;  %v3575_v54 = vand.u32 4294901760, %v4401_v12  ;;  %v4416_v55 = vsub.f32 %v3504_v49, %v4404_v15 }
0x104d   :  { %v3570_v53 = vsub.f32 %v4390_v47, %v3569_v50  ;;  %3531 = vmatpush.msra.mxu0 %v4404_v15 }
0x104e   :  { %v3200_v24 = vadd.f32 %v3199_v21, %v3171_v8  ;;  %v3879_v8 = vld [vmem:[%s4492_s6] ss:$0 sm:$0xff]  ;;  %v3576_v59 = vsub.f32 %v4401_v12, %v3575_v54  ;;  %v3581_v13 = vand.u32 4294901760, %v4416_v55 }
0x104f   :  { %v3571_v42 = vand.u32 4294901760, %v3570_v53  ;;  %3533 = vmatpush.msra.mxu0 %v4419_v57 }
0x1050   :  { %v3203_v25 = vadd.f32 %v3927_v26, %v3200_v24  ;;  %v3577_v63 = vand.u32 4294901760, %v3576_v59  ;;  %v3582_v0 = vsub.f32 %v4416_v55, %v3581_v13 }
0x1051   :  { %3572 = vmatpush.msra.mxu1 %v3571_v42  ;;  %3535 = vmatpush.msra.mxu0 %v4431_v61 }
0x1052   :  { %v3209_v18 = vsel %vm70_vm0, %v3203_v25, 0.0 }
0x1053   :  { %3210 = vadd.xlane.f32.xlu0 %v3209_v18  ;;  %3578 = vmatpush.msra.mxu1 %v3577_v63 }
0x10be   :  { %v3208_v32 = vpop.xlane.xlu2 %3207 }
0x10bf   :  { %v3219_v33 = vmul.f32 %v4349_v31, %v3208_v32 }
0x10c1   :  { %v4352_v56 = vsub.f32 %v3202_v2, %v3219_v33 }
0x10c3   :  { %v3223_v34 = vmul.f32 %v4352_v56, %v4352_v56 }
0x10c5   :  { %v3225_v35 = vsel %vm70_vm0, %v3223_v34, 0.0 }
0x10c6   :  { %3226 = vadd.xlane.f32.xlu1 %v3225_v35  ;;  %v3211_v36 = vpop.xlane.xlu0 %3210 }
0x10c7   :  { %v3220_v19 = vmul.f32 %v4349_v31, %v3211_v36 }
0x10c9   :  { %v4358_v52 = vsub.f32 %v3203_v25, %v3220_v19 }
0x10cb   :  { %v3224_v37 = vmul.f32 %v4358_v52, %v4358_v52 }
0x10cd   :  { %v3228_v38 = vsel %vm70_vm0, %v3224_v37, 0.0 }
0x10ce   :  { %3229 = vadd.xlane.f32.xlu2 %v3228_v38 }
0x1139   :  { %v3227_v1 = vpop.xlane.xlu1 %3226 }
0x113a   :  { %v3231_v4 = vmul.f32 %v3227_v1, %v4349_v31  ;;  %v3587_v1 = vand.u32 4294901760, %v3586_v60 }
0x113c   :  { %v3233_v5 = vadd.f32 1e-05, %v3231_v4  ;;  %v3536_v4 = vand.u32 4294901760, %v3501_v62 }
0x113e   :  { %3918 = vrsqrt.f32 %v3233_v5  ;;  %vm3241_vm9 = vweird.f32 %v3233_v5  ;;  %3537 = vmatpush.msra.mxu0 %v3536_v4 }
0x1141   :  { %v3230_v7 = vpop.xlane.xlu2 %3229 }
0x1142   :  { %v3232_v9 = vmul.f32 %v3230_v7, %v4349_v31  ;;  %v3500_v7 = vld [vmem:[%s4495_s9 + $0x8] sm:$0xff] }
0x1144   :  { %v3919_v10 = vpop.eup %3918  ;;  %v3234_v11 = vadd.f32 1e-05, %v3232_v9  ;;  %v3583_v9 = vand.u32 4294901760, %v3582_v0 }
0x1145   :  { %v3236_v14 = vmul.f32 %v3919_v10, %v3233_v5  ;;  %vm3242_vm8 = vweird.f32 %v3919_v10  ;;  %v3592_v5 = vsub.f32 %v3502_v58, %v4431_v61 }
0x1146   :  { %3920 = vrsqrt.f32 %v3234_v11  ;;  %vm3243_vm10 = vmor %vm3241_vm9, %vm3242_vm8  ;;  %vm3251_vm12 = vweird.f32 %v3234_v11  ;;  %3584 = vmatpush.msra.mxu1 %v3583_v9  ;;  %v3881_v9 = vld [vmem:[%s4496_s10] ss:$0 sm:$0xff] }
0x1147   :  { %v3237_v17 = vmul.f32 %v3919_v10, %v3236_v14  ;;  %v3538_v14 = vand.u32 4294901760, %v3500_v7 }
0x1149   :  { %v3238_v39 = vmul.f32 0.5, %v3237_v17  ;;  %v3593_v17 = vand.u32 4294901760, %v3592_v5  ;;  %3539 = vmatpush.msra.mxu0 %v3538_v14 }
0x114b   :  { %v3239_v40 = vsub.f32 1.5, %v3238_v39  ;;  %v3499_v39 = vld [vmem:[%s4495_s9] sm:$0xff] }
0x114c   :  { %v3921_v43 = vpop.eup %3920 }
0x114d   :  { %v3240_v2 = vmul.f32 %v3919_v10, %v3239_v40  ;;  %v3246_v16 = vmul.f32 %v3921_v43, %v3234_v11  ;;  %vm3252_vm11 = vweird.f32 %v3921_v43  ;;  %v3598_v11 = vsub.f32 %v3501_v62, %v3536_v4 }
0x114e   :  { %vm3253_vm13 = vmor %vm3251_vm12, %vm3252_vm11 }
0x114f   :  { %v3244_v6 = vsel %vm3243_vm10, %v3919_v10, %v3240_v2  ;;  %v3247_v20 = vmul.f32 %v3921_v43, %v3246_v16  ;;  %v3588_v10 = vsub.f32 %v3586_v60, %v3587_v1  ;;  %v3604_v2 = vsub.f32 %v3500_v7, %v3538_v14 }
0x1150   :  { %v3255_v21 = vmul.f32 %v3244_v6, %v4352_v56  ;;  %v3540_v16 = vand.u32 4294901760, %v3499_v39 }
0x1151   :  { %v3248_v24 = vmul.f32 0.5, %v3247_v20  ;;  %v3589_v40 = vand.u32 4294901760, %v3588_v10  ;;  %v3605_v20 = vand.u32 4294901760, %v3604_v2 }
0x1152   :  { %v3260_v26 = vmul.f32 %v3878_v3, %v3255_v21  ;;  %3541 = vmatpush.msra.mxu0 %v3540_v16 }
0x1153   :  { %v3249_v25 = vsub.f32 1.5, %v3248_v24  ;;  %3590 = vmatpush.msra.mxu1 %v3589_v40 }
0x1154   :  { %v4372_v18 = vadd.f32 %v3879_v8, %v3260_v26  ;;  %v3606_v26 = vsub.f32 %v3604_v2, %v3605_v20 }
0x1155   :  { %v3250_v27 = vmul.f32 %v3921_v43, %v3249_v25 }
0x1156   :  { %v3276_v22 = vsel %vm70_vm0, %v4372_v18, 0 }
0x1157   :  { %v3254_v23 = vsel %vm3253_vm13, %v3921_v43, %v3250_v27  ;;  %v3301_v29 = vand.u32 4294901760, %v3276_v22  ;;  %v3599_v43 = vand.u32 4294901760, %v3598_v11  ;;  %v3607_v27 = vand.u32 4294901760, %v3606_v26 }
0x1158   :  { %v3256_v28 = vmul.f32 %v3254_v23, %v4358_v52 }
0x1159   :  { %3355 = vmatmul.f32.vlgmr.msra.gmra.mxu3 %v3301_v29  ;;  %v3302_v30 = vsub.f32 %v3276_v22, %v3301_v29  ;;  %v3600_v6 = vsub.f32 %v3598_v11, %v3599_v43 }
0x115a   :  { %v3261_v32 = vmul.f32 %v3878_v3, %v3256_v28  ;;  %3676 = vmatpush.msra.mxu3 %v4384_v45  ;;  %v3594_v3 = vsub.f32 %v3592_v5, %v3593_v17  ;;  %v3880_v28 = vld [vmem:[%s4494_s8] ss:$0 sm:$0xff] }
0x115b   :  { %3389 = vmatmul.f32.vlgmr.msrb.gmra.mxu0 %v3302_v30  ;;  %v3303_v33 = vand.u32 4294901760, %v3302_v30  ;;  %v3601_v24 = vand.u32 4294901760, %v3600_v6 }
0x115c   :  { %v4377_v56 = vadd.f32 %v3879_v8, %v3261_v32  ;;  %3678 = vmatpush.msra.mxu3 %v4392_v48  ;;  %v3610_v8 = vsub.f32 %v3499_v39, %v3540_v16  ;;  %v3595_v21 = vand.u32 4294901760, %v3594_v3  ;;  %3715 = vmatpush.msrb.mxu0 %v3569_v50 }
0x115d   :  { %3421 = vmatmul.f32.vlgmr.msrb.gmra.mxu1 %v3303_v33  ;;  %v3304_v34 = vsub.f32 %v3302_v30, %v3303_v33 }
0x115e   :  { %v3279_v35 = vsel %vm70_vm0, %v4377_v56, 0  ;;  %3680 = vmatpush.msra.mxu3 %v4404_v15  ;;  %v3611_v25 = vand.u32 4294901760, %v3610_v8  ;;  %3596 = vmatpush.msra.mxu1 %v3595_v21 }
0x115f   :  { %v3305_v36 = vand.u32 4294901760, %v3304_v34  ;;  %v3309_v19 = vand.u32 4294901760, %v3279_v35  ;;  %3719 = vmatpush.msrb.mxu0 %v3575_v54 }
0x1160   :  { %3682 = vmatpush.msra.mxu3 %v4419_v57  ;;  %v3612_v22 = vsub.f32 %v3610_v8, %v3611_v25  ;;  %3602 = vmatpush.msra.mxu1 %v3601_v24 }
0x1161   :  { %3306 = vmatmul.f32.vlgmr.msra.gmra.mxu2 %v3305_v36  ;;  %3359 = vmatmul.f32.gmra.mxu3 %v3309_v19  ;;  %v3310_v37 = vsub.f32 %v3279_v35, %v3309_v19 }
0x1162   :  { %3634 = vmatpush.msra.mxu2 %v4390_v47  ;;  %3684 = vmatpush.msra.mxu3 %v4431_v61  ;;  %v3613_v23 = vand.u32 4294901760, %v3612_v22 }
0x1163   :  { %3394 = vmatmul.f32.gmra.mxu0 %v3310_v37  ;;  %v3311_v38 = vand.u32 4294901760, %v3310_v37  ;;  %3608 = vmatpush.msra.mxu1 %v3607_v27 }
0x1164   :  { %3637 = vmatpush.msra.mxu2 %v4401_v12  ;;  %3686 = vmatpush.msra.mxu3 %v3536_v4 }
0x1165   :  { %3427 = vmatmul.f32.gmra.mxu1 %v3311_v38  ;;  %v3312_v52 = vsub.f32 %v3310_v37, %v3311_v38  ;;  %3723 = vmatpush.msrb.mxu0 %v3581_v13 }
0x1166   :  { %3640 = vmatpush.msra.mxu2 %v4416_v55  ;;  %3688 = vmatpush.msra.mxu3 %v3538_v14 }
0x1167   :  { %v3313_v41 = vand.u32 4294901760, %v3312_v52  ;;  %3614 = vmatpush.msra.mxu1 %v3613_v23  ;;  %3727 = vmatpush.msrb.mxu0 %v3587_v1 }
0x1168   :  { %3643 = vmatpush.msra.mxu2 %v3586_v60  ;;  %3690 = vmatpush.msra.mxu3 %v3540_v16 }
0x1169   :  { %3314 = vmatmul.f32.gmra.mxu2 %v3313_v41  ;;  %3489 = vmatmul.f32.vlgmr.msrb.gmra.mxu3 %v3301_v29 }
0x116a   :  { %3646 = vmatpush.msra.mxu2 %v3592_v5  ;;  %3762 = vmatpush.msrb.mxu1 %v4384_v45 }
0x116b   :  { %3731 = vmatpush.msrb.mxu0 %v3593_v17 }
0x116c   :  { %3649 = vmatpush.msra.mxu2 %v3598_v11  ;;  %3764 = vmatpush.msrb.mxu1 %v4392_v48 }
0x116d   :  { %3735 = vmatpush.msrb.mxu0 %v3599_v43 }
0x116e   :  { %3652 = vmatpush.msra.mxu2 %v3604_v2  ;;  %3766 = vmatpush.msrb.mxu1 %v4404_v15 }
0x116f   :  { %3739 = vmatpush.msrb.mxu0 %v3605_v20 }
0x1170   :  { %3655 = vmatpush.msra.mxu2 %v3610_v8  ;;  %3768 = vmatpush.msrb.mxu1 %v4419_v57 }
0x1171   :  { %3460 = vmatmul.f32.vlgmr.msrb.gmra.mxu2 %v3301_v29  ;;  %3493 = vmatmul.f32.gmra.mxu3 %v3309_v19 }
0x1172   :  { %3770 = vmatpush.msrb.mxu1 %v4431_v61  ;;  %3743 = vmatpush.msrb.mxu0 %v3611_v25 }
0x1174   :  { %3772 = vmatpush.msrb.mxu1 %v3536_v4 }
0x1176   :  { %3774 = vmatpush.msrb.mxu1 %v3538_v14 }
0x1178   :  { %3776 = vmatpush.msrb.mxu1 %v3540_v16 }
0x1179   :  { %3464 = vmatmul.f32.gmra.mxu2 %v3309_v19 }
0x11d8   :  { %v3390_v35 = vpop.f32.mrf.mxu0 }
0x11da   :  { %v3422_v38 = vpop.f32.mrf.mxu1 }
0x11dc   :  { %v3356_v29 = vpop.f32.mrf.mxu3 }
0x11e0   :  { %v3395_v47 = vpop.f32.mrf.mxu0 }
0x11e2   :  { %v3428_v12 = vpop.f32.mrf.mxu1 }
0x11e4   :  { %v3307_v30 = vpop.f32.mrf.mxu2  ;;  %v3360_v33 = vpop.f32.mrf.mxu3 }
0x11e5   :  { %v3308_v32 = vadd.f32 %v3880_v28, %v3307_v30 }
0x11e7   :  { %v3357_v34 = vadd.f32 %v3356_v29, %v3308_v32 }
0x11e9   :  { %v3391_v37 = vadd.f32 %v3390_v35, %v3357_v34 }
0x11eb   :  { %v3423_v41 = vadd.f32 %v3422_v38, %v3391_v37 }
0x11ec   :  { %v3315_v36 = vpop.f32.mrf.mxu2  ;;  %v3490_v44 = vpop.f32.mrf.mxu3 }
0x11ed   :  { %v3316_v19 = vadd.f32 %v3880_v28, %v3315_v36 }
0x11ef   :  { %v3361_v52 = vadd.f32 %v3360_v33, %v3316_v19 }
0x11f1   :  { %v3396_v49 = vadd.f32 %v3395_v47, %v3361_v52 }
0x11f3   :  { %v3429_v51 = vadd.f32 %v3428_v12, %v3396_v49 }
0x11f4   :  { %v3461_v45 = vpop.f32.mrf.mxu2  ;;  %v3494_v58 = vpop.f32.mrf.mxu3 }
0x11f5   :  { %v3462_v46 = vadd.f32 %v3461_v45, %v3423_v41 }
0x11f7   :  { %v3491_v48 = vadd.f32 %v3490_v44, %v3462_v46 }
0x11f9   :  { %v3497_v50 = vmax.f32 %v3491_v48, 0.0 }
0x11fb   :  { %v3513_v15 = vsel %vm3511_vm14, %v3497_v50, 0 }
0x11fc   :  { %v3542_v53 = vand.u32 4294901760, %v3513_v15  ;;  %v3465_v54 = vpop.f32.mrf.mxu2 }
0x11fd   :  { %v3466_v55 = vadd.f32 %v3465_v54, %v3429_v51 }
0x11fe   :  { %v3543_v57 = vsub.f32 %v3513_v15, %v3542_v53  ;;  %3616 = vmatmul.f32.vlgmr.msra.gmra.mxu1 %v3542_v53 }
0x11ff   :  { %v3495_v42 = vadd.f32 %v3494_v58, %v3466_v55 }
0x1200   :  { %v3544_v59 = vand.u32 4294901760, %v3543_v57  ;;  %3658 = vmatmul.f32.vlgmr.msra.gmra.mxu2 %v3543_v57 }
0x1201   :  { %v3498_v13 = vmax.f32 %v3495_v42, 0.0 }
0x1202   :  { %v3545_v60 = vsub.f32 %v3543_v57, %v3544_v59  ;;  %3694 = vmatmul.f32.vlgmr.msra.gmra.mxu3 %v3544_v59  ;;  %v3882_v59 = vld [vmem:[%s4497_s11] ss:$0 sm:$0xff] }
0x1203   :  { %v3516_v61 = vsel %vm3511_vm14, %v3498_v13, 0 }
0x1204   :  { %v3546_v62 = vand.u32 4294901760, %v3545_v60  ;;  %v3550_v63 = vand.u32 4294901760, %v3516_v61 }
0x1206   :  { %3547 = vmatmul.f32.vlgmr.msra.gmra.mxu0 %v3546_v62  ;;  %3620 = vmatmul.f32.gmra.mxu1 %v3550_v63  ;;  %v3551_v0 = vsub.f32 %v3516_v61, %v3550_v63 }
0x1208   :  { %3663 = vmatmul.f32.gmra.mxu2 %v3551_v0  ;;  %v3552_v1 = vand.u32 4294901760, %v3551_v0 }
0x120a   :  { %3700 = vmatmul.f32.gmra.mxu3 %v3552_v1  ;;  %v3553_v4 = vsub.f32 %v3551_v0, %v3552_v1 }
0x120c   :  { %v3554_v5 = vand.u32 4294901760, %v3553_v4 }
0x120e   :  { %3555 = vmatmul.f32.gmra.mxu0 %v3554_v5  ;;  %3778 = vmatmul.f32.vlgmr.msrb.gmra.mxu1 %v3542_v53 }
0x1216   :  { %3745 = vmatmul.f32.vlgmr.msrb.gmra.mxu0 %v3542_v53  ;;  %3782 = vmatmul.f32.gmra.mxu1 %v3550_v63 }
0x121e   :  { %3749 = vmatmul.f32.gmra.mxu0 %v3550_v63 }
0x127b   :  { %v3617_v7 = vpop.f32.mrf.mxu1 }
0x1283   :  { %v3548_v10 = vpop.f32.mrf.mxu0  ;;  %v3621_v14 = vpop.f32.mrf.mxu1 }
0x1284   :  { %v3549_v11 = vadd.f32 %v3881_v9, %v3548_v10  ;;  %v3659_v39 = vpop.f32.mrf.mxu2 }
0x1285   :  { %v3695_v16 = vpop.f32.mrf.mxu3 }
0x1286   :  { %v3618_v17 = vadd.f32 %v3617_v7, %v3549_v11 }
0x1288   :  { %v3660_v43 = vadd.f32 %v3659_v39, %v3618_v17 }
0x128a   :  { %v3696_v3 = vadd.f32 %v3695_v16, %v3660_v43 }
0x128b   :  { %v3556_v40 = vpop.f32.mrf.mxu0  ;;  %v3779_v20 = vpop.f32.mrf.mxu1 }
0x128c   :  { %v3557_v2 = vadd.f32 %v3881_v9, %v3556_v40  ;;  %v3664_v24 = vpop.f32.mrf.mxu2 }
0x128d   :  { %v3701_v22 = vpop.f32.mrf.mxu3 }
0x128e   :  { %v3622_v6 = vadd.f32 %v3621_v14, %v3557_v2 }
0x1290   :  { %v3665_v26 = vadd.f32 %v3664_v24, %v3622_v6 }
0x1292   :  { %v3702_v23 = vadd.f32 %v3701_v22, %v3665_v26 }
0x1293   :  { %v3746_v8 = vpop.f32.mrf.mxu0  ;;  %v3783_v32 = vpop.f32.mrf.mxu1 }
0x1294   :  { %v3747_v21 = vadd.f32 %v3746_v8, %v3696_v3 }
0x1296   :  { %v3780_v25 = vadd.f32 %v3779_v20, %v3747_v21 }
0x1298   :  { %v3786_v27 = vadd.f32 %v3780_v25, %v4372_v18 }
0x129a   :  { %v3790_v29 = vsel %vm70_vm0, %v3786_v27, 0.0 }
0x129b   :  { %v3750_v28 = vpop.f32.mrf.mxu0  ;;  %3791 = vadd.xlane.f32.xlu2 %v3790_v29 }
0x129c   :  { %v3751_v30 = vadd.f32 %v3750_v28, %v3702_v23 }
0x129e   :  { %v3784_v33 = vadd.f32 %v3783_v32, %v3751_v30 }
0x12a0   :  { %v3787_v34 = vadd.f32 %v3784_v33, %v4377_v56 }
0x12a2   :  { %v3793_v35 = vsel %vm70_vm0, %v3787_v34, 0.0 }
0x12a3   :  { %3794 = vadd.xlane.f32.xlu2 %v3793_v35 }
0x130e   :  { %v3792_v36 = vpop.xlane.xlu2 %3791 }
0x130f   :  { %v3796_v19 = vmul.f32 %v3792_v36, %v4349_v31 }
0x1311   :  { %v3798_v37 = vsub.f32 %v3786_v27, %v3796_v19 }
0x1313   :  { %v3800_v38 = vmul.f32 %v3798_v37, %v3798_v37 }
0x1315   :  { %v3802_v18 = vsel %vm70_vm0, %v3800_v38, 0.0 }
0x1316   :  { %3803 = vadd.xlane.f32.xlu2 %v3802_v18  ;;  %v3795_v52 = vpop.xlane.xlu2 %3794 }
0x1317   :  { %v3797_v41 = vmul.f32 %v3795_v52, %v4349_v31 }
0x1319   :  { %v3799_v44 = vsub.f32 %v3787_v34, %v3797_v41 }
0x131b   :  { %v3801_v45 = vmul.f32 %v3799_v44, %v3799_v44 }
0x131d   :  { %v3805_v46 = vsel %vm70_vm0, %v3801_v45, 0.0 }
0x131e   :  { %3806 = vadd.xlane.f32.xlu2 %v3805_v46 }
0x1389   :  { %v3804_v56 = vpop.xlane.xlu2 %3803 }
0x138a   :  { %v3808_v47 = vmul.f32 %v3804_v56, %v4349_v31 }
0x138c   :  { %v3810_v48 = vadd.f32 1e-05, %v3808_v47 }
0x138e   :  { %3922 = vrsqrt.f32 %v3810_v48  ;;  %vm3818_vm2 = vweird.f32 %v3810_v48 }
0x1391   :  { %v3807_v49 = vpop.xlane.xlu2 %3806 }
0x1392   :  { %v3809_v50 = vmul.f32 %v3807_v49, %v4349_v31  ;;  %v3883_v31 = vld [vmem:[%s4498_s12] ss:$0 sm:$0xff] }
0x1394   :  { %v3923_v12 = vpop.eup %3922  ;;  %v3811_v15 = vadd.f32 1e-05, %v3809_v50 }
0x1395   :  { %v3813_v51 = vmul.f32 %v3923_v12, %v3810_v48  ;;  %vm3819_vm15 = vweird.f32 %v3923_v12 }
0x1396   :  { %3924 = vrsqrt.f32 %v3811_v15  ;;  %vm3820_vm3 = vmor %vm3818_vm2, %vm3819_vm15  ;;  %vm3828_vm5 = vweird.f32 %v3811_v15 }
0x1397   :  { %v3814_v53 = vmul.f32 %v3923_v12, %v3813_v51 }
0x1399   :  { %v3815_v54 = vmul.f32 0.5, %v3814_v53 }
0x139b   :  { %v3816_v55 = vsub.f32 1.5, %v3815_v54 }
0x139c   :  { %v3925_v57 = vpop.eup %3924 }
0x139d   :  { %v3817_v58 = vmul.f32 %v3923_v12, %v3816_v55  ;;  %v3823_v42 = vmul.f32 %v3925_v57, %v3811_v15  ;;  %vm3829_vm4 = vweird.f32 %v3925_v57 }
0x139e   :  { %vm3830_vm6 = vmor %vm3828_vm5, %vm3829_vm4 }
0x139f   :  { %v3821_v13 = vsel %vm3820_vm3, %v3923_v12, %v3817_v58  ;;  %v3824_v60 = vmul.f32 %v3925_v57, %v3823_v42 }
0x13a0   :  { %v3832_v61 = vmul.f32 %v3821_v13, %v3798_v37 }
0x13a1   :  { %v3825_v62 = vmul.f32 0.5, %v3824_v60 }
0x13a2   :  { %v3837_v63 = vmul.f32 %v3882_v59, %v3832_v61 }
0x13a3   :  { %v3826_v0 = vsub.f32 1.5, %v3825_v62 }
0x13a4   :  { %v3842_v1 = vadd.f32 %v3883_v31, %v3837_v63 }
0x13a5   :  { %v3827_v4 = vmul.f32 %v3925_v57, %v3826_v0 }
0x13a6   :  { %3844 = vst.msk [vmem:[%s4499_s13] sm:$0xff] %vm70_vm0, %v3842_v1 }
0x13a7   :  { %v3831_v5 = vsel %vm3830_vm6, %v3925_v57, %v3827_v4 }
0x13a8   :  { %v3833_v7 = vmul.f32 %v3831_v5, %v3799_v44 }
0x13aa   :  { %v3838_v9 = vmul.f32 %v3882_v59, %v3833_v7 }
0x13ac   :  { %v3843_v10 = vadd.f32 %v3883_v31, %v3838_v9 }
0x13ae   :  { %3845 = vst.msk [vmem:[%s4499_s13 + $0x8] sm:$0xff] %vm70_vm0, %v3843_v10 }
0x13af   :  { %3850 = vsyncpa [#allocation3], 1 }

</bundles_post_ra>
